<compile_context>
chip_gen: v6e
topology: v6e:2x2x1
jax: 0.10.0
libtpu: 0.0.40
codegen_flags: <defaults>
</compile_context>

<pallas_src>
import math

import jax
import jax.numpy as jnp
from jax.experimental import pallas as pl
from jax.experimental.pallas import tpu as pltpu


def _ru(x, m):
    return ((x + m - 1) // m) * m


# -----------------------------------------------------------------------------
# Hardware sniffing (budgets / MXU width), with safe fallbacks
# -----------------------------------------------------------------------------
def _vmem_capacity_bytes():
    try:
        return int(pltpu.get_tpu_info().vmem_capacity_bytes)
    except Exception:
        return 64 * 2 ** 20          # conservative (v7x per-core VMEM)


def _mxu_is_256_wide():
    try:
        kind = jax.devices()[0].device_kind.lower()
    except Exception:
        return False
    return ("v6" in kind) or ("v7" in kind)


def _choose_cout_tiling(cout):
    tc = 256 if (cout > 128 and _mxu_is_256_wide()) else 128
    return tc, _ru(cout, tc)


# -----------------------------------------------------------------------------
# DoW compose kernel:  out[i, m, o] = sum_s D[i, m, s] * Wt[i, s, o]
# (== torch.einsum('ims,ois->oim') with o last), tiled over Cin blocks, bf16 out.
# -----------------------------------------------------------------------------
def _dow_compose_kernel(d_ref, wt_ref, o_ref):
    o_ref[...] = jnp.einsum(
        "ims,iso->imo", d_ref[...], wt_ref[...],
        preferred_element_type=jnp.float32).astype(o_ref.dtype)


def dow_compose(D, Wt, *, out_dtype=jnp.bfloat16, block_cin=256):
    """(Cin, MN, S) x (Cin, S, Co_pad) -> (Cin, MN, Co_pad), Cin-tiled (no VMEM OOM)."""
    Cin, MN, S = D.shape
    Co = Wt.shape[-1]
    cb = min(block_cin, Cin)
    return pl.pallas_call(
        _dow_compose_kernel,
        out_shape=jax.ShapeDtypeStruct((Cin, MN, Co), out_dtype),
        grid=(pl.cdiv(Cin, cb),),
        in_specs=[pl.BlockSpec((cb, MN, S), lambda i: (i, 0, 0)),
                  pl.BlockSpec((cb, S, Co), lambda i: (i, 0, 0))],
        out_specs=pl.BlockSpec((cb, MN, Co), lambda i: (i, 0, 0)),
        compiler_params=pltpu.CompilerParams(
            dimension_semantics=("parallel",)),
    )(D, Wt)


# -----------------------------------------------------------------------------
# Conv kernel (stride 1, 'zeros' padding folded into the kernel)
# -----------------------------------------------------------------------------
def _make_conv_kernel(KH, KW, ph, pw, TH, W, Wo_pad, Cin, H, nH, compute_dtype):
    n_top = ph                        # top halo rows (zero-padding rows at t == 0)
    n_bot = KH - 1 - ph               # bottom halo rows
    Wp = Wo_pad + KW - 1
    last_valid = H - (nH - 1) * TH    # real rows inside the last main block

    def kernel(*refs):
        xm_ref = refs[0]
        top_refs = refs[1:1 + n_top]
        bot_refs = refs[1 + n_top:1 + n_top + n_bot]
        w_ref = refs[1 + n_top + n_bot]
        o_ref = refs[2 + n_top + n_bot]
        slab_ref, col_ref = refs[-2], refs[-1]

        t = pl.program_id(2)          # row-tile index (grid = (cout_tile, batch, row_tile))

        # ---- zero the W-padding border columns of the slab (cheap, redone every step
        #      so it stays correct under megacore grid sharding) ----
        if pw > 0:
            slab_ref[:, 0:pw, :] = jnp.zeros((TH + KH - 1, pw, Cin), compute_dtype)
        if Wp > pw + W:
            slab_ref[:, pw + W:Wp, :] = jnp.zeros((TH + KH - 1, Wp - pw - W, Cin),
                                                  compute_dtype)

        # ---- main rows of this tile (cast to the MXU compute dtype while copying) ----
        slab_ref[ph:ph + TH, pw:pw + W, :] = xm_ref[0].astype(compute_dtype)

        # ---- zero the rows of the last tile that fall past the real image height ----
        if nH * TH > H:
            @pl.when(t == nH - 1)
            def _():
                slab_ref[ph + last_valid:ph + TH, pw:pw + W, :] = jnp.zeros(
                    (TH - last_valid, W, Cin), compute_dtype)

        # ---- halo rows: copy the neighbouring image row, or zero when it is padding ----
        for j in range(n_top):
            v = top_refs[j][0, 0].astype(compute_dtype)               # (W, Cin)
            valid = (t * TH + j) >= ph                                # image row >= 0 ?
            slab_ref[j, pw:pw + W, :] = jnp.where(valid, v, jnp.zeros_like(v))
        for j in range(n_bot):
            v = bot_refs[j][0, 0].astype(compute_dtype)
            valid = (t * TH + TH + j) < H                             # image row < H ?
            slab_ref[ph + TH + j, pw:pw + W, :] = jnp.where(valid, v, jnp.zeros_like(v))

        # ---- im2col: (TH*Wo_pad, KH*KW*Cin) scratch, then ONE MXU matmul ----
        # TODO(synk): for Cin % 128 != 0 the tap-column stores are lane-masked; padding
        #             Cin is only worth it for mid-sized Cin.
        for kh in range(KH):
            for kw in range(KW):
                tap = kh * KW + kw
                patch = slab_ref[kh:kh + TH, kw:kw + Wo_pad, :]
                col_ref[:, tap * Cin:(tap + 1) * Cin] = patch.reshape(TH * Wo_pad, Cin)

        out = jnp.dot(col_ref[...], w_ref[...], preferred_element_type=jnp.float32)
        o_ref[0] = out.reshape(TH, Wo_pad, out.shape[-1]).astype(o_ref.dtype)

    return kernel


def conv2d_nhwc(x, w2d, *, kernel_size, padding, cout_tile, out_dtype=None,
                block_h=None, compute_dtype=jnp.bfloat16):
    """Stride-1 'zeros'-padded conv.  x: (B, H, W, Cin) NHWC (any float dtype, read
    straight from HBM, no pre-padding pass); w2d: (KH*KW*Cin, Co_pad) tap-major flattened
    weights in the compute dtype.  Returns (y_padded, Ho, Wo) with y_padded of shape
    (B, nH*TH, Wo_pad, Co_pad) — the caller slices to (B, Ho, Wo, Cout)."""
    B, H, W, Cin = x.shape
    KH = KW = kernel_size
    ph = pw = padding
    K, Co_pad = w2d.shape
    assert K == KH * KW * Cin
    assert KH >= 2 and 2 * ph <= KH - 1   # module defaults: 3x3, pad 1
    TC = cout_tile
    assert Co_pad % TC == 0
    nC = Co_pad // TC
    out_dtype = x.dtype if out_dtype is None else out_dtype

    Ho = H + 2 * ph - KH + 1
    Wo = W + 2 * pw - KW + 1
    assert Ho > 0 and Wo > 0
    Wo_pad = _ru(Wo, 16)                  # bf16 sublane packing -> clean reshapes
    Wp = Wo_pad + KW - 1

    x_bytes = jnp.dtype(x.dtype).itemsize
    out_bytes = jnp.dtype(out_dtype).itemsize

    # Generation-aware per-step VMEM budget / scoped limit.
    vcap = _vmem_capacity_bytes()
    if vcap <= 96 * 2 ** 20:              # v7x-class: 64 MiB per core
        budget, limit_cap = 22 * 2 ** 20, 40 * 2 ** 20
    else:                                 # v5e / v6e: 128 MiB
        budget, limit_cap = 30 * 2 ** 20, 88 * 2 ** 20

    def step_bytes(th):
        """Per-step VMEM footprint incl. slab/im2col scratch and matmul temporaries."""
        cin_l = _ru(Cin, 128)
        in_blk = th * _ru(W, 16) * cin_l * x_bytes
        halo = (KH - 1) * _ru(W, 16) * cin_l * x_bytes
        w_blk = _ru(K, 16) * _ru(TC, 128) * 2
        out_blk = th * Wo_pad * _ru(TC, 128) * out_bytes
        slab = (th + KH - 1) * _ru(Wp, 16) * cin_l * 2
        col = _ru(th * Wo_pad, 16) * _ru(K, 128) * 2
        mm_f32 = th * Wo_pad * _ru(TC, 128) * 4
        patches = 2 * th * Wo_pad * cin_l * 2
        return 2 * (in_blk + halo + w_blk + out_blk) + slab + col + 2 * mm_f32 + patches

    if block_h is None:
        TH = 8
        cap_th = max(8, _ru(Ho, 8))
        while TH * 2 <= cap_th and step_bytes(TH * 2) <= budget:
            TH *= 2
    else:
        assert block_h > 0 and block_h % 8 == 0
        TH = block_h
    nH = pl.cdiv(Ho, TH)
    assert (nH - 1) * TH < H
    vmem_limit = int(min(limit_cap, max(32 * 2 ** 20, step_bytes(TH) + 8 * 2 ** 20)))

    n_top, n_bot = ph, KH - 1 - ph
    kernel = _make_conv_kernel(KH, KW, ph, pw, TH, W, Wo_pad, Cin, H, nH, compute_dtype)

    # Grid = (cout_tile, batch, row_tile): the weight block index only changes with the
    # OUTERMOST axis, so Pallas keeps each weight tile resident instead of re-fetching it
    # every (batch, row-tile) step.
    x_main_spec = pl.BlockSpec((1, TH, W, Cin), lambda c, b, t: (b, t, 0, 0))
    top_specs = [
        pl.BlockSpec((1, 1, W, Cin),
                     lambda c, b, t, j=j: (b, jnp.maximum(t * TH - ph + j, 0), 0, 0))
        for j in range(n_top)]
    bot_specs = [
        pl.BlockSpec((1, 1, W, Cin),
                     lambda c, b, t, j=j: (b, jnp.minimum(t * TH + TH + j, H - 1), 0, 0))
        for j in range(n_bot)]
    w_spec = pl.BlockSpec((K, TC), lambda c, b, t: (0, c))
    out_spec = pl.BlockSpec((1, TH, Wo_pad, TC), lambda c, b, t: (b, t, 0, c))

    y = pl.pallas_call(
        kernel,
        out_shape=jax.ShapeDtypeStruct((B, nH * TH, Wo_pad, Co_pad), out_dtype),
        grid=(nC, B, nH),
        in_specs=[x_main_spec, *top_specs, *bot_specs, w_spec],
        out_specs=out_spec,
        scratch_shapes=[
            pltpu.VMEM((TH + KH - 1, Wp, Cin), compute_dtype),   # padded input slab
            pltpu.VMEM((TH * Wo_pad, K), compute_dtype),         # im2col scratch
        ],
        compiler_params=pltpu.CompilerParams(
            dimension_semantics=("parallel", "parallel", "parallel"),
            vmem_limit_bytes=vmem_limit),
    )(x, *([x] * (n_top + n_bot)), w2d)
    return y, Ho, Wo


# -----------------------------------------------------------------------------
# DOConv2d parameter init + forward (glue in plain JAX)
# -----------------------------------------------------------------------------
def init_doconv2d_params(key, in_channels, out_channels, kernel_size=3,
                         D_mul=None, groups=1):
    M = N = kernel_size
    MN = M * N
    D_mul = MN if (D_mul is None or MN <= 1) else D_mul
    # kaiming_uniform_(a=sqrt(5)) on W(out, in//g, D_mul): bound = 1/sqrt(fan_in)
    fan_in = (in_channels // groups) * D_mul
    bound = 1.0 / math.sqrt(fan_in)
    W = jax.random.uniform(key, (out_channels, in_channels // groups, D_mul),
                           jnp.float32, -bound, bound)
    D = jnp.zeros((in_channels, MN, D_mul), jnp.float32)          # init_zero
    eye = jnp.eye(MN, dtype=jnp.float32)[None]                    # (1, MN, MN)
    D_diag = jnp.tile(eye, (in_channels, 1, D_mul // MN))
    if D_mul % MN != 0:
        D_diag = jnp.concatenate(
            [D_diag, jnp.zeros((in_channels, MN, D_mul % MN), jnp.float32)], axis=2)
    return {"W": W, "D": D, "D_diag": D_diag}


def doconv2d_forward_nhwc(params, x_nhwc, *, kernel_size=3, padding=1, groups=1,
                          block_h=None, compute_dtype=jnp.bfloat16):
    """DO-Conv forward, NHWC in / NHWC out (preferred entry: avoids NCHW<->NHWC passes)."""
    assert groups == 1, "TODO(synk): only groups=1 (DO-Conv) is implemented"
    # TODO(synk): stride=1, dilation=1, padding_mode='zeros' (module defaults) only.
    KH = KW = kernel_size
    MN = KH * KW
    assert KH >= 2, "TODO(synk): 1x1 kernels need a dedicated plain-matmul path"
    Cout, cin_g, D_mul = params["W"].shape
    Cin = cin_g * groups
    TC, Co_pad = _choose_cout_tiling(Cout)   # lane-dense (128/256) output tiles

    # DoW compose (Pallas, Cin-tiled, bf16 out) -> tap-major (KH*KW*Cin, Co_pad) weights.
    D = params["D"] + params["D_diag"]                    # (Cin, MN, D_mul) f32
    Wt = jnp.transpose(params["W"], (1, 2, 0))            # (Cin, D_mul, Cout) f32
    Wt = jnp.pad(Wt, ((0, 0), (0, 0), (0, Co_pad - Cout)))
    dow = dow_compose(D, Wt, out_dtype=compute_dtype)     # (Cin, MN, Co_pad)
    w2d = jnp.transpose(dow, (1, 0, 2)).reshape(MN * Cin, Co_pad)

    y, Ho, Wo = conv2d_nhwc(x_nhwc, w2d, kernel_size=kernel_size, padding=padding,
                            cout_tile=TC, out_dtype=x_nhwc.dtype, block_h=block_h,
                            compute_dtype=compute_dtype)
    y = y[:, :Ho, :Wo, :Cout]
    if params.get("b") is not None:
        y = y + params["b"].astype(y.dtype)
    return y


def doconv2d_forward(params, x_nchw, **kwargs):
    """PyTorch-layout (NCHW) entry point.  The transposes are boundary-only; keep the
    surrounding model NHWC and call doconv2d_forward_nhwc directly to avoid them."""
    x_nhwc = jnp.transpose(x_nchw, (0, 2, 3, 1))
    y_nhwc = doconv2d_forward_nhwc(params, x_nhwc, **kwargs)
    return jnp.transpose(y_nhwc, (0, 3, 1, 2))


# -----------------------------------------------------------------------------
if __name__ == "__main__":
    key = jax.random.PRNGKey(0)
    kx, kp, kx2 = jax.random.split(key, 3)

    B, Cin, H, W = 2, 4, 16, 16
    Cout = 8
    params = init_doconv2d_params(kp, Cin, Cout, kernel_size=3)

    def ref_conv(p, x_nchw):
        # Pure-JAX reference with matching bf16 rounding (the kernel feeds the MXU bf16
        # operands and accumulates in f32).
        DoW = jnp.einsum("ims,ois->oim", p["D"] + p["D_diag"], p["W"],
                         precision=jax.lax.Precision.HIGHEST).reshape(Cout, Cin, 3, 3)
        xb = x_nchw.astype(jnp.bfloat16).astype(jnp.float32)
        wb = DoW.astype(jnp.bfloat16).astype(jnp.float32)
        return jax.lax.conv_general_dilated(
            xb, wb, window_strides=(1, 1), padding=((1, 1), (1, 1)),
            dimension_numbers=("NCHW", "OIHW", "NCHW"),
            precision=jax.lax.Precision.HIGHEST)

    # Case 1: module-default small shapes (single row tile).
    x = jax.random.normal(kx, (B, Cin, H, W), jnp.float32)
    y = jax.block_until_ready(jax.jit(doconv2d_forward)(params, x))
    assert y.shape == (B, Cout, H, W), y.shape
    err = float(jnp.max(jnp.abs(y - ref_conv(params, x))))

    # Case 2: multiple row tiles + ragged H/W (exercises cross-tile halo rows and the
    # in-kernel zero padding of borders / past-the-end rows).
    x2 = jax.random.normal(kx2, (1, Cin, 13, 11), jnp.float32)
    y2 = jax.block_until_ready(
        jax.jit(lambda p, xx: doconv2d_forward(p, xx, block_h=8))(params, x2))
    assert y2.shape == (1, Cout, 13, 11), y2.shape
    err2 = float(jnp.max(jnp.abs(y2 - ref_conv(params, x2))))

    assert err < 2e-2 and err2 < 2e-2, (err, err2)
    print("KERNEL_OK")
</pallas_src>

<mosaic_0001>
module attributes {stable_mosaic.version = 11 : i64} {
  func.func @_dow_compose_kernel(%arg0: i32, %arg1: memref<4x9x9xf32, #tpu.memory_space<vmem>>, %arg2: memref<4x9x128xf32, #tpu.memory_space<vmem>>, %arg3: memref<4x9x128xbf16, #tpu.memory_space<vmem>>) attributes {dimension_semantics = [#tpu.dimension_semantics<parallel>], iteration_bounds = array<i64: 1>, scalar_prefetch = 0 : i64, scratch_operands = 0 : i64, tpu.core_type = #tpu.core_type<tc>, window_params = [{transform_indices = @transform_0, window_bounds = array<i64: 4, 9, 9>}, {transform_indices = @transform_1, window_bounds = array<i64: 4, 9, 128>}, {transform_indices = @transform_2, window_bounds = array<i64: 4, 9, 128>}]} {
    %c0 = arith.constant 0 : index
    %c0_0 = arith.constant 0 : index
    %c0_1 = arith.constant 0 : index
    %0 = vector.load %arg1[%c0, %c0_0, %c0_1] : memref<4x9x9xf32, #tpu.memory_space<vmem>>, vector<4x9x9xf32>
    %c0_2 = arith.constant 0 : index
    %c0_3 = arith.constant 0 : index
    %c0_4 = arith.constant 0 : index
    %1 = vector.load %arg2[%c0_2, %c0_3, %c0_4] : memref<4x9x128xf32, #tpu.memory_space<vmem>>, vector<4x9x128xf32>
    "tpu.trace_start"() <{level = 10 : i32, message = "ims,iso->imo"}> : () -> ()
    %cst = arith.constant dense<0.000000e+00> : vector<4x9x128xf32>
    %2 = tpu.matmul %0, %1, %cst {dimension_numbers = #tpu.dot_dimension_numbers<[2], [1], [1], [2], [0, 0, 0, 1, 1, 2], [0], [0]>} : vector<4x9x9xf32>, vector<4x9x128xf32>, vector<4x9x128xf32> -> vector<4x9x128xf32>
    "tpu.trace_stop"() : () -> ()
    %3 = arith.truncf %2 : vector<4x9x128xf32> to vector<4x9x128xbf16>
    %c0_5 = arith.constant 0 : index
    %c0_6 = arith.constant 0 : index
    %c0_7 = arith.constant 0 : index
    %4 = vector.load %arg3[%c0_5, %c0_6, %c0_7] : memref<4x9x128xbf16, #tpu.memory_space<vmem>>, vector<4x9x128xbf16>
    tpu.vector_store %arg3[%c0_5, %c0_6, %c0_7], %3 {strides = array<i32>} : memref<4x9x128xbf16, #tpu.memory_space<vmem>>, vector<4x9x128xbf16>,
    return
  }
  func.func @transform_0(%arg0: i32) -> (i32, i32, i32) {
    %c0_i32 = arith.constant 0 : i32
    %c0_i32_0 = arith.constant 0 : i32
    %c0_i32_1 = arith.constant 0 : i32
    return %arg0, %c0_i32, %c0_i32_0 : i32, i32, i32
  }
  func.func @transform_1(%arg0: i32) -> (i32, i32, i32) {
    %c0_i32 = arith.constant 0 : i32
    %c0_i32_0 = arith.constant 0 : i32
    %c0_i32_1 = arith.constant 0 : i32
    return %arg0, %c0_i32, %c0_i32_0 : i32, i32, i32
  }
  func.func @transform_2(%arg0: i32) -> (i32, i32, i32) {
    %c0_i32 = arith.constant 0 : i32
    %c0_i32_0 = arith.constant 0 : i32
    %c0_i32_1 = arith.constant 0 : i32
    return %arg0, %c0_i32, %c0_i32_0 : i32, i32, i32
  }
}

module attributes {stable_mosaic.version = 11 : i64} {
  func.func @kernel(%arg0: i32, %arg1: i32, %arg2: i32, %arg3: memref<1x16x16x4xf32, #tpu.memory_space<vmem>>, %arg4: memref<1x1x16x4xf32, #tpu.memory_space<vmem>>, %arg5: memref<1x1x16x4xf32, #tpu.memory_space<vmem>>, %arg6: memref<36x128xbf16, #tpu.memory_space<vmem>>, %arg7: memref<1x16x16x128xf32, #tpu.memory_space<vmem>>, %arg8: memref<18x18x4xbf16, #tpu.memory_space<vmem>>, %arg9: memref<256x36xbf16, #tpu.memory_space<vmem>>) attributes {dimension_semantics = [#tpu.dimension_semantics<parallel>, #tpu.dimension_semantics<parallel>, #tpu.dimension_semantics<parallel>], iteration_bounds = array<i64: 1, 2, 1>, scalar_prefetch = 0 : i64, scratch_operands = 2 : i64, tpu.core_type = #tpu.core_type<tc>, window_params = [{transform_indices = @transform_0, window_bounds = array<i64: 1, 16, 16, 4>}, {transform_indices = @transform_1, window_bounds = array<i64: 1, 1, 16, 4>}, {transform_indices = @transform_2, window_bounds = array<i64: 1, 1, 16, 4>}, {transform_indices = @transform_3, window_bounds = array<i64: 36, 128>}, {transform_indices = @transform_4, window_bounds = array<i64: 1, 16, 16, 128>}]} {
    %cst = arith.constant 0.000000e+00 : bf16
    %0 = vector.broadcast %cst : bf16 to vector<18x1x4xbf16>
    %c0 = arith.constant 0 : index
    %c0_0 = arith.constant 0 : index
    %c0_1 = arith.constant 0 : index
    %1 = vector.load %arg8[%c0, %c0_0, %c0_1] : memref<18x18x4xbf16, #tpu.memory_space<vmem>>, vector<18x1x4xbf16>
    tpu.vector_store %arg8[%c0, %c0_0, %c0_1], %0 {strides = array<i32>} : memref<18x18x4xbf16, #tpu.memory_space<vmem>>, vector<18x1x4xbf16>,
    %cst_2 = arith.constant 0.000000e+00 : bf16
    %2 = vector.broadcast %cst_2 : bf16 to vector<18x1x4xbf16>
    %c0_3 = arith.constant 0 : index
    %c17 = arith.constant 17 : index
    %c0_4 = arith.constant 0 : index
    %3 = vector.load %arg8[%c0_3, %c17, %c0_4] : memref<18x18x4xbf16, #tpu.memory_space<vmem>>, vector<18x1x4xbf16>
    tpu.vector_store %arg8[%c0_3, %c17, %c0_4], %2 {strides = array<i32>} : memref<18x18x4xbf16, #tpu.memory_space<vmem>>, vector<18x1x4xbf16>,
    %c0_5 = arith.constant 0 : index
    %c0_6 = arith.constant 0 : index
    %c0_7 = arith.constant 0 : index
    %c0_8 = arith.constant 0 : index
    %4 = vector.load %arg3[%c0_5, %c0_6, %c0_7, %c0_8] : memref<1x16x16x4xf32, #tpu.memory_space<vmem>>, vector<1x16x16x4xf32>
    %5 = vector.shape_cast %4 : vector<1x16x16x4xf32> to vector<16x16x4xf32>
    %6 = arith.truncf %5 : vector<16x16x4xf32> to vector<16x16x4xbf16>
    %c1 = arith.constant 1 : index
    %c1_9 = arith.constant 1 : index
    %c0_10 = arith.constant 0 : index
    %7 = vector.load %arg8[%c1, %c1_9, %c0_10] : memref<18x18x4xbf16, #tpu.memory_space<vmem>>, vector<16x16x4xbf16>
    tpu.vector_store %arg8[%c1, %c1_9, %c0_10], %6 {strides = array<i32>} : memref<18x18x4xbf16, #tpu.memory_space<vmem>>, vector<16x16x4xbf16>,
    %c0_11 = arith.constant 0 : index
    %c0_12 = arith.constant 0 : index
    %c0_13 = arith.constant 0 : index
    %c0_14 = arith.constant 0 : index
    %8 = vector.load %arg4[%c0_11, %c0_12, %c0_13, %c0_14] : memref<1x1x16x4xf32, #tpu.memory_space<vmem>>, vector<1x1x16x4xf32>
    %9 = vector.shape_cast %8 : vector<1x1x16x4xf32> to vector<16x4xf32>
    %10 = arith.truncf %9 : vector<16x4xf32> to vector<16x4xbf16>
    %c16_i32 = arith.constant 16 : i32
    %11 = arith.muli %arg2, %c16_i32 : i32
    %c0_i32 = arith.constant 0 : i32
    %12 = arith.addi %11, %c0_i32 : i32
    %c1_i32 = arith.constant 1 : i32
    %13 = arith.cmpi sge, %12, %c1_i32 : i32
    %cst_15 = arith.constant 0.000000e+00 : bf16
    %14 = vector.broadcast %cst_15 : bf16 to vector<16x4xbf16>
    %15 = arith.select %13, %10, %14 : vector<16x4xbf16>
    %c0_16 = arith.constant 0 : index
    %c1_17 = arith.constant 1 : index
    %c0_18 = arith.constant 0 : index
    %16 = vector.load %arg8[%c0_16, %c1_17, %c0_18] : memref<18x18x4xbf16, #tpu.memory_space<vmem>>, vector<1x16x4xbf16>
    %17 = vector.shape_cast %16 : vector<1x16x4xbf16> to vector<16x4xbf16>
    %18 = vector.shape_cast %15 : vector<16x4xbf16> to vector<1x16x4xbf16>
    tpu.vector_store %arg8[%c0_16, %c1_17, %c0_18], %18 {strides = array<i32>} : memref<18x18x4xbf16, #tpu.memory_space<vmem>>, vector<1x16x4xbf16>,
    %c0_19 = arith.constant 0 : index
    %c0_20 = arith.constant 0 : index
    %c0_21 = arith.constant 0 : index
    %c0_22 = arith.constant 0 : index
    %19 = vector.load %arg5[%c0_19, %c0_20, %c0_21, %c0_22] : memref<1x1x16x4xf32, #tpu.memory_space<vmem>>, vector<1x1x16x4xf32>
    %20 = vector.shape_cast %19 : vector<1x1x16x4xf32> to vector<16x4xf32>
    %21 = arith.truncf %20 : vector<16x4xf32> to vector<16x4xbf16>
    %c16_i32_23 = arith.constant 16 : i32
    %22 = arith.muli %arg2, %c16_i32_23 : i32
    %c16_i32_24 = arith.constant 16 : i32
    %23 = arith.addi %22, %c16_i32_24 : i32
    %c0_i32_25 = arith.constant 0 : i32
    %24 = arith.addi %23, %c0_i32_25 : i32
    %c16_i32_26 = arith.constant 16 : i32
    %25 = arith.cmpi slt, %24, %c16_i32_26 : i32
    %cst_27 = arith.constant 0.000000e+00 : bf16
    %26 = vector.broadcast %cst_27 : bf16 to vector<16x4xbf16>
    %27 = arith.select %25, %21, %26 : vector<16x4xbf16>
    %c17_28 = arith.constant 17 : index
    %c1_29 = arith.constant 1 : index
    %c0_30 = arith.constant 0 : index
    %28 = vector.load %arg8[%c17_28, %c1_29, %c0_30] : memref<18x18x4xbf16, #tpu.memory_space<vmem>>, vector<1x16x4xbf16>
    %29 = vector.shape_cast %28 : vector<1x16x4xbf16> to vector<16x4xbf16>
    %30 = vector.shape_cast %27 : vector<16x4xbf16> to vector<1x16x4xbf16>
    tpu.vector_store %arg8[%c17_28, %c1_29, %c0_30], %30 {strides = array<i32>} : memref<18x18x4xbf16, #tpu.memory_space<vmem>>, vector<1x16x4xbf16>,
    %c0_31 = arith.constant 0 : index
    %c0_32 = arith.constant 0 : index
    %c0_33 = arith.constant 0 : index
    %31 = vector.load %arg8[%c0_31, %c0_32, %c0_33] : memref<18x18x4xbf16, #tpu.memory_space<vmem>>, vector<16x16x4xbf16>
    %32 = vector.shape_cast %31 : vector<16x16x4xbf16> to vector<256x4xbf16>
    %c0_34 = arith.constant 0 : index
    %c0_35 = arith.constant 0 : index
    %33 = vector.load %arg9[%c0_34, %c0_35] : memref<256x36xbf16, #tpu.memory_space<vmem>>, vector<256x4xbf16>
    tpu.vector_store %arg9[%c0_34, %c0_35], %32 {strides = array<i32>} : memref<256x36xbf16, #tpu.memory_space<vmem>>, vector<256x4xbf16>,
    %c0_36 = arith.constant 0 : index
    %c1_37 = arith.constant 1 : index
    %c0_38 = arith.constant 0 : index
    %34 = vector.load %arg8[%c0_36, %c1_37, %c0_38] : memref<18x18x4xbf16, #tpu.memory_space<vmem>>, vector<16x16x4xbf16>
    %35 = vector.shape_cast %34 : vector<16x16x4xbf16> to vector<256x4xbf16>
    %c0_39 = arith.constant 0 : index
    %c4 = arith.constant 4 : index
    %36 = vector.load %arg9[%c0_39, %c4] : memref<256x36xbf16, #tpu.memory_space<vmem>>, vector<256x4xbf16>
    tpu.vector_store %arg9[%c0_39, %c4], %35 {strides = array<i32>} : memref<256x36xbf16, #tpu.memory_space<vmem>>, vector<256x4xbf16>,
    %c0_40 = arith.constant 0 : index
    %c2 = arith.constant 2 : index
    %c0_41 = arith.constant 0 : index
    %37 = vector.load %arg8[%c0_40, %c2, %c0_41] : memref<18x18x4xbf16, #tpu.memory_space<vmem>>, vector<16x16x4xbf16>
    %38 = vector.shape_cast %37 : vector<16x16x4xbf16> to vector<256x4xbf16>
    %c0_42 = arith.constant 0 : index
    %c8 = arith.constant 8 : index
    %39 = vector.load %arg9[%c0_42, %c8] : memref<256x36xbf16, #tpu.memory_space<vmem>>, vector<256x4xbf16>
    tpu.vector_store %arg9[%c0_42, %c8], %38 {strides = array<i32>} : memref<256x36xbf16, #tpu.memory_space<vmem>>, vector<256x4xbf16>,
    %c1_43 = arith.constant 1 : index
    %c0_44 = arith.constant 0 : index
    %c0_45 = arith.constant 0 : index
    %40 = vector.load %arg8[%c1_43, %c0_44, %c0_45] : memref<18x18x4xbf16, #tpu.memory_space<vmem>>, vector<16x16x4xbf16>
    %41 = vector.shape_cast %40 : vector<16x16x4xbf16> to vector<256x4xbf16>
    %c0_46 = arith.constant 0 : index
    %c12 = arith.constant 12 : index
    %42 = vector.load %arg9[%c0_46, %c12] : memref<256x36xbf16, #tpu.memory_space<vmem>>, vector<256x4xbf16>
    tpu.vector_store %arg9[%c0_46, %c12], %41 {strides = array<i32>} : memref<256x36xbf16, #tpu.memory_space<vmem>>, vector<256x4xbf16>,
    %c1_47 = arith.constant 1 : index
    %c1_48 = arith.constant 1 : index
    %c0_49 = arith.constant 0 : index
    %43 = vector.load %arg8[%c1_47, %c1_48, %c0_49] : memref<18x18x4xbf16, #tpu.memory_space<vmem>>, vector<16x16x4xbf16>
    %44 = vector.shape_cast %43 : vector<16x16x4xbf16> to vector<256x4xbf16>
    %c0_50 = arith.constant 0 : index
    %c16 = arith.constant 16 : index
    %45 = vector.load %arg9[%c0_50, %c16] : memref<256x36xbf16, #tpu.memory_space<vmem>>, vector<256x4xbf16>
    tpu.vector_store %arg9[%c0_50, %c16], %44 {strides = array<i32>} : memref<256x36xbf16, #tpu.memory_space<vmem>>, vector<256x4xbf16>,
    %c1_51 = arith.constant 1 : index
    %c2_52 = arith.constant 2 : index
    %c0_53 = arith.constant 0 : index
    %46 = vector.load %arg8[%c1_51, %c2_52, %c0_53] : memref<18x18x4xbf16, #tpu.memory_space<vmem>>, vector<16x16x4xbf16>
    %47 = vector.shape_cast %46 : vector<16x16x4xbf16> to vector<256x4xbf16>
    %c0_54 = arith.constant 0 : index
    %c20 = arith.constant 20 : index
    %48 = vector.load %arg9[%c0_54, %c20] : memref<256x36xbf16, #tpu.memory_space<vmem>>, vector<256x4xbf16>
    tpu.vector_store %arg9[%c0_54, %c20], %47 {strides = array<i32>} : memref<256x36xbf16, #tpu.memory_space<vmem>>, vector<256x4xbf16>,
    %c2_55 = arith.constant 2 : index
    %c0_56 = arith.constant 0 : index
    %c0_57 = arith.constant 0 : index
    %49 = vector.load %arg8[%c2_55, %c0_56, %c0_57] : memref<18x18x4xbf16, #tpu.memory_space<vmem>>, vector<16x16x4xbf16>
    %50 = vector.shape_cast %49 : vector<16x16x4xbf16> to vector<256x4xbf16>
    %c0_58 = arith.constant 0 : index
    %c24 = arith.constant 24 : index
    %51 = vector.load %arg9[%c0_58, %c24] : memref<256x36xbf16, #tpu.memory_space<vmem>>, vector<256x4xbf16>
    tpu.vector_store %arg9[%c0_58, %c24], %50 {strides = array<i32>} : memref<256x36xbf16, #tpu.memory_space<vmem>>, vector<256x4xbf16>,
    %c2_59 = arith.constant 2 : index
    %c1_60 = arith.constant 1 : index
    %c0_61 = arith.constant 0 : index
    %52 = vector.load %arg8[%c2_59, %c1_60, %c0_61] : memref<18x18x4xbf16, #tpu.memory_space<vmem>>, vector<16x16x4xbf16>
    %53 = vector.shape_cast %52 : vector<16x16x4xbf16> to vector<256x4xbf16>
    %c0_62 = arith.constant 0 : index
    %c28 = arith.constant 28 : index
    %54 = vector.load %arg9[%c0_62, %c28] : memref<256x36xbf16, #tpu.memory_space<vmem>>, vector<256x4xbf16>
    tpu.vector_store %arg9[%c0_62, %c28], %53 {strides = array<i32>} : memref<256x36xbf16, #tpu.memory_space<vmem>>, vector<256x4xbf16>,
    %c2_63 = arith.constant 2 : index
    %c2_64 = arith.constant 2 : index
    %c0_65 = arith.constant 0 : index
    %55 = vector.load %arg8[%c2_63, %c2_64, %c0_65] : memref<18x18x4xbf16, #tpu.memory_space<vmem>>, vector<16x16x4xbf16>
    %56 = vector.shape_cast %55 : vector<16x16x4xbf16> to vector<256x4xbf16>
    %c0_66 = arith.constant 0 : index
    %c32 = arith.constant 32 : index
    %57 = vector.load %arg9[%c0_66, %c32] : memref<256x36xbf16, #tpu.memory_space<vmem>>, vector<256x4xbf16>
    tpu.vector_store %arg9[%c0_66, %c32], %56 {strides = array<i32>} : memref<256x36xbf16, #tpu.memory_space<vmem>>, vector<256x4xbf16>,
    %c0_67 = arith.constant 0 : index
    %c0_68 = arith.constant 0 : index
    %58 = vector.load %arg9[%c0_67, %c0_68] : memref<256x36xbf16, #tpu.memory_space<vmem>>, vector<256x36xbf16>
    %c0_69 = arith.constant 0 : index
    %c0_70 = arith.constant 0 : index
    %59 = vector.load %arg6[%c0_69, %c0_70] : memref<36x128xbf16, #tpu.memory_space<vmem>>, vector<36x128xbf16>
    %cst_71 = arith.constant dense<0.000000e+00> : vector<256x128xf32>
    %60 = tpu.matmul %58, %59, %cst_71 {dimension_numbers = #tpu.dot_dimension_numbers<[1], [0], [0], [1], [0, 0, 1, 1], [], []>} : vector<256x36xbf16>, vector<36x128xbf16>, vector<256x128xf32> -> vector<256x128xf32>
    %61 = vector.shape_cast %60 : vector<256x128xf32> to vector<16x16x128xf32>
    %c0_72 = arith.constant 0 : index
    %c0_73 = arith.constant 0 : index
    %c0_74 = arith.constant 0 : index
    %c0_75 = arith.constant 0 : index
    %62 = vector.load %arg7[%c0_72, %c0_73, %c0_74, %c0_75] : memref<1x16x16x128xf32, #tpu.memory_space<vmem>>, vector<1x16x16x128xf32>
    %63 = vector.shape_cast %62 : vector<1x16x16x128xf32> to vector<16x16x128xf32>
    %64 = vector.shape_cast %61 : vector<16x16x128xf32> to vector<1x16x16x128xf32>
    tpu.vector_store %arg7[%c0_72, %c0_73, %c0_74, %c0_75], %64 {strides = array<i32>} : memref<1x16x16x128xf32, #tpu.memory_space<vmem>>, vector<1x16x16x128xf32>,
    return
  }
  func.func @transform_0(%arg0: i32, %arg1: i32, %arg2: i32) -> (i32, i32, i32, i32) {
    %c0_i32 = arith.constant 0 : i32
    %c0_i32_0 = arith.constant 0 : i32
    %c0_i32_1 = arith.constant 0 : i32
    return %arg1, %arg2, %c0_i32, %c0_i32_0 : i32, i32, i32, i32
  }
  func.func @transform_1(%arg0: i32, %arg1: i32, %arg2: i32) -> (i32, i32, i32, i32) {
    %c16_i32 = arith.constant 16 : i32
    %0 = arith.muli %arg2, %c16_i32 : i32
    %c1_i32 = arith.constant 1 : i32
    %1 = arith.subi %0, %c1_i32 : i32
    %c0_i32 = arith.constant 0 : i32
    %2 = arith.addi %1, %c0_i32 : i32
    %c0_i32_0 = arith.constant 0 : i32
    %3 = arith.maxsi %2, %c0_i32_0 : i32
    %c0_i32_1 = arith.constant 0 : i32
    %c0_i32_2 = arith.constant 0 : i32
    %c0_i32_3 = arith.constant 0 : i32
    return %arg1, %3, %c0_i32_1, %c0_i32_2 : i32, i32, i32, i32
  }
  func.func @transform_2(%arg0: i32, %arg1: i32, %arg2: i32) -> (i32, i32, i32, i32) {
    %c16_i32 = arith.constant 16 : i32
    %0 = arith.muli %arg2, %c16_i32 : i32
    %c16_i32_0 = arith.constant 16 : i32
    %1 = arith.addi %0, %c16_i32_0 : i32
    %c0_i32 = arith.constant 0 : i32
    %2 = arith.addi %1, %c0_i32 : i32
    %c15_i32 = arith.constant 15 : i32
    %3 = arith.minsi %2, %c15_i32 : i32
    %c0_i32_1 = arith.constant 0 : i32
    %c0_i32_2 = arith.constant 0 : i32
    %c0_i32_3 = arith.constant 0 : i32
    return %arg1, %3, %c0_i32_1, %c0_i32_2 : i32, i32, i32, i32
  }
  func.func @transform_3(%arg0: i32, %arg1: i32, %arg2: i32) -> (i32, i32) {
    %c0_i32 = arith.constant 0 : i32
    %c0_i32_0 = arith.constant 0 : i32
    return %c0_i32, %arg0 : i32, i32
  }
  func.func @transform_4(%arg0: i32, %arg1: i32, %arg2: i32) -> (i32, i32, i32, i32) {
    %c0_i32 = arith.constant 0 : i32
    %c0_i32_0 = arith.constant 0 : i32
    return %arg1, %arg2, %c0_i32, %arg0 : i32, i32, i32, i32
  }
}

</mosaic_0001>

<bundles_post_ra>
// kernel: doconv2d_forward.2
= control target key start
LH: loop header
LB: loop body
LE: loop exit
PB: predicated region body
PF: predicated region fallthrough
CT: control target
= control target key end

     0   :  { %vm34_vm0 = vcmask 1040384   ;;  %vm27_vm1 = vcmask 72704   ;;  %vm399_vm2 = vsmask.f32 256  ;;  %s620_s1 = inlined_call_operand.vmem [shape: f32[4,9,128], index: 1, kind: input, shape index: {}]   ;;  %s621_s0 = inlined_call_operand.vmem [shape: f32[4,9,9], index: 0, kind: input, shape index: {}]   ;;  %s622_s2 = inlined_call_operand.vmem [shape: bf16[4,9,128], index: 2, kind: output, shape index: {}]  }
   0x1   :  { %v20_v0 = vld [vmem:[%s620_s1 + $0x8] sm:$0x1]  ;;  %v22_v1 = vld [vmem:[%s620_s1 + $0x18] sm:$0x1]  ;;  %v19_v2 = vld [vmem:[%s620_s1] sm:$0xff] }
   0x2   :  { %464 = vmatprep.subr.msk.mxu0 %vm34_vm0, %v20_v0  ;;  %471 = vmatprep.subr.msk.mxu1 %vm34_vm0, %v22_v1  ;;  %v21_v3 = vld [vmem:[%s620_s1 + $0x10] sm:$0xff]  ;;  %v11_v4 = vld [vmem:[%s621_s0] sm:$0xff]  ;;  %v12_v6 = vld [vmem:[%s621_s0 + $0x8] sm:$0x1] }
   0x3   :  { %465 = vmatpush3.msk.msra.mxu0 %vm34_vm0, %v20_v0  ;;  %472 = vmatpush3.msk.msra.mxu1 %vm34_vm0, %v22_v1  ;;  %v13_v5 = vld [vmem:[%s621_s0 + $0x10] sm:$0xff]  ;;  %v14_v7 = vld [vmem:[%s621_s0 + $0x18] sm:$0x1]  ;;  %v24_v8 = vld [vmem:[%s620_s1 + $0x28] sm:$0x1] }
   0x4   :  { %466 = vmatprep.subr.mxu0 %v19_v2  ;;  %473 = vmatprep.subr.mxu1 %v21_v3  ;;  %v26_v9 = vld [vmem:[%s620_s1 + $0x38] sm:$0x1]  ;;  %v23_v10 = vld [vmem:[%s620_s1 + $0x20] sm:$0xff]  ;;  %v25_v11 = vld [vmem:[%s620_s1 + $0x30] sm:$0xff] }
   0x5   :  { %467 = vmatpush3.msra.mxu0 %v19_v2  ;;  %468 = vmatprep.mubr.msk.f32.mxu0 %vm27_vm1, %v11_v4  ;;  %v15_v12 = vld [vmem:[%s621_s0 + $0x20] sm:$0xff]  ;;  %v17_v13 = vld [vmem:[%s621_s0 + $0x30] sm:$0xff]  ;;  %v16_v14 = vld [vmem:[%s621_s0 + $0x28] sm:$0x1] }
   0x6   :  { %474 = vmatpush3.msra.mxu1 %v21_v3  ;;  %475 = vmatprep.mubr.msk.f32.mxu1 %vm27_vm1, %v13_v5  ;;  %v18_v15 = vld [vmem:[%s621_s0 + $0x38] sm:$0x1]  ;;  %vm572_vm3 = vmand %vm34_vm0, %vm399_vm2  ;;  %v401_v18 = vld [vmem:[%s622_s2 + $0x4] sm:$0x1] }
   0x7   :  { %469 = vmatmul.mubr.msk.f32.vlgmr.msra.gmra.mxu0 %vm27_vm1, %v12_v6  ;;  %476 = vmatmul.mubr.msk.f32.vlgmr.msra.gmra.mxu1 %vm27_vm1, %v14_v7  ;;  %v405_v20 = vld [vmem:[%s622_s2 + $0xc] sm:$0x1]  ;;  %v409_v30 = vld [vmem:[%s622_s2 + $0x14] sm:$0x1]  ;;  %v413_v32 = vld [vmem:[%s622_s2 + $0x1c] sm:$0x1] }
   0x8   :  { %478 = vmatprep.subr.msk.mxu0 %vm34_vm0, %v24_v8  ;;  %485 = vmatprep.subr.msk.mxu1 %vm34_vm0, %v26_v9 }
   0x9   :  { %479 = vmatpush3.msk.msra.mxu0 %vm34_vm0, %v24_v8  ;;  %486 = vmatpush3.msk.msra.mxu1 %vm34_vm0, %v26_v9 }
   0xa   :  { %480 = vmatprep.subr.mxu0 %v23_v10  ;;  %487 = vmatprep.subr.mxu1 %v25_v11 }
   0xb   :  { %481 = vmatpush3.msra.mxu0 %v23_v10  ;;  %482 = vmatprep.mubr.msk.f32.mxu0 %vm27_vm1, %v15_v12 }
   0xc   :  { %488 = vmatpush3.msra.mxu1 %v25_v11  ;;  %489 = vmatprep.mubr.msk.f32.mxu1 %vm27_vm1, %v17_v13 }
   0xd   :  { %483 = vmatmul.mubr.msk.f32.vlgmr.msra.gmra.mxu0 %vm27_vm1, %v16_v14  ;;  %490 = vmatmul.mubr.msk.f32.vlgmr.msra.gmra.mxu1 %vm27_vm1, %v18_v15 }
  0xc7   :  { %v470_v16 = vpop.f32.mrf.mxu0  ;;  %v477_v19 = vpop.f32.mrf.mxu1 }
  0xc8   :  { %v441_v21 = vpack.c.bf16 %v470_v16, %v470_v16  ;;  %v443_v22 = vpack.c.bf16 %v477_v19, %v477_v19 }
  0xc9   :  { %v104_v23 = vpop.f32.mrf.mxu0  ;;  %v188_v24 = vpop.f32.mrf.mxu1 }
  0xca   :  { %v402_v25 = vsel %vm572_vm3, %v441_v21, %v401_v18  ;;  %v406_v26 = vsel %vm572_vm3, %v443_v22, %v405_v20  ;;  %v440_v27 = vpack.c.bf16 %v104_v23, %v104_v23  ;;  %v442_v28 = vpack.c.bf16 %v188_v24, %v188_v24 }
  0xcb   :  { %403 = vst [vmem:[%s622_s2 + $0x4] sm:$0x1] %v402_v25  ;;  %407 = vst [vmem:[%s622_s2 + $0xc] sm:$0x1] %v406_v26 }
  0xcc   :  { %397 = vst [vmem:[%s622_s2] sm:$0xf] %v440_v27  ;;  %404 = vst [vmem:[%s622_s2 + $0x8] sm:$0xf] %v442_v28 }
  0xcd   :  { %v484_v29 = vpop.f32.mrf.mxu0  ;;  %v491_v31 = vpop.f32.mrf.mxu1 }
  0xce   :  { %v445_v33 = vpack.c.bf16 %v484_v29, %v484_v29  ;;  %v447_v34 = vpack.c.bf16 %v491_v31, %v491_v31 }
  0xcf   :  { %v272_v35 = vpop.f32.mrf.mxu0  ;;  %v356_v36 = vpop.f32.mrf.mxu1 }
  0xd0   :  { %v410_v37 = vsel %vm572_vm3, %v445_v33, %v409_v30  ;;  %v414_v38 = vsel %vm572_vm3, %v447_v34, %v413_v32  ;;  %v444_v39 = vpack.c.bf16 %v272_v35, %v272_v35  ;;  %v446_v40 = vpack.c.bf16 %v356_v36, %v356_v36 }
  0xd1   :  { %411 = vst [vmem:[%s622_s2 + $0x14] sm:$0x1] %v410_v37  ;;  %415 = vst [vmem:[%s622_s2 + $0x1c] sm:$0x1] %v414_v38 }
  0xd2   :  { %408 = vst [vmem:[%s622_s2 + $0x10] sm:$0xf] %v444_v39  ;;  %412 = vst [vmem:[%s622_s2 + $0x18] sm:$0xf] %v446_v40 }

// kernel: doconv2d_forward.3
= control target key start
LH: loop header
LB: loop body
LE: loop exit
PB: predicated region body
PF: predicated region fallthrough
CT: control target
= control target key end

     0   :  { %s5203_s15 = smov 0   ;;  %s5205_s16 = smov 0   ;;  %s6639_s0 = inlined_call_operand.vmem [shape: f32[2,16,16,4], index: 0, kind: input, shape index: {}, may-alias: {0,1,2}]   ;;  %s6640_s1 = inlined_call_operand.vmem [shape: f32[2,16,16,4], index: 1, kind: input, shape index: {}, may-alias: {0,1,2}]   ;;  %s6641_s2 = inlined_call_operand.vmem [shape: f32[2,16,16,4], index: 2, kind: input, shape index: {}, may-alias: {0,1,2}]   ;;  %s6642_s3 = inlined_call_operand.vmem [shape: bf16[36,128], index: 3, kind: input, shape index: {}]   ;;  %s6643_s4 = inlined_call_operand.vmem [shape: f32[2,16,16,128], index: 4, kind: output, shape index: {}]  }
   0x1   :  { %s5207_s17 = smov 0  }
   0x2 LB: > { %s29_s1 = sadd.s32 1, %s5163_s16  ;;  %p4861_p0 = scmp.ge.s32.totalorder %s5167_s17, 1  ;;  %s5167_s17 = sphi %s5207_s17, %s14_s17   ;;  %s5163_s16 = sphi %s5205_s16, %s6657_s16   ;;  %s5159_s15 = sphi %s5203_s15, %s6656_s15  }
   0x3   : > { %p31_p1 = scmp.ge.s32.totalorder %s29_s1, 2  ;;  %p266_p2 = scmp.lt.s32.totalorder %s5167_s17, 3 }
   0x5   : > { %s6659_s1 = smov (%p31_p1, %s29_s1), 0  ;;  %p267_p3 = pnand %p4861_p0, %p266_p2 }
   0x6   : > { %p336_p4 = scmp.lt.s32.totalorder (!%p267_p3), %s5159_s15, 1  ;;  %s5170_s21 = smov (!%p267_p3), 4  }
   0x7   : > { %270 = sbr.rel (%p267_p3) target bundleno = 943 (0x3af), region = 36  ;;  %s5171_s22 = smov (!%p267_p3), 8  }
   0x8   : > { %s5172_s23 = smov (!%p267_p3), 12   ;;  %s5173_s24 = smov (!%p267_p3), 16  }
   0x9   : > { %s5174_s25 = smov (!%p267_p3), 20   ;;  %s5175_s26 = smov (!%p267_p3), 24  }
   0xa   : > { %s5176_s27 = smov (!%p267_p3), 28   ;;  %s5177_s6 = smov (!%p267_p3), 32  }
   0xc   : > { %vm399_vm0 = vcmask 24576   ;;  %vm400_vm1 = vsmask.f32 256  ;;  %vm456_vm2 = vsmask.f32 7938  ;;  %v5169_v3 = vmov 0  }
   0xd   : > { %vm5222_vm3 = vmand %vm399_vm0, %vm400_vm1  ;;  %v458_v1 = vld [vmem:[#allocation2 + $0x8] sm:$0x1]  ;;  %vm640_vm5 = vsmask.f32 4368  ;;  %v4902_v4 = vcombine.low %v5169_v3, %v5169_v3  ;;  %v4903_v5 = vcombine.high %v5169_v3, %v5169_v3  ;;  %v405_v7 = vld [vmem:[#allocation2 + $0xc] sm:$0x1] }
   0xe   : > { %vm5227_vm4 = vmand %vm399_vm0, %vm456_vm2  ;;  %v402_v8 = vld [vmem:[#allocation2] sm:$0x1]  ;;  %s6661_s15 = smov (!%p336_p4, %s5159_s15), 1  ;;  %v406_v13 = vsel %vm5222_vm3, 0, %v405_v7  ;;  %v461_v15 = vld [vmem:[#allocation2 + $0x14] sm:$0x1] }
   0xf   : > { %v459_v6 = vsel %vm5227_vm4, 0, %v458_v1  ;;  %v1093_v9 = vshrl.u32 %v4902_v4, 16  ;;  %v1096_v10 = vshll.u32 %v4902_v4, 16  ;;  %v1101_v11 = vshrl.u32 %v4903_v5, 16  ;;  %v408_v16 = vld [vmem:[#allocation2 + $0x18] sm:$0x1]  ;;  %vm5248_vm6 = vmor %vm400_vm1, %vm640_vm5 }
  0x10   : > { %460 = vst [vmem:[#allocation2 + $0x8] sm:$0x1] %v459_v6  ;;  %v1104_v12 = vshll.u32 %v4903_v5, 16  ;;  %v403_v14 = vsel %vm5222_vm3, 0, %v402_v8  ;;  %s4991_s2 = sshll.u32 %s6661_s15, 8  ;;  %v462_v19 = vsel %vm5227_vm4, 0, %v461_v15 }
  0x11   : > { %v1095_v17 = vrot.slane %v1093_v9, 7  ;;  %v5239_v18 = vrot.slane %v1101_v11, 7  ;;  %407 = vst [vmem:[#allocation2 + $0xc] sm:$0x1] %v406_v13  ;;  %404 = vst [vmem:[#allocation2] sm:$0x1] %v403_v14  ;;  %s5257_s20 = scalar_lea.vmem %s6639_s0, %s4991_s2  ;;  %s6577_s11 = scalar_lea.vmem %s6643_s4, %s4991_s2 }
  0x12   : > { %v409_v20 = vsel %vm5222_vm3, 0, %v408_v16  ;;  %vm963_vm7 = vcmask 27648   ;;  %463 = vst [vmem:[#allocation2 + $0x14] sm:$0x1] %v462_v19  ;;  %v464_v22 = vld [vmem:[#allocation2 + $0x20] sm:$0x1] }
  0x13   : > { %410 = vst [vmem:[#allocation2 + $0x18] sm:$0x1] %v409_v20  ;;  %v411_v23 = vld [vmem:[#allocation2 + $0x24] sm:$0x1]  ;;  %v5259_v24 = vor.u32 %v1096_v10, %v1095_v17  ;;  %v1099_v25 = vrot.slane %v1095_v17, 4  ;;  %v1106_v26 = vor.u32 %v1104_v12, %v5239_v18  ;;  %v1108_v27 = vrot.slane %v5239_v18, 4  ;;  %vm5286_vm8 = vmand %vm963_vm7, %vm456_vm2 }
  0x14   : > { %v512_v28 = vld [vmem:[%s5257_s20] sm:$0xff]  ;;  %v513_v29 = vld [vmem:[%s5257_s20 + $0x8] sm:$0xff]  ;;  %v514_v30 = vld [vmem:[%s5257_s20 + $0x10] sm:$0xff]  ;;  %v465_v35 = vsel %vm5227_vm4, 0, %v464_v22  ;;  %v412_v39 = vsel %vm5222_vm3, 0, %v411_v23  ;;  %vm1885_vm12 = vcmask 1042432  }
  0x15   : > { %v4996_v31 = vpack.c.bf16 %v512_v28, %v512_v28  ;;  %v4997_v32 = vpack.c.bf16 %v513_v29, %v513_v29  ;;  %v515_v33 = vld [vmem:[%s5257_s20 + $0x18] sm:$0xff]  ;;  %v4998_v34 = vpack.c.bf16 %v514_v30, %v514_v30  ;;  %v516_v36 = vld [vmem:[%s5257_s20 + $0x20] sm:$0xff]  ;;  %v1107_v37 = vsel %vm5248_vm6, %v1099_v25, %v1106_v26  ;;  %466 = vst [vmem:[#allocation2 + $0x20] sm:$0x1] %v465_v35  ;;  %v517_v40 = vld [vmem:[%s5257_s20 + $0x28] sm:$0xff] }
  0x16   : > { %v4999_v38 = vpack.c.bf16 %v515_v33, %v515_v33  ;;  %v5275_v41 = vpack.c.bf16 %v516_v36, %v516_v36  ;;  %v518_v42 = vld [vmem:[%s5257_s20 + $0x30] sm:$0xff]  ;;  %1115 = vst.msk [vmem:[#allocation2 + $0x4] sm:$0xf] %vm963_vm7, %v1107_v37  ;;  %1157 = vst.msk [vmem:[#allocation2 + $0xd0] sm:$0xf] %vm963_vm7, %v1107_v37  ;;  %v5290_v57 = vpack.c.bf16 %v517_v40, %v517_v40  ;;  %v519_v19 = vld [vmem:[%s5257_s20 + $0x38] sm:$0xff] }
  0x17   : > { %v1116_v43 = vld [vmem:[#allocation2 + $0x8] sm:$0x1]  ;;  %v643_v44 = vshrl.u32 %v4996_v31, 16  ;;  %v646_v45 = vshll.u32 %v4996_v31, 16  ;;  %v651_v46 = vshrl.u32 %v4997_v32, 16  ;;  %v654_v47 = vshll.u32 %v4997_v32, 16 }
  0x18   : > { %413 = vst [vmem:[#allocation2 + $0x24] sm:$0x1] %v412_v39  ;;  %v1117_v48 = vsel %vm5222_vm3, %v1108_v27, %v1116_v43  ;;  %v660_v49 = vshrl.u32 %v4998_v34, 16  ;;  %v663_v50 = vshll.u32 %v4998_v34, 16  ;;  %v668_v51 = vshrl.u32 %v4999_v38, 16  ;;  %v520_v37 = vld [vmem:[%s5257_s20 + $0x40] sm:$0xff] }
  0x19   : > { %1118 = vst [vmem:[#allocation2 + $0x8] sm:$0x1] %v1117_v48  ;;  %vm1273_vm9 = vsmask.f32 3328  ;;  %vm1274_vm10 = vsmask.f32 7440  ;;  %v5292_v58 = vpack.c.bf16 %v518_v42, %v518_v42  ;;  %v5320_v36 = vpack.c.bf16 %v519_v19, %v519_v19 }
  0x1a   : > { %v645_v53 = vrot.slane %v643_v44, 7  ;;  %v653_v54 = vrot.slane %v651_v46, 7  ;;  %v965_v55 = vld [vmem:[#allocation2 + $0xc] sm:$0xf]  ;;  %v1112_v56 = vld [vmem:[#allocation2] sm:$0xf]  ;;  %vm5333_vm11 = vmor %vm1273_vm9, %vm1274_vm10 }
  0x1b   : > { %v1113_v59 = vsel %vm5286_vm8, %v5259_v24, %v1112_v56  ;;  %v970_v60 = vld [vmem:[#allocation2 + $0x14] sm:$0x1]  ;;  %v662_v61 = vrot.slane %v660_v49, 7  ;;  %v670_v62 = vrot.slane %v668_v51, 7  ;;  %v671_v63 = vshll.u32 %v4999_v38, 16  ;;  %v521_v43 = vld [vmem:[%s5257_s20 + $0x48] sm:$0xff] }
  0x1c   : > { %v648_v1 = vor.u32 %v646_v45, %v645_v53  ;;  %v649_v3 = vrot.slane %v645_v53, 4  ;;  %v656_v4 = vor.u32 %v654_v47, %v653_v54  ;;  %1114 = vst [vmem:[#allocation2] sm:$0xf] %v1113_v59  ;;  %v658_v5 = vrot.slane %v653_v54, 4  ;;  %v973_v6 = vld [vmem:[#allocation2 + $0x18] sm:$0xf] }
  0x1d   : > { %v665_v7 = vor.u32 %v663_v50, %v662_v61  ;;  %v666_v8 = vrot.slane %v662_v61, 4  ;;  %v673_v9 = vor.u32 %v671_v63, %v670_v62  ;;  %v675_v10 = vrot.slane %v670_v62, 4  ;;  %v467_v11 = vld [vmem:[#allocation2 + $0x2c] sm:$0x1]  ;;  %v977_v15 = vld [vmem:[#allocation2 + $0x20] sm:$0x1] }
  0x1e   : > { %v657_v12 = vsel %vm5248_vm6, %v649_v3, %v656_v4  ;;  %v966_v13 = vsel %vm5286_vm8, %v648_v1, %v965_v55  ;;  %v971_v14 = vsel %vm5222_vm3, %v658_v5, %v970_v60  ;;  %v677_v16 = vshrl.u32 %v5275_v41, 16  ;;  %v414_v17 = vld [vmem:[#allocation2 + $0x30] sm:$0x1]  ;;  %v1226_v20 = vld [vmem:[#allocation2 + $0x4] sm:$0xf] }
  0x1f   : > { %967 = vst [vmem:[#allocation2 + $0xc] sm:$0xf] %v966_v13  ;;  %969 = vst.msk [vmem:[#allocation2 + $0x10] sm:$0xf] %vm963_vm7, %v657_v12  ;;  %v674_v22 = vsel %vm5248_vm6, %v666_v8, %v673_v9  ;;  %v974_v23 = vsel %vm5286_vm8, %v665_v7, %v973_v6  ;;  %v978_v25 = vsel %vm5222_vm3, %v675_v10, %v977_v15  ;;  %v680_v26 = vshll.u32 %v5275_v41, 16 }
  0x20   : > { %972 = vst [vmem:[#allocation2 + $0x14] sm:$0x1] %v971_v14  ;;  %v1286_v28 = vshll.u32 %v1226_v20, 16  ;;  %v1290_v29 = vshrl.u32 %v1226_v20, 16  ;;  %975 = vst [vmem:[#allocation2 + $0x18] sm:$0xf] %v974_v23  ;;  %v5343_v1 = vpack.c.bf16 %v520_v37, %v520_v37  ;;  %v5345_v3 = vpack.c.bf16 %v521_v43, %v521_v43 }
  0x21   : > { %976 = vst.msk [vmem:[#allocation2 + $0x1c] sm:$0xf] %vm963_vm7, %v674_v22  ;;  %979 = vst [vmem:[#allocation2 + $0x20] sm:$0x1] %v978_v25  ;;  %v679_v30 = vrot.slane %v677_v16, 7  ;;  %v685_v31 = vshrl.u32 %v5290_v57, 16 }
  0x22   : > { %v1227_v32 = vld [vmem:[#allocation2 + $0x8] sm:$0x1]  ;;  %v688_v33 = vshll.u32 %v5290_v57, 16  ;;  %v468_v34 = vsel %vm5227_vm4, 0, %v467_v11  ;;  %v415_v35 = vsel %vm5222_vm3, 0, %v414_v17  ;;  %v5323_v38 = vrot.slane %v1286_v28, 5 }
  0x23   : > { %v1292_v39 = vrot.slane %v1290_v29, 4  ;;  %v1296_v40 = vshll.u32 %v1227_v32, 16  ;;  %v682_v41 = vor.u32 %v680_v26, %v679_v30  ;;  %v980_v42 = vld [vmem:[#allocation2 + $0x24] sm:$0xf]  ;;  %469 = vst [vmem:[#allocation2 + $0x2c] sm:$0x1] %v468_v34 }
  0x24   : > { %416 = vst [vmem:[#allocation2 + $0x30] sm:$0x1] %v415_v35  ;;  %v1225_v44 = vld [vmem:[#allocation2] sm:$0xf]  ;;  %v683_v45 = vrot.slane %v679_v30, 4  ;;  %v5326_v46 = vrot.slane %v685_v31, 7 }
  0x25   : > { %v694_v47 = vshrl.u32 %v5292_v58, 16  ;;  %v697_v48 = vshll.u32 %v5292_v58, 16  ;;  %v1293_v49 = vor.u32 %v1292_v39, %v5323_v38  ;;  %v1298_v50 = vrot.slane %v1296_v40, 5 }
  0x26   : > { %v1277_v51 = vshrl.u32 %v1225_v44, 16  ;;  %v1280_v53 = vshll.u32 %v1225_v44, 16  ;;  %v690_v55 = vor.u32 %v688_v33, %v5326_v46  ;;  %v981_v56 = vsel %vm5286_vm8, %v682_v41, %v980_v42  ;;  %v1228_v61 = vld [vmem:[#allocation2 + $0xc] sm:$0xf]  ;;  %v1229_v62 = vld [vmem:[#allocation2 + $0x10] sm:$0xf] }
  0x27   : > { %v692_v57 = vrot.slane %v5326_v46, 4  ;;  %v5341_v59 = vrot.slane %v694_v47, 7  ;;  %v1294_v60 = vrot.slane %v1293_v49, 4  ;;  %982 = vst [vmem:[#allocation2 + $0x24] sm:$0xf] %v981_v56  ;;  %v1301_v4 = vshrl.u32 %v1228_v61, 16 }
  0x28   : > { %v1279_v63 = vrot.slane %v1277_v51, 4  ;;  %v1304_v5 = vshll.u32 %v1228_v61, 16  ;;  %v1310_v6 = vshll.u32 %v1229_v62, 16  ;;  %v1314_v7 = vshrl.u32 %v1229_v62, 16  ;;  %v1230_v8 = vld [vmem:[#allocation2 + $0x14] sm:$0x1] }
  0x29   : > { %v1299_v9 = vsel %vm5333_vm11, %v1294_v60, %v1298_v50  ;;  %v1282_v10 = vrot.slane %v1280_v53, 5  ;;  %v1320_v11 = vshll.u32 %v1230_v8, 16  ;;  %v1231_v12 = vld [vmem:[#allocation2 + $0x18] sm:$0xf]  ;;  %v1232_v13 = vld [vmem:[#allocation2 + $0x1c] sm:$0xf]  ;;  %v691_v14 = vsel %vm5248_vm6, %v683_v45, %v690_v55 }
  0x2a   : > { %1662 = vrot.lane.b32.xlu0 %v1299_v9, %s5170_s21  ;;  %v1303_v15 = vrot.slane %v1301_v4, 4  ;;  %v1306_v16 = vrot.slane %v1304_v5, 5  ;;  %v1312_v17 = vrot.slane %v1310_v6, 5  ;;  %v1316_v19 = vrot.slane %v1314_v7, 4  ;;  %v1233_v20 = vld [vmem:[#allocation2 + $0x20] sm:$0x1] }
  0x2b   : > { %983 = vst.msk [vmem:[#allocation2 + $0x28] sm:$0xf] %vm963_vm7, %v691_v14  ;;  %v1283_v22 = vor.u32 %v1282_v10, %v1279_v63  ;;  %v1322_v23 = vrot.slane %v1320_v11, 5  ;;  %v1325_v25 = vshrl.u32 %v1231_v12, 16  ;;  %v1328_v26 = vshll.u32 %v1231_v12, 16 }
  0x2c   : > { %v1307_v28 = vor.u32 %v1306_v16, %v1303_v15  ;;  %v1317_v29 = vor.u32 %v1316_v19, %v1312_v17  ;;  %v1334_v30 = vshll.u32 %v1232_v13, 16  ;;  %v1338_v31 = vshrl.u32 %v1232_v13, 16  ;;  %v984_v37 = vld [vmem:[#allocation2 + $0x2c] sm:$0x1]  ;;  %v470_v55 = vld [vmem:[#allocation2 + $0x38] sm:$0x1] }
  0x2d   : > { %v1284_v32 = vrot.slane %v1283_v22, 4  ;;  %v1327_v33 = vrot.slane %v1325_v25, 4  ;;  %v1330_v34 = vrot.slane %v1328_v26, 5  ;;  %v1344_v35 = vshll.u32 %v1233_v20, 16  ;;  %v417_v63 = vld [vmem:[#allocation2 + $0x3c] sm:$0x1] }
  0x2e   : > { %v1308_v39 = vrot.slane %v1307_v28, 4  ;;  %v1318_v40 = vrot.slane %v1317_v29, 4  ;;  %v1336_v41 = vrot.slane %v1334_v30, 5  ;;  %v1340_v42 = vrot.slane %v1338_v31, 4  ;;  %v1234_v43 = vld [vmem:[#allocation2 + $0x24] sm:$0xf] }
  0x2f   : > { %v1289_v44 = vsel %vm5333_vm11, %v1284_v32, %v5323_v38  ;;  %v1331_v45 = vor.u32 %v1330_v34, %v1327_v33  ;;  %v1346_v46 = vrot.slane %v1344_v35, 5  ;;  %v1349_v47 = vshrl.u32 %v1234_v43, 16  ;;  %v987_v8 = vld [vmem:[#allocation2 + $0x30] sm:$0xf]  ;;  %v473_v16 = vld [vmem:[#allocation2 + $0x44] sm:$0x1] }
  0x30   : > { %v1313_v49 = vsel %vm5333_vm11, %v1308_v39, %v1312_v17  ;;  %1660 = vrot.lane.b32.xlu0 %v1289_v44, %s5170_s21  ;;  %v1323_v50 = vsel %vm5333_vm11, %v1318_v40, %v1322_v23  ;;  %v1341_v51 = vor.u32 %v1340_v42, %v1336_v41  ;;  %v1352_v53 = vshll.u32 %v1234_v43, 16  ;;  %v420_v23 = vld [vmem:[#allocation2 + $0x48] sm:$0x1]  ;;  %v522_v25 = vld [vmem:[%s5257_s20 + $0x50] sm:$0xff]  ;;  %v523_v31 = vld [vmem:[%s5257_s20 + $0x58] sm:$0xff] }
  0x31   : > { %1664 = vrot.lane.b32.xlu1 %v1313_v49, %s5170_s21  ;;  %v1332_v56 = vrot.slane %v1331_v45, 4  ;;  %v1351_v61 = vrot.slane %v1349_v47, 4  ;;  %v985_v38 = vsel %vm5222_vm3, %v692_v57, %v984_v37  ;;  %v699_v62 = vor.u32 %v697_v48, %v5341_v59  ;;  %v525_v47 = vld [vmem:[%s5257_s20 + $0x68] sm:$0xff]  ;;  %v526_v49 = vld [vmem:[%s5257_s20 + $0x70] sm:$0xff] }
  0x32   : > { %v1235_v60 = vld [vmem:[#allocation2 + $0x28] sm:$0xf]  ;;  %v1342_v4 = vrot.slane %v1341_v51, 4  ;;  %v1354_v5 = vrot.slane %v1352_v53, 5  ;;  %986 = vst [vmem:[#allocation2 + $0x2c] sm:$0x1] %v985_v38  ;;  %v5006_v40 = vpack.c.bf16 %v522_v25, %v522_v25  ;;  %v5007_v45 = vpack.c.bf16 %v523_v31, %v523_v31 }
  0x33   : > { %v1358_v6 = vshll.u32 %v1235_v60, 16  ;;  %v1362_v7 = vshrl.u32 %v1235_v60, 16  ;;  %v1337_v9 = vsel %vm5333_vm11, %v1332_v56, %v1336_v41  ;;  %v700_v10 = vrot.slane %v5341_v59, 4  ;;  %v476_v41 = vld [vmem:[#allocation2 + $0x50] sm:$0x1] }
  0x34   : > { %v702_v11 = vshrl.u32 %v5320_v36, 16  ;;  %v705_v57 = vshll.u32 %v5320_v36, 16  ;;  %1668 = vrot.lane.b32.xlu0 %v1337_v9, %s5170_s21  ;;  %v1347_v58 = vsel %vm5333_vm11, %v1342_v4, %v1346_v46  ;;  %v1355_v48 = vor.u32 %v1354_v5, %v1351_v61  ;;  %v524_v46 = vld [vmem:[%s5257_s20 + $0x60] sm:$0xff] }
  0x35   : > { %v1360_v12 = vrot.slane %v1358_v6, 5  ;;  %v1364_v13 = vrot.slane %v1362_v7, 4  ;;  %1666 = vrot.lane.b32.xlu1 %v1323_v50, %s5170_s21  ;;  %v988_v59 = vsel %vm5286_vm8, %v699_v62, %v987_v8  ;;  %v471_v15 = vsel %vm5227_vm4, 0, %v470_v55  ;;  %v423_v62 = vld [vmem:[#allocation2 + $0x54] sm:$0x1] }
  0x36   : > { %v5376_v14 = vrot.slane %v702_v11, 7  ;;  %v418_v36 = vsel %vm5222_vm3, 0, %v417_v63  ;;  %v1356_v17 = vrot.slane %v1355_v48, 4  ;;  %989 = vst [vmem:[#allocation2 + $0x30] sm:$0xf] %v988_v59  ;;  %v711_v20 = vshrl.u32 %v5343_v1, 16 }
  0x37   : > { %v1365_v19 = vor.u32 %v1364_v13, %v1360_v12  ;;  %472 = vst [vmem:[#allocation2 + $0x38] sm:$0x1] %v471_v15  ;;  %419 = vst [vmem:[#allocation2 + $0x3c] sm:$0x1] %v418_v36  ;;  %v714_v22 = vshll.u32 %v5343_v1, 16  ;;  %v719_v29 = vshrl.u32 %v5345_v3, 16  ;;  %v5008_v7 = vpack.c.bf16 %v524_v46, %v524_v46 }
  0x38   : > { %v707_v26 = vor.u32 %v705_v57, %v5376_v14  ;;  %v709_v28 = vrot.slane %v5376_v14, 4  ;;  %v722_v30 = vshll.u32 %v5345_v3, 16  ;;  %v1361_v32 = vsel %vm5333_vm11, %v1356_v17, %v1360_v12 }
  0x39   : > { %v1366_v33 = vrot.slane %v1365_v19, 4  ;;  %v713_v34 = vrot.slane %v711_v20, 7  ;;  %v474_v35 = vsel %vm5227_vm4, 0, %v473_v16  ;;  %1670 = vrot.lane.b32.xlu1 %v1347_v58, %s5170_s21  ;;  %1672 = vrot.lane.b32.xlu0 %v1361_v32, %s5170_s21  ;;  %v1236_v1 = vld [vmem:[#allocation2 + $0x2c] sm:$0x1]  ;;  %v721_v37 = vrot.slane %v719_v29, 7 }
  0x3a   : > { %v708_v3 = vsel %vm5248_vm6, %v700_v10, %v707_v26  ;;  %475 = vst [vmem:[#allocation2 + $0x44] sm:$0x1] %v474_v35  ;;  %v421_v39 = vsel %vm5222_vm3, 0, %v420_v23  ;;  %v1368_v42 = vshll.u32 %v1236_v1, 16  ;;  %v728_v53 = vshrl.u32 %v5006_v40, 16 }
  0x3b   : > { %990 = vst.msk [vmem:[#allocation2 + $0x34] sm:$0xf] %vm963_vm7, %v708_v3  ;;  %v716_v43 = vor.u32 %v714_v22, %v713_v34  ;;  %v717_v44 = vrot.slane %v713_v34, 4  ;;  %422 = vst [vmem:[#allocation2 + $0x48] sm:$0x1] %v421_v39  ;;  %v724_v50 = vor.u32 %v722_v30, %v721_v37  ;;  %v726_v51 = vrot.slane %v721_v37, 4 }
  0x3c   : > { %v731_v55 = vshll.u32 %v5006_v40, 16  ;;  %v1370_v56 = vrot.slane %v1368_v42, 5  ;;  %v736_v60 = vshrl.u32 %v5007_v45, 16  ;;  %v739_v61 = vshll.u32 %v5007_v45, 16  ;;  %v479_v1 = vld [vmem:[#allocation2 + $0x5c] sm:$0x1] }
  0x3d   : > { %v477_v38 = vsel %vm5227_vm4, 0, %v476_v41  ;;  %v1237_v63 = vld [vmem:[#allocation2 + $0x30] sm:$0xf]  ;;  %v725_v5 = vsel %vm5248_vm6, %v717_v44, %v724_v50  ;;  %v5009_v8 = vpack.c.bf16 %v525_v47, %v525_v47  ;;  %v5410_v9 = vpack.c.bf16 %v526_v49, %v526_v49  ;;  %v527_v3 = vld [vmem:[%s5257_s20 + $0x78] sm:$0xff] }
  0x3e   : > { %v991_v4 = vld [vmem:[#allocation2 + $0x38] sm:$0x1]  ;;  %v994_v6 = vld [vmem:[#allocation2 + $0x3c] sm:$0xf]  ;;  %478 = vst [vmem:[#allocation2 + $0x50] sm:$0x1] %v477_v38  ;;  %v1371_v10 = vsel %vm5333_vm11, %v1366_v33, %v1370_v56 }
  0x3f   : > { %v1373_v11 = vshrl.u32 %v1237_v63, 16  ;;  %v1376_v57 = vshll.u32 %v1237_v63, 16  ;;  %v992_v58 = vsel %vm5222_vm3, %v709_v28, %v991_v4  ;;  %997 = vst.msk [vmem:[#allocation2 + $0x40] sm:$0xf] %vm963_vm7, %v725_v5  ;;  %1674 = vrot.lane.b32.xlu1 %v1371_v10, %s5170_s21  ;;  %v995_v48 = vsel %vm5286_vm8, %v716_v43, %v994_v6 }
  0x40   : > { %993 = vst [vmem:[#allocation2 + $0x38] sm:$0x1] %v992_v58  ;;  %v730_v12 = vrot.slane %v728_v53, 7  ;;  %v738_v13 = vrot.slane %v736_v60, 7  ;;  %v424_v14 = vsel %vm5222_vm3, 0, %v423_v62  ;;  %v745_v16 = vshrl.u32 %v5008_v7, 16 }
  0x41   : > { %v1375_v59 = vrot.slane %v1373_v11, 4  ;;  %v1378_v15 = vrot.slane %v1376_v57, 5  ;;  %996 = vst [vmem:[#allocation2 + $0x3c] sm:$0xf] %v995_v48  ;;  %v998_v36 = vld [vmem:[#allocation2 + $0x44] sm:$0x1]  ;;  %v5440_v63 = vpack.c.bf16 %v527_v3, %v527_v3 }
  0x42   : > { %425 = vst [vmem:[#allocation2 + $0x54] sm:$0x1] %v424_v14  ;;  %v748_v17 = vshll.u32 %v5008_v7, 16  ;;  %v1238_v19 = vld [vmem:[#allocation2 + $0x34] sm:$0xf]  ;;  %v999_v20 = vsel %vm5222_vm3, %v726_v51, %v998_v36  ;;  %v733_v22 = vor.u32 %v731_v55, %v730_v12  ;;  %v734_v23 = vrot.slane %v730_v12, 4 }
  0x43   : > { %v741_v25 = vor.u32 %v739_v61, %v738_v13  ;;  %v1001_v26 = vld [vmem:[#allocation2 + $0x48] sm:$0xf]  ;;  %v1379_v28 = vor.u32 %v1378_v15, %v1375_v59  ;;  %v1382_v29 = vshll.u32 %v1238_v19, 16  ;;  %v1386_v30 = vshrl.u32 %v1238_v19, 16  ;;  %1000 = vst [vmem:[#allocation2 + $0x44] sm:$0x1] %v999_v20 }
  0x44   : > { %v743_v31 = vrot.slane %v738_v13, 4  ;;  %v1002_v33 = vsel %vm5286_vm8, %v733_v22, %v1001_v26  ;;  %v747_v34 = vrot.slane %v745_v16, 7  ;;  %v753_v35 = vshrl.u32 %v5009_v8, 16 }
  0x45   : > { %v742_v32 = vsel %vm5248_vm6, %v734_v23, %v741_v25  ;;  %v1380_v37 = vrot.slane %v1379_v28, 4  ;;  %v1384_v39 = vrot.slane %v1382_v29, 5  ;;  %v1388_v40 = vrot.slane %v1386_v30, 4  ;;  %1003 = vst [vmem:[#allocation2 + $0x48] sm:$0xf] %v1002_v33 }
  0x46   : > { %1004 = vst.msk [vmem:[#allocation2 + $0x4c] sm:$0xf] %vm963_vm7, %v742_v32  ;;  %v1005_v41 = vld [vmem:[#allocation2 + $0x50] sm:$0x1]  ;;  %v756_v42 = vshll.u32 %v5009_v8, 16  ;;  %v750_v45 = vor.u32 %v748_v17, %v747_v34  ;;  %v751_v46 = vrot.slane %v747_v34, 4 }
  0x47   : > { %v1241_v43 = vld [vmem:[#allocation2 + $0x40] sm:$0xf]  ;;  %v1006_v44 = vsel %vm5222_vm3, %v743_v31, %v1005_v41  ;;  %v5432_v47 = vrot.slane %v753_v35, 7  ;;  %v1385_v49 = vsel %vm5333_vm11, %v1380_v37, %v1384_v39  ;;  %v1239_v50 = vld [vmem:[#allocation2 + $0x38] sm:$0x1]  ;;  %v1389_v51 = vor.u32 %v1388_v40, %v1384_v39 }
  0x48   : > { %v1406_v53 = vshll.u32 %v1241_v43, 16  ;;  %v1410_v55 = vshrl.u32 %v1241_v43, 16  ;;  %1007 = vst [vmem:[#allocation2 + $0x50] sm:$0x1] %v1006_v44  ;;  %1676 = vrot.lane.b32.xlu0 %v1385_v49, %s5170_s21  ;;  %v1392_v56 = vshll.u32 %v1239_v50, 16  ;;  %v480_v62 = vsel %vm5227_vm4, 0, %v479_v1 }
  0x49   : > { %v1240_v60 = vld [vmem:[#allocation2 + $0x3c] sm:$0xf]  ;;  %v758_v61 = vor.u32 %v756_v42, %v5432_v47  ;;  %v1008_v38 = vld [vmem:[#allocation2 + $0x54] sm:$0xf]  ;;  %v1390_v4 = vrot.slane %v1389_v51, 4  ;;  %v760_v59 = vrot.slane %v5432_v47, 4 }
  0x4a   : > { %v1397_v5 = vshrl.u32 %v1240_v60, 16  ;;  %v1400_v6 = vshll.u32 %v1240_v60, 16  ;;  %v1408_v7 = vrot.slane %v1406_v53, 5  ;;  %481 = vst [vmem:[#allocation2 + $0x5c] sm:$0x1] %v480_v62  ;;  %v1394_v10 = vrot.slane %v1392_v56, 5 }
  0x4b   : > { %v426_v8 = vld [vmem:[#allocation2 + $0x60] sm:$0x1]  ;;  %v1242_v11 = vld [vmem:[#allocation2 + $0x44] sm:$0x1]  ;;  %v1412_v57 = vrot.slane %v1410_v55, 4  ;;  %v759_v58 = vsel %vm5248_vm6, %v751_v46, %v758_v61  ;;  %v1009_v48 = vsel %vm5286_vm8, %v750_v45, %v1008_v38  ;;  %v762_v20 = vshrl.u32 %v5410_v9, 16 }
  0x4c   : > { %v1399_v12 = vrot.slane %v1397_v5, 4  ;;  %v1402_v13 = vrot.slane %v1400_v6, 5  ;;  %v1416_v14 = vshll.u32 %v1242_v11, 16  ;;  %1010 = vst [vmem:[#allocation2 + $0x54] sm:$0xf] %v1009_v48  ;;  %v1395_v15 = vsel %vm5333_vm11, %v1390_v4, %v1394_v10  ;;  %v529_v48 = vld [vmem:[%s5257_s20 + $0x88] sm:$0xff] }
  0x4d   : > { %1011 = vst.msk [vmem:[#allocation2 + $0x58] sm:$0xf] %vm963_vm7, %v759_v58  ;;  %v1413_v36 = vor.u32 %v1412_v57, %v1408_v7  ;;  %v1243_v16 = vld [vmem:[#allocation2 + $0x48] sm:$0xf]  ;;  %v1244_v17 = vld [vmem:[#allocation2 + $0x4c] sm:$0xf]  ;;  %1678 = vrot.lane.b32.xlu1 %v1395_v15, %s5170_s21 }
  0x4e   : > { %v427_v19 = vsel %vm5222_vm3, 0, %v426_v8  ;;  %v1403_v22 = vor.u32 %v1402_v13, %v1399_v12  ;;  %v1418_v23 = vrot.slane %v1416_v14, 5  ;;  %v1421_v25 = vshrl.u32 %v1243_v16, 16  ;;  %v482_v53 = vld [vmem:[#allocation2 + $0x68] sm:$0x1]  ;;  %v528_v58 = vld [vmem:[%s5257_s20 + $0x80] sm:$0xff] }
  0x4f   : > { %v1424_v26 = vshll.u32 %v1243_v16, 16  ;;  %428 = vst [vmem:[#allocation2 + $0x60] sm:$0x1] %v427_v19  ;;  %v1414_v28 = vrot.slane %v1413_v36, 4  ;;  %v1430_v29 = vshll.u32 %v1244_v17, 16  ;;  %v1434_v30 = vshrl.u32 %v1244_v17, 16 }
  0x50   : > { %v1245_v31 = vld [vmem:[#allocation2 + $0x50] sm:$0x1]  ;;  %v764_v32 = vrot.slane %v762_v20, 7  ;;  %v1404_v33 = vrot.slane %v1403_v22, 4  ;;  %v1423_v34 = vrot.slane %v1421_v25, 4  ;;  %v765_v41 = vshll.u32 %v5410_v9, 16 }
  0x51   : > { %v1426_v35 = vrot.slane %v1424_v26, 5  ;;  %v1440_v1 = vshll.u32 %v1245_v31, 16  ;;  %v1419_v3 = vsel %vm5333_vm11, %v1414_v28, %v1418_v23  ;;  %v1432_v37 = vrot.slane %v1430_v29, 5  ;;  %v1012_v40 = vld [vmem:[#allocation2 + $0x5c] sm:$0x1]  ;;  %v530_v36 = vld [vmem:[%s5257_s20 + $0x90] sm:$0xff] }
  0x52   : > { %v1436_v39 = vrot.slane %v1434_v30, 4  ;;  %v1409_v42 = vsel %vm5333_vm11, %v1404_v33, %v1408_v7  ;;  %1682 = vrot.lane.b32.xlu1 %v1419_v3, %s5170_s21  ;;  %v1013_v45 = vsel %vm5222_vm3, %v760_v59, %v1012_v40  ;;  %v767_v50 = vor.u32 %v765_v41, %v764_v32  ;;  %v429_v38 = vld [vmem:[#allocation2 + $0x6c] sm:$0x1]  ;;  %v485_v59 = vld [vmem:[#allocation2 + $0x74] sm:$0x1]  ;;  %v531_v22 = vld [vmem:[%s5257_s20 + $0x98] sm:$0xff] }
  0x53   : > { %v1427_v43 = vor.u32 %v1426_v35, %v1423_v34  ;;  %v1442_v44 = vrot.slane %v1440_v1, 5  ;;  %1680 = vrot.lane.b32.xlu0 %v1409_v42, %s5170_s21  ;;  %v1246_v47 = vld [vmem:[#allocation2 + $0x54] sm:$0xf]  ;;  %1014 = vst [vmem:[#allocation2 + $0x5c] sm:$0x1] %v1013_v45  ;;  %v768_v51 = vrot.slane %v764_v32, 4  ;;  %v5012_v26 = vpack.c.bf16 %v528_v58, %v528_v58 }
  0x54   : > { %v1437_v46 = vor.u32 %v1436_v39, %v1432_v37  ;;  %v1247_v49 = vld [vmem:[#allocation2 + $0x58] sm:$0xf]  ;;  %v770_v9 = vshrl.u32 %v5440_v63, 16  ;;  %v1445_v56 = vshrl.u32 %v1246_v47, 16  ;;  %v1448_v60 = vshll.u32 %v1246_v47, 16  ;;  %v532_v41 = vld [vmem:[%s5257_s20 + $0xa0] sm:$0xff] }
  0x55   : > { %v1428_v55 = vrot.slane %v1427_v43, 4  ;;  %v1454_v61 = vshll.u32 %v1247_v49, 16  ;;  %v1458_v4 = vshrl.u32 %v1247_v49, 16  ;;  %v773_v6 = vshll.u32 %v5440_v63, 16  ;;  %v432_v15 = vld [vmem:[#allocation2 + $0x78] sm:$0x1] }
  0x56   : > { %v1438_v62 = vrot.slane %v1437_v46, 4  ;;  %v5464_v5 = vrot.slane %v770_v9, 7  ;;  %v1015_v7 = vld [vmem:[#allocation2 + $0x60] sm:$0xf]  ;;  %v1447_v10 = vrot.slane %v1445_v56, 4  ;;  %v1450_v11 = vrot.slane %v1448_v60, 5 }
  0x57   : > { %v1433_v8 = vsel %vm5333_vm11, %v1428_v55, %v1432_v37  ;;  %v1456_v57 = vrot.slane %v1454_v61, 5  ;;  %v1460_v13 = vrot.slane %v1458_v4, 4  ;;  %v1016_v63 = vsel %vm5286_vm8, %v767_v50, %v1015_v7  ;;  %v488_v29 = vld [vmem:[#allocation2 + $0x80] sm:$0x1]  ;;  %v1162_v30 = vld [vmem:[#allocation2 + $0x4] sm:$0xf] }
  0x58   : > { %1684 = vrot.lane.b32.xlu0 %v1433_v8, %s5170_s21  ;;  %v1443_v12 = vsel %vm5333_vm11, %v1438_v62, %v1442_v44  ;;  %v775_v14 = vor.u32 %v773_v6, %v5464_v5  ;;  %v1451_v16 = vor.u32 %v1450_v11, %v1447_v10  ;;  %1017 = vst [vmem:[#allocation2 + $0x60] sm:$0xf] %v1016_v63  ;;  %v483_v17 = vsel %vm5227_vm4, 0, %v482_v53  ;;  %v1163_v31 = vld [vmem:[#allocation2 + $0xc] sm:$0xf] }
  0x59   : > { %1686 = vrot.lane.b32.xlu1 %v1443_v12, %s5170_s21  ;;  %v777_v19 = vrot.slane %v5464_v5, 4  ;;  %v430_v20 = vsel %vm5222_vm3, 0, %v429_v38  ;;  %v1461_v23 = vor.u32 %v1460_v13, %v1456_v57  ;;  %484 = vst [vmem:[#allocation2 + $0x68] sm:$0x1] %v483_v17  ;;  %v5013_v28 = vpack.c.bf16 %v529_v48, %v529_v48  ;;  %1194 = vst.msk [vmem:[#allocation3 + $0x4] sm:$0xf] %vm963_vm7, %v1162_v30 }
  0x5a   : > { %v776_v25 = vsel %vm5248_vm6, %v768_v51, %v775_v14  ;;  %431 = vst [vmem:[#allocation2 + $0x6c] sm:$0x1] %v430_v20  ;;  %v1452_v32 = vrot.slane %v1451_v16, 4  ;;  %v1248_v33 = vld [vmem:[#allocation2 + $0x5c] sm:$0x1]  ;;  %v486_v34 = vsel %vm5227_vm4, 0, %v485_v59  ;;  %v5014_v1 = vpack.c.bf16 %v530_v36, %v530_v36 }
  0x5b   : > { %1018 = vst.msk [vmem:[#allocation2 + $0x64] sm:$0xf] %vm963_vm7, %v776_v25  ;;  %v433_v35 = vsel %vm5222_vm3, 0, %v432_v15  ;;  %1195 = vst.msk [vmem:[#allocation3 + $0x8] sm:$0xf] %vm963_vm7, %v1163_v31  ;;  %v1462_v3 = vrot.slane %v1461_v23, 4  ;;  %v5015_v45 = vpack.c.bf16 %v531_v22, %v531_v22 }
  0x5c   : > { %v1464_v37 = vshll.u32 %v1248_v33, 16  ;;  %v779_v39 = vshrl.u32 %v5012_v26, 16  ;;  %v782_v40 = vshll.u32 %v5012_v26, 16  ;;  %487 = vst [vmem:[#allocation2 + $0x74] sm:$0x1] %v486_v34  ;;  %v1457_v42 = vsel %vm5333_vm11, %v1452_v32, %v1456_v57  ;;  %v533_v59 = vld [vmem:[%s5257_s20 + $0xa8] sm:$0xff] }
  0x5d   : > { %434 = vst [vmem:[#allocation2 + $0x78] sm:$0x1] %v433_v35  ;;  %v787_v43 = vshrl.u32 %v5013_v28, 16  ;;  %v790_v44 = vshll.u32 %v5013_v28, 16  ;;  %v1161_v46 = vld [vmem:[#allocation2] sm:$0xf]  ;;  %1688 = vrot.lane.b32.xlu0 %v1457_v42, %s5170_s21  ;;  %v5505_v57 = vpack.c.bf16 %v532_v41, %v532_v41 }
  0x5e   : > { %v1164_v47 = vld [vmem:[#allocation2 + $0x10] sm:$0xf]  ;;  %v1466_v49 = vrot.slane %v1464_v37, 5  ;;  %v781_v50 = vrot.slane %v779_v39, 7  ;;  %v796_v51 = vshrl.u32 %v5014_v1, 16  ;;  %v799_v9 = vshll.u32 %v5014_v1, 16 }
  0x5f   : > { %1193 = vst.msk [vmem:[#allocation3] sm:$0xf] %vm963_vm7, %v1161_v46  ;;  %1196 = vst.msk [vmem:[#allocation3 + $0xc] sm:$0xf] %vm963_vm7, %v1164_v47  ;;  %v789_v53 = vrot.slane %v787_v43, 7  ;;  %v804_v55 = vshrl.u32 %v5015_v45, 16 }
  0x60   : > { %v807_v56 = vshll.u32 %v5015_v45, 16  ;;  %v489_v60 = vsel %vm5227_vm4, 0, %v488_v29  ;;  %v1467_v61 = vsel %vm5333_vm11, %v1462_v3, %v1466_v49  ;;  %v1249_v38 = vld [vmem:[#allocation2 + $0x60] sm:$0xf]  ;;  %v784_v62 = vor.u32 %v782_v40, %v781_v50  ;;  %v1019_v8 = vld [vmem:[#allocation2 + $0x68] sm:$0x1] }
  0x61   : > { %v785_v4 = vrot.slane %v781_v50, 4  ;;  %v798_v5 = vrot.slane %v796_v51, 7  ;;  %490 = vst [vmem:[#allocation2 + $0x80] sm:$0x1] %v489_v60  ;;  %1690 = vrot.lane.b32.xlu1 %v1467_v61, %s5170_s21  ;;  %v1469_v6 = vshrl.u32 %v1249_v38, 16  ;;  %v1472_v7 = vshll.u32 %v1249_v38, 16 }
  0x62   : > { %v792_v10 = vor.u32 %v790_v44, %v789_v53  ;;  %v1022_v11 = vld [vmem:[#allocation2 + $0x6c] sm:$0xf]  ;;  %v1250_v58 = vld [vmem:[#allocation2 + $0x64] sm:$0xf]  ;;  %v1020_v48 = vsel %vm5222_vm3, %v777_v19, %v1019_v8  ;;  %v794_v13 = vrot.slane %v789_v53, 4  ;;  %v806_v25 = vrot.slane %v804_v55, 7 }
  0x63   : > { %v1023_v12 = vsel %vm5286_vm8, %v784_v62, %v1022_v11  ;;  %v801_v14 = vor.u32 %v799_v9, %v798_v5  ;;  %v435_v63 = vld [vmem:[#allocation2 + $0x84] sm:$0x1]  ;;  %v1471_v15 = vrot.slane %v1469_v6, 4  ;;  %v1474_v36 = vrot.slane %v1472_v7, 5  ;;  %1021 = vst [vmem:[#allocation2 + $0x68] sm:$0x1] %v1020_v48 }
  0x64   : > { %v1478_v16 = vshll.u32 %v1250_v58, 16  ;;  %v1482_v17 = vshrl.u32 %v1250_v58, 16  ;;  %1024 = vst [vmem:[#allocation2 + $0x6c] sm:$0xf] %v1023_v12  ;;  %v1026_v20 = vld [vmem:[#allocation2 + $0x74] sm:$0x1]  ;;  %v793_v22 = vsel %vm5248_vm6, %v785_v4, %v792_v10  ;;  %v809_v3 = vor.u32 %v807_v56, %v806_v25 }
  0x65   : > { %v1027_v19 = vsel %vm5222_vm3, %v794_v13, %v1026_v20  ;;  %v802_v23 = vrot.slane %v798_v5, 4  ;;  %v1029_v26 = vld [vmem:[#allocation2 + $0x78] sm:$0xf]  ;;  %v491_v28 = vld [vmem:[#allocation2 + $0x8c] sm:$0x1]  ;;  %v1475_v30 = vor.u32 %v1474_v36, %v1471_v15  ;;  %v811_v37 = vrot.slane %v806_v25, 4 }
  0x66   : > { %v1165_v29 = vld [vmem:[#allocation2 + $0x18] sm:$0xf]  ;;  %v1480_v31 = vrot.slane %v1478_v16, 5  ;;  %v1484_v32 = vrot.slane %v1482_v17, 4  ;;  %1025 = vst.msk [vmem:[#allocation2 + $0x70] sm:$0xf] %vm963_vm7, %v793_v22  ;;  %v1030_v33 = vsel %vm5286_vm8, %v801_v14, %v1029_v26  ;;  %v5017_v40 = vpack.c.bf16 %v533_v59, %v533_v59 }
  0x67   : > { %1028 = vst [vmem:[#allocation2 + $0x74] sm:$0x1] %v1027_v19  ;;  %v438_v34 = vld [vmem:[#allocation2 + $0x90] sm:$0x1]  ;;  %1197 = vst.msk [vmem:[#allocation3 + $0x10] sm:$0xf] %vm963_vm7, %v1165_v29  ;;  %v810_v50 = vsel %vm5248_vm6, %v802_v23, %v809_v3 }
  0x68   : > { %v1166_v35 = vld [vmem:[#allocation2 + $0x1c] sm:$0xf]  ;;  %v1167_v1 = vld [vmem:[#allocation2 + $0x24] sm:$0xf]  ;;  %1031 = vst [vmem:[#allocation2 + $0x78] sm:$0xf] %v1030_v33  ;;  %v1485_v44 = vor.u32 %v1484_v32, %v1480_v31 }
  0x69   : > { %v436_v39 = vsel %vm5222_vm3, 0, %v435_v63  ;;  %v534_v41 = vld [vmem:[%s5257_s20 + $0xb0] sm:$0xff]  ;;  %1198 = vst.msk [vmem:[#allocation3 + $0x14] sm:$0xf] %vm963_vm7, %v1166_v35  ;;  %1199 = vst.msk [vmem:[#allocation3 + $0x18] sm:$0xf] %vm963_vm7, %v1167_v1 }
  0x6a   : > { %v1168_v42 = vld [vmem:[#allocation2 + $0x28] sm:$0xf]  ;;  %v1476_v43 = vrot.slane %v1475_v30, 4  ;;  %v1033_v45 = vld [vmem:[#allocation2 + $0x80] sm:$0x1]  ;;  %v813_v46 = vshrl.u32 %v5505_v57, 16  ;;  %v5542_v8 = vpack.c.bf16 %v534_v41, %v534_v41 }
  0x6b   : > { %437 = vst [vmem:[#allocation2 + $0x84] sm:$0x1] %v436_v39  ;;  %v816_v47 = vshll.u32 %v5505_v57, 16  ;;  %v535_v49 = vld [vmem:[%s5257_s20 + $0xb8] sm:$0xff]  ;;  %1200 = vst.msk [vmem:[#allocation3 + $0x1c] sm:$0xf] %vm963_vm7, %v1168_v42  ;;  %v1034_v51 = vsel %vm5222_vm3, %v811_v37, %v1033_v45 }
  0x6c   : > { %v821_v9 = vshrl.u32 %v5017_v40, 16  ;;  %v824_v53 = vshll.u32 %v5017_v40, 16  ;;  %v1481_v55 = vsel %vm5333_vm11, %v1476_v43, %v1480_v31  ;;  %v1486_v56 = vrot.slane %v1485_v44, 4  ;;  %1032 = vst.msk [vmem:[#allocation2 + $0x7c] sm:$0xf] %vm963_vm7, %v810_v50  ;;  %v536_v38 = vld [vmem:[%s5257_s20 + $0xc0] sm:$0xff] }
  0x6d   : > { %1035 = vst [vmem:[#allocation2 + $0x80] sm:$0x1] %v1034_v51  ;;  %v815_v60 = vrot.slane %v813_v46, 7  ;;  %v492_v61 = vsel %vm5227_vm4, 0, %v491_v28  ;;  %v1169_v62 = vld [vmem:[#allocation2 + $0x30] sm:$0xf]  ;;  %1692 = vrot.lane.b32.xlu0 %v1481_v55, %s5170_s21  ;;  %v5544_v10 = vpack.c.bf16 %v535_v49, %v535_v49  ;;  %v5547_v15 = vpack.c.bf16 %v536_v38, %v536_v38 }
  0x6e   : > { %v1251_v4 = vld [vmem:[#allocation2 + $0x68] sm:$0x1]  ;;  %v1252_v5 = vld [vmem:[#allocation2 + $0x6c] sm:$0xf]  ;;  %v823_v6 = vrot.slane %v821_v9, 7  ;;  %v439_v7 = vsel %vm5222_vm3, 0, %v438_v34 }
  0x6f   : > { %493 = vst [vmem:[#allocation2 + $0x8c] sm:$0x1] %v492_v61  ;;  %1201 = vst.msk [vmem:[#allocation3 + $0x20] sm:$0xf] %vm963_vm7, %v1169_v62  ;;  %v1488_v11 = vshll.u32 %v1251_v4, 16  ;;  %v1493_v57 = vshrl.u32 %v1252_v5, 16  ;;  %v818_v48 = vor.u32 %v816_v47, %v815_v60 }
  0x70   : > { %v1496_v58 = vshll.u32 %v1252_v5, 16  ;;  %440 = vst [vmem:[#allocation2 + $0x90] sm:$0x1] %v439_v7  ;;  %v1253_v12 = vld [vmem:[#allocation2 + $0x70] sm:$0xf]  ;;  %v819_v14 = vrot.slane %v815_v60, 4  ;;  %v826_v63 = vor.u32 %v824_v53, %v823_v6 }
  0x71   : > { %v1254_v13 = vld [vmem:[#allocation2 + $0x74] sm:$0x1]  ;;  %v828_v59 = vrot.slane %v823_v6, 4  ;;  %v1490_v36 = vrot.slane %v1488_v11, 5  ;;  %v1495_v16 = vrot.slane %v1493_v57, 4  ;;  %v1502_v20 = vshll.u32 %v1253_v12, 16 }
  0x72   : > { %v1498_v17 = vrot.slane %v1496_v58, 5  ;;  %v1255_v22 = vld [vmem:[#allocation2 + $0x78] sm:$0xf]  ;;  %v1506_v19 = vshrl.u32 %v1253_v12, 16  ;;  %v1512_v23 = vshll.u32 %v1254_v13, 16  ;;  %v827_v32 = vsel %vm5248_vm6, %v819_v14, %v826_v63  ;;  %v537_v7 = vld [vmem:[%s5257_s20 + $0xc8] sm:$0xff] }
  0x73   : > { %v1517_v25 = vshrl.u32 %v1255_v22, 16  ;;  %v1520_v26 = vshll.u32 %v1255_v22, 16  ;;  %v1036_v28 = vld [vmem:[#allocation2 + $0x84] sm:$0xf]  ;;  %v1491_v29 = vsel %vm5333_vm11, %v1486_v56, %v1490_v36  ;;  %v1504_v31 = vrot.slane %v1502_v20, 5 }
  0x74   : > { %v1499_v30 = vor.u32 %v1498_v17, %v1495_v16  ;;  %1694 = vrot.lane.b32.xlu1 %v1491_v29, %s5170_s21  ;;  %v1508_v33 = vrot.slane %v1506_v19, 4  ;;  %v1514_v34 = vrot.slane %v1512_v23, 5  ;;  %v1256_v35 = vld [vmem:[#allocation2 + $0x7c] sm:$0xf]  ;;  %1039 = vst.msk [vmem:[#allocation2 + $0x88] sm:$0xf] %vm963_vm7, %v827_v32  ;;  %v1037_v42 = vsel %vm5286_vm8, %v818_v48, %v1036_v28 }
  0x75   : > { %v1519_v1 = vrot.slane %v1517_v25, 4  ;;  %v1522_v3 = vrot.slane %v1520_v26, 5  ;;  %v1526_v39 = vshll.u32 %v1256_v35, 16  ;;  %v1530_v40 = vshrl.u32 %v1256_v35, 16  ;;  %v1257_v41 = vld [vmem:[#allocation2 + $0x80] sm:$0x1] }
  0x76   : > { %v1500_v37 = vrot.slane %v1499_v30, 4  ;;  %v1509_v43 = vor.u32 %v1508_v33, %v1504_v31  ;;  %v1536_v45 = vshll.u32 %v1257_v41, 16  ;;  %1038 = vst [vmem:[#allocation2 + $0x84] sm:$0xf] %v1037_v42  ;;  %v1040_v46 = vld [vmem:[#allocation2 + $0x8c] sm:$0x1]  ;;  %v5021_v17 = vpack.c.bf16 %v537_v7, %v537_v7 }
  0x77   : > { %v1523_v44 = vor.u32 %v1522_v3, %v1519_v1  ;;  %v830_v47 = vshrl.u32 %v5542_v8, 16  ;;  %v1528_v50 = vrot.slane %v1526_v39, 5  ;;  %v1532_v51 = vrot.slane %v1530_v40, 4  ;;  %v494_v53 = vld [vmem:[#allocation2 + $0x98] sm:$0x1] }
  0x78   : > { %v1505_v49 = vsel %vm5333_vm11, %v1500_v37, %v1504_v31  ;;  %v1041_v9 = vsel %vm5222_vm3, %v828_v59, %v1040_v46  ;;  %v1510_v55 = vrot.slane %v1509_v43, 4  ;;  %v1538_v60 = vrot.slane %v1536_v45, 5  ;;  %v441_v38 = vld [vmem:[#allocation2 + $0x9c] sm:$0x1]  ;;  %v1043_v48 = vld [vmem:[#allocation2 + $0x90] sm:$0xf] }
  0x79   : > { %1696 = vrot.lane.b32.xlu0 %v1505_v49, %s5170_s21  ;;  %v1524_v56 = vrot.slane %v1523_v44, 4  ;;  %1042 = vst [vmem:[#allocation2 + $0x8c] sm:$0x1] %v1041_v9  ;;  %v832_v61 = vrot.slane %v830_v47, 7  ;;  %v1533_v62 = vor.u32 %v1532_v51, %v1528_v50  ;;  %v833_v4 = vshll.u32 %v5542_v8, 16 }
  0x7a   : > { %v838_v5 = vshrl.u32 %v5544_v10, 16  ;;  %v841_v6 = vshll.u32 %v5544_v10, 16  ;;  %v1515_v11 = vsel %vm5333_vm11, %v1510_v55, %v1514_v34  ;;  %v495_v12 = vsel %vm5227_vm4, 0, %v494_v53  ;;  %v1170_v13 = vld [vmem:[#allocation2 + $0x34] sm:$0xf] }
  0x7b   : > { %v1529_v57 = vsel %vm5333_vm11, %v1524_v56, %v1528_v50  ;;  %v836_v58 = vrot.slane %v832_v61, 4  ;;  %1698 = vrot.lane.b32.xlu1 %v1515_v11, %s5170_s21  ;;  %v1534_v8 = vrot.slane %v1533_v62, 4  ;;  %v1259_v14 = vld [vmem:[#allocation2 + $0x88] sm:$0xf]  ;;  %v835_v63 = vor.u32 %v833_v4, %v832_v61  ;;  %496 = vst [vmem:[#allocation2 + $0x98] sm:$0x1] %v495_v12 }
  0x7c   : > { %v840_v59 = vrot.slane %v838_v5, 7  ;;  %v442_v10 = vsel %vm5222_vm3, 0, %v441_v38  ;;  %1202 = vst.msk [vmem:[#allocation3 + $0x24] sm:$0xf] %vm963_vm7, %v1170_v13  ;;  %v1550_v36 = vshll.u32 %v1259_v14, 16  ;;  %v1554_v16 = vshrl.u32 %v1259_v14, 16 }
  0x7d   : > { %1700 = vrot.lane.b32.xlu0 %v1529_v57, %s5170_s21  ;;  %443 = vst [vmem:[#allocation2 + $0x9c] sm:$0x1] %v442_v10  ;;  %v847_v20 = vshrl.u32 %v5547_v15, 16  ;;  %v1539_v22 = vsel %vm5333_vm11, %v1534_v8, %v1538_v60  ;;  %v1258_v19 = vld [vmem:[#allocation2 + $0x84] sm:$0xf]  ;;  %v1044_v25 = vsel %vm5286_vm8, %v835_v63, %v1043_v48  ;;  %v850_v3 = vshll.u32 %v5547_v15, 16 }
  0x7e   : > { %v843_v23 = vor.u32 %v841_v6, %v840_v59  ;;  %v845_v26 = vrot.slane %v840_v59, 4  ;;  %v497_v28 = vld [vmem:[#allocation2 + $0xa4] sm:$0x1]  ;;  %v1541_v29 = vshrl.u32 %v1258_v19, 16  ;;  %v1544_v30 = vshll.u32 %v1258_v19, 16  ;;  %v538_v50 = vld [vmem:[%s5257_s20 + $0xd0] sm:$0xff] }
  0x7f   : > { %v1552_v31 = vrot.slane %v1550_v36, 5  ;;  %v1556_v32 = vrot.slane %v1554_v16, 4  ;;  %1045 = vst [vmem:[#allocation2 + $0x90] sm:$0xf] %v1044_v25  ;;  %v444_v33 = vld [vmem:[#allocation2 + $0xa8] sm:$0x1]  ;;  %1702 = vrot.lane.b32.xlu1 %v1539_v22, %s5170_s21 }
  0x80   : > { %v1260_v34 = vld [vmem:[#allocation2 + $0x8c] sm:$0x1]  ;;  %v844_v35 = vsel %vm5248_vm6, %v836_v58, %v843_v23  ;;  %v849_v1 = vrot.slane %v847_v20, 7  ;;  %v855_v37 = vshrl.u32 %v5021_v17, 16  ;;  %v1543_v39 = vrot.slane %v1541_v29, 4  ;;  %v539_v60 = vld [vmem:[%s5257_s20 + $0xd8] sm:$0xff] }
  0x81   : > { %v1546_v40 = vrot.slane %v1544_v30, 5  ;;  %v1557_v41 = vor.u32 %v1556_v32, %v1552_v31  ;;  %v1560_v42 = vshll.u32 %v1260_v34, 16  ;;  %1046 = vst.msk [vmem:[#allocation2 + $0x94] sm:$0xf] %vm963_vm7, %v844_v35  ;;  %v500_v43 = vld [vmem:[#allocation2 + $0xb0] sm:$0x1]  ;;  %v5022_v58 = vpack.c.bf16 %v538_v50, %v538_v50 }
  0x82   : > { %v447_v44 = vld [vmem:[#allocation2 + $0xb4] sm:$0x1]  ;;  %v852_v45 = vor.u32 %v850_v3, %v849_v1  ;;  %v853_v46 = vrot.slane %v849_v1, 4  ;;  %v5588_v47 = vrot.slane %v855_v37, 7  ;;  %v858_v49 = vshll.u32 %v5021_v17, 16  ;;  %v540_v48 = vld [vmem:[%s5257_s20 + $0xe0] sm:$0xff] }
  0x83   : > { %v1171_v51 = vld [vmem:[#allocation2 + $0x3c] sm:$0xf]  ;;  %v1547_v9 = vor.u32 %v1546_v40, %v1543_v39  ;;  %v1558_v53 = vrot.slane %v1557_v41, 4  ;;  %v1562_v15 = vrot.slane %v1560_v42, 5  ;;  %v1047_v55 = vld [vmem:[#allocation2 + $0x98] sm:$0x1]  ;;  %v5023_v8 = vpack.c.bf16 %v539_v60, %v539_v60 }
  0x84   : > { %v498_v56 = vsel %vm5227_vm4, 0, %v497_v28  ;;  %1203 = vst.msk [vmem:[#allocation3 + $0x28] sm:$0xf] %vm963_vm7, %v1171_v51  ;;  %v1048_v61 = vsel %vm5222_vm3, %v845_v26, %v1047_v55  ;;  %v860_v38 = vor.u32 %v858_v49, %v5588_v47  ;;  %v1050_v62 = vld [vmem:[#allocation2 + $0x9c] sm:$0xf]  ;;  %v862_v4 = vrot.slane %v5588_v47, 4 }
  0x85   : > { %499 = vst [vmem:[#allocation2 + $0xa4] sm:$0x1] %v498_v56  ;;  %v445_v5 = vsel %vm5222_vm3, 0, %v444_v33  ;;  %v1172_v6 = vld [vmem:[#allocation2 + $0x40] sm:$0xf]  ;;  %v1548_v7 = vrot.slane %v1547_v9, 4  ;;  %v1563_v11 = vsel %vm5333_vm11, %v1558_v53, %v1562_v15  ;;  %v1051_v57 = vsel %vm5286_vm8, %v852_v45, %v1050_v62 }
  0x86   : > { %1049 = vst [vmem:[#allocation2 + $0x98] sm:$0x1] %v1048_v61  ;;  %446 = vst [vmem:[#allocation2 + $0xa8] sm:$0x1] %v445_v5  ;;  %1706 = vrot.lane.b32.xlu1 %v1563_v11, %s5170_s21  ;;  %v1261_v12 = vld [vmem:[#allocation2 + $0x90] sm:$0xf]  ;;  %v861_v13 = vsel %vm5248_vm6, %v853_v46, %v860_v38  ;;  %v5024_v26 = vpack.c.bf16 %v540_v48, %v540_v48 }
  0x87   : > { %1204 = vst.msk [vmem:[#allocation3 + $0x2c] sm:$0xf] %vm963_vm7, %v1172_v6  ;;  %1052 = vst [vmem:[#allocation2 + $0x9c] sm:$0xf] %v1051_v57  ;;  %v501_v14 = vsel %vm5227_vm4, 0, %v500_v43  ;;  %v448_v63 = vsel %vm5222_vm3, 0, %v447_v44  ;;  %v1553_v59 = vsel %vm5333_vm11, %v1548_v7, %v1552_v31 }
  0x88   : > { %v1565_v10 = vshrl.u32 %v1261_v12, 16  ;;  %v1568_v36 = vshll.u32 %v1261_v12, 16  ;;  %1053 = vst.msk [vmem:[#allocation2 + $0xa0] sm:$0xf] %vm963_vm7, %v861_v13  ;;  %v864_v16 = vshrl.u32 %v5022_v58, 16  ;;  %v541_v17 = vld [vmem:[%s5257_s20 + $0xe8] sm:$0xff]  ;;  %1704 = vrot.lane.b32.xlu0 %v1553_v59, %s5170_s21 }
  0x89   : > { %502 = vst [vmem:[#allocation2 + $0xb0] sm:$0x1] %v501_v14  ;;  %449 = vst [vmem:[#allocation2 + $0xb4] sm:$0x1] %v448_v63  ;;  %v1173_v20 = vld [vmem:[#allocation2 + $0x48] sm:$0xf]  ;;  %v5025_v34 = vpack.c.bf16 %v541_v17, %v541_v17 }
  0x8a   : > { %v1262_v22 = vld [vmem:[#allocation2 + $0x94] sm:$0xf]  ;;  %v867_v19 = vshll.u32 %v5022_v58, 16  ;;  %v872_v23 = vshrl.u32 %v5023_v8, 16  ;;  %v875_v25 = vshll.u32 %v5023_v8, 16  ;;  %v1567_v28 = vrot.slane %v1565_v10, 4 }
  0x8b   : > { %1205 = vst.msk [vmem:[#allocation3 + $0x30] sm:$0xf] %vm963_vm7, %v1173_v20  ;;  %v1570_v29 = vrot.slane %v1568_v36, 5  ;;  %v1574_v30 = vshll.u32 %v1262_v22, 16  ;;  %v1578_v31 = vshrl.u32 %v1262_v22, 16  ;;  %v866_v32 = vrot.slane %v864_v16, 7 }
  0x8c   : > { %v874_v33 = vrot.slane %v872_v23, 7  ;;  %v881_v35 = vshrl.u32 %v5024_v26, 16  ;;  %v1174_v1 = vld [vmem:[#allocation2 + $0x4c] sm:$0xf]  ;;  %v1054_v40 = vld [vmem:[#allocation2 + $0xa4] sm:$0x1] }
  0x8d   : > { %v1571_v3 = vor.u32 %v1570_v29, %v1567_v28  ;;  %v1576_v37 = vrot.slane %v1574_v30, 5  ;;  %v1580_v39 = vrot.slane %v1578_v31, 4  ;;  %v884_v41 = vshll.u32 %v5024_v26, 16  ;;  %1206 = vst.msk [vmem:[#allocation3 + $0x34] sm:$0xf] %vm963_vm7, %v1174_v1 }
  0x8e   : > { %v1263_v42 = vld [vmem:[#allocation2 + $0x98] sm:$0x1]  ;;  %v1055_v43 = vsel %vm5222_vm3, %v862_v4, %v1054_v40  ;;  %v869_v44 = vor.u32 %v867_v19, %v866_v32  ;;  %v870_v45 = vrot.slane %v866_v32, 4  ;;  %v877_v46 = vor.u32 %v875_v25, %v874_v33  ;;  %v1057_v47 = vld [vmem:[#allocation2 + $0xa8] sm:$0xf] }
  0x8f   : > { %v1572_v49 = vrot.slane %v1571_v3, 4  ;;  %v1581_v50 = vor.u32 %v1580_v39, %v1576_v37  ;;  %v1584_v51 = vshll.u32 %v1263_v42, 16  ;;  %v1264_v9 = vld [vmem:[#allocation2 + $0x9c] sm:$0xf]  ;;  %1056 = vst [vmem:[#allocation2 + $0xa4] sm:$0x1] %v1055_v43 }
  0x90   : > { %v879_v53 = vrot.slane %v874_v33, 4  ;;  %v1265_v15 = vld [vmem:[#allocation2 + $0xa0] sm:$0xf]  ;;  %v1589_v55 = vshrl.u32 %v1264_v9, 16  ;;  %v1592_v56 = vshll.u32 %v1264_v9, 16  ;;  %v878_v60 = vsel %vm5248_vm6, %v870_v45, %v877_v46 }
  0x91   : > { %v1058_v61 = vsel %vm5286_vm8, %v869_v44, %v1057_v47  ;;  %v1061_v38 = vld [vmem:[#allocation2 + $0xb0] sm:$0x1]  ;;  %v1577_v62 = vsel %vm5333_vm11, %v1572_v49, %v1576_v37  ;;  %v1582_v4 = vrot.slane %v1581_v50, 4  ;;  %v1586_v5 = vrot.slane %v1584_v51, 5  ;;  %1060 = vst.msk [vmem:[#allocation2 + $0xac] sm:$0xf] %vm963_vm7, %v878_v60 }
  0x92   : > { %v1598_v6 = vshll.u32 %v1265_v15, 16  ;;  %1059 = vst [vmem:[#allocation2 + $0xa8] sm:$0xf] %v1058_v61  ;;  %v503_v7 = vld [vmem:[#allocation2 + $0xbc] sm:$0x1]  ;;  %1708 = vrot.lane.b32.xlu0 %v1577_v62, %s5170_s21  ;;  %v1591_v11 = vrot.slane %v1589_v55, 4  ;;  %v1062_v48 = vsel %vm5222_vm3, %v879_v53, %v1061_v38 }
  0x93   : > { %v1594_v57 = vrot.slane %v1592_v56, 5  ;;  %v1602_v58 = vshrl.u32 %v1265_v15, 16  ;;  %v1587_v12 = vsel %vm5333_vm11, %v1582_v4, %v1586_v5  ;;  %1063 = vst [vmem:[#allocation2 + $0xb0] sm:$0x1] %v1062_v48  ;;  %v883_v8 = vrot.slane %v881_v35, 7 }
  0x94   : > { %v1600_v13 = vrot.slane %v1598_v6, 5  ;;  %v889_v14 = vshrl.u32 %v5025_v34, 16  ;;  %1710 = vrot.lane.b32.xlu1 %v1587_v12, %s5170_s21  ;;  %v892_v10 = vshll.u32 %v5025_v34, 16  ;;  %v1064_v36 = vld [vmem:[#allocation2 + $0xb4] sm:$0xf]  ;;  %v504_v16 = vsel %vm5227_vm4, 0, %v503_v7 }
  0x95   : > { %v1595_v63 = vor.u32 %v1594_v57, %v1591_v11  ;;  %v1604_v59 = vrot.slane %v1602_v58, 4  ;;  %v886_v17 = vor.u32 %v884_v41, %v883_v8  ;;  %505 = vst [vmem:[#allocation2 + $0xbc] sm:$0x1] %v504_v16  ;;  %v887_v25 = vrot.slane %v883_v8, 4  ;;  %v1175_v9 = vld [vmem:[#allocation2 + $0x54] sm:$0xf] }
  0x96   : > { %v891_v20 = vrot.slane %v889_v14, 7  ;;  %v1266_v19 = vld [vmem:[#allocation2 + $0xa4] sm:$0x1]  ;;  %v1176_v53 = vld [vmem:[#allocation2 + $0x58] sm:$0xf]  ;;  %vm1886_vm13 = vcmask 1046532  }
  0x97   : > { %v1596_v22 = vrot.slane %v1595_v63, 4  ;;  %v1605_v23 = vor.u32 %v1604_v59, %v1600_v13  ;;  %v1608_v26 = vshll.u32 %v1266_v19, 16  ;;  %v1065_v29 = vsel %vm5286_vm8, %v886_v17, %v1064_v36  ;;  %1207 = vst.msk [vmem:[#allocation3 + $0x38] sm:$0xf] %vm963_vm7, %v1175_v9  ;;  %1208 = vst.msk [vmem:[#allocation3 + $0x3c] sm:$0xf] %vm963_vm7, %v1176_v53 }
  0x98   : > { %v894_v28 = vor.u32 %v892_v10, %v891_v20  ;;  %v1268_v33 = vld [vmem:[#allocation2 + $0xac] sm:$0xf]  ;;  %1066 = vst [vmem:[#allocation2 + $0xb4] sm:$0xf] %v1065_v29  ;;  %v896_v34 = vrot.slane %v891_v20, 4  ;;  %vm5663_vm14 = vmor %vm1885_vm12, %vm1886_vm13  ;;  %vm1756_vm15 = vcmask 60448  }
  0x99   : > { %v1601_v30 = vsel %vm5333_vm11, %v1596_v22, %v1600_v13  ;;  %v1606_v31 = vrot.slane %v1605_v23, 4  ;;  %v1267_v32 = vld [vmem:[#allocation2 + $0xa8] sm:$0xf]  ;;  %v1610_v35 = vrot.slane %v1608_v26, 5  ;;  %v1622_v37 = vshll.u32 %v1268_v33, 16 }
  0x9a   : > { %1712 = vrot.lane.b32.xlu0 %v1601_v30, %s5170_s21  ;;  %v1613_v1 = vshrl.u32 %v1267_v32, 16  ;;  %v1616_v3 = vshll.u32 %v1267_v32, 16  ;;  %v1626_v39 = vshrl.u32 %v1268_v33, 16  ;;  %v1269_v40 = vld [vmem:[#allocation2 + $0xb0] sm:$0x1]  ;;  %v895_v41 = vsel %vm5248_vm6, %v887_v25, %v894_v28 }
  0x9b   : > { %v1611_v42 = vsel %vm5333_vm11, %v1606_v31, %v1610_v35  ;;  %v1624_v45 = vrot.slane %v1622_v37, 5  ;;  %1067 = vst.msk [vmem:[#allocation2 + $0xb8] sm:$0xf] %vm963_vm7, %v895_v41  ;;  %v1632_v47 = vshll.u32 %v1269_v40, 16  ;;  %v1177_v5 = vld [vmem:[#allocation2 + $0x60] sm:$0xf] }
  0x9c   : > { %v1615_v43 = vrot.slane %v1613_v1, 4  ;;  %v1618_v44 = vrot.slane %v1616_v3, 5  ;;  %1714 = vrot.lane.b32.xlu1 %v1611_v42, %s5170_s21  ;;  %v1628_v46 = vrot.slane %v1626_v39, 4  ;;  %v1068_v49 = vld [vmem:[#allocation2 + $0xbc] sm:$0x1]  ;;  %v5661_v23 = vpop.permute.xlu0 %1662  ;;  %vm2096_vm0 = vcmask 93248  }
  0x9d   : > { %v1069_v51 = vsel %vm5222_vm3, %v896_v34, %v1068_v49  ;;  %v1634_v55 = vrot.slane %v1632_v47, 5  ;;  %v1178_v6 = vld [vmem:[#allocation2 + $0x64] sm:$0xf]  ;;  %1209 = vst.msk [vmem:[#allocation3 + $0x40] sm:$0xf] %vm963_vm7, %v1177_v5  ;;  %vm2289_vm1 = vcmask 126048  }
  0x9e   : > { %v1619_v50 = vor.u32 %v1618_v44, %v1615_v43  ;;  %v1629_v15 = vor.u32 %v1628_v46, %v1624_v45  ;;  %1070 = vst [vmem:[#allocation2 + $0xbc] sm:$0x1] %v1069_v51  ;;  %v1790_v48 = vld [vmem:[#allocation2 + $0x4] sm:$0xf]  ;;  %1210 = vst.msk [vmem:[#allocation3 + $0x44] sm:$0xf] %vm963_vm7, %v1178_v6 }
  0x9f   : > { %v1270_v60 = vld [vmem:[#allocation2 + $0xb4] sm:$0xf]  ;;  %v1789_v8 = vld [vmem:[#allocation2] sm:$0xe]  ;;  %v1791_v63 = vld [vmem:[#allocation2 + $0x8] sm:$0x1] }
  0xa0   : > { %v1620_v56 = vrot.slane %v1619_v50, 4  ;;  %v1630_v61 = vrot.slane %v1629_v15, 4  ;;  %v1637_v38 = vshrl.u32 %v1270_v60, 16  ;;  %v1640_v62 = vshll.u32 %v1270_v60, 16  ;;  %v1793_v19 = vld [vmem:[#allocation2 + $0x10] sm:$0xf] }
  0xa1   : > { %v1890_v16 = vrot.slane %v1790_v48, 5  ;;  %v4906_v22 = vrot.slane %v1789_v8, 9  ;;  %v1792_v28 = vld [vmem:[#allocation2 + $0xc] sm:$0xe]  ;;  %v1180_v32 = vld [vmem:[#allocation2 + $0x70] sm:$0xf] }
  0xa2   : > { %v1625_v4 = vsel %vm5333_vm11, %v1620_v56, %v1624_v45  ;;  %v1635_v7 = vsel %vm5333_vm11, %v1630_v61, %v1634_v55  ;;  %v1271_v11 = vld [vmem:[#allocation2 + $0xb8] sm:$0xf]  ;;  %v1639_v57 = vrot.slane %v1637_v38, 4  ;;  %v1642_v58 = vrot.slane %v1640_v62, 5  ;;  %v1179_v29 = vld [vmem:[#allocation2 + $0x6c] sm:$0xf]  ;;  %v1661_v46 = vpop.permute.xlu0 %1660 }
  0xa3   : > { %1716 = vrot.lane.b32.xlu0 %v1625_v4, %s5170_s21  ;;  %1718 = vrot.lane.b32.xlu1 %v1635_v7, %s5170_s21  ;;  %v1646_v12 = vshll.u32 %v1271_v11, 16  ;;  %v1650_v13 = vshrl.u32 %v1271_v11, 16  ;;  %1211 = vst.msk [vmem:[#allocation3 + $0x48] sm:$0xf] %vm963_vm7, %v1179_v29  ;;  %v1892_v34 = vrot.slane %v1890_v16, 4  ;;  %v1893_v35 = vrot.slane %v1791_v63, 5  ;;  %v1665_v9 = vpop.permute.xlu1 %1664 }
  0xa4   : > { %v1643_v14 = vor.u32 %v1642_v58, %v1639_v57  ;;  %v1897_v1 = vrot.slane %v1793_v19, 5  ;;  %1212 = vst.msk [vmem:[#allocation3 + $0x4c] sm:$0xf] %vm963_vm7, %v1180_v32  ;;  %v1891_v3 = vsel %vm5663_vm14, %v4906_v22, %v1890_v16  ;;  %v4907_v37 = vrot.slane %v1792_v28, 9  ;;  %v1794_v39 = vld [vmem:[#allocation2 + $0x14] sm:$0x1] }
  0xa5   : > { %v1648_v59 = vrot.slane %v1646_v12, 5  ;;  %v1272_v10 = vld [vmem:[#allocation2 + $0xbc] sm:$0x1]  ;;  %v1652_v36 = vrot.slane %v1650_v13, 4  ;;  %v1795_v42 = vld [vmem:[#allocation2 + $0x18] sm:$0xe]  ;;  %v1894_v47 = vsel %vm5663_vm14, %v1892_v34, %v1893_v35 }
  0xa6   : > { %v1644_v17 = vrot.slane %v1643_v14, 4  ;;  %v1656_v20 = vshll.u32 %v1272_v10, 16  ;;  %v1796_v40 = vld [vmem:[#allocation2 + $0x1c] sm:$0xf]  ;;  %v1181_v43 = vld [vmem:[#allocation2 + $0x78] sm:$0xf]  ;;  %v1898_v15 = vsel %vm5663_vm14, %v4907_v37, %v1897_v1  ;;  %v1669_v62 = vpop.permute.xlu0 %1668 }
  0xa7   : > { %v1653_v25 = vor.u32 %v1652_v36, %v1648_v59  ;;  %v1182_v44 = vld [vmem:[#allocation2 + $0x7c] sm:$0xf]  ;;  %v1797_v45 = vld [vmem:[#allocation2 + $0x20] sm:$0x1]  ;;  %1213 = vst.msk [vmem:[#allocation3 + $0x50] sm:$0xf] %vm963_vm7, %v1181_v43  ;;  %v1667_v57 = vpop.permute.xlu1 %1666 }
  0xa8   : > { %v1649_v30 = vsel %vm5333_vm11, %v1644_v17, %v1648_v59  ;;  %v1658_v31 = vrot.slane %v1656_v20, 5  ;;  %1214 = vst.msk [vmem:[#allocation3 + $0x54] sm:$0xf] %vm963_vm7, %v1182_v44  ;;  %v1899_v49 = vrot.slane %v1897_v1, 4  ;;  %v1900_v50 = vrot.slane %v1794_v39, 5  ;;  %v542_v19 = vld [vmem:[%s5257_s20 + $0xf0] sm:$0xff] }
  0xa9   : > { %1720 = vrot.lane.b32.xlu0 %v1649_v30, %s5170_s21  ;;  %v1654_v33 = vrot.slane %v1653_v25, 4  ;;  %v1904_v51 = vrot.slane %v1796_v40, 5  ;;  %v1183_v53 = vld [vmem:[#allocation2 + $0x84] sm:$0xf]  ;;  %v4908_v55 = vrot.slane %v1795_v42, 9  ;;  %v1907_v7 = vrot.slane %v1797_v45, 5 }
  0xaa   : > { %v1799_v56 = vld [vmem:[#allocation2 + $0x28] sm:$0xf]  ;;  %1215 = vst.msk [vmem:[#allocation3 + $0x58] sm:$0xf] %vm963_vm7, %v1183_v53  ;;  %v1798_v61 = vld [vmem:[#allocation2 + $0x24] sm:$0xe]  ;;  %v1901_v5 = vsel %vm5663_vm14, %v1899_v49, %v1900_v50  ;;  %v5026_v1 = vpack.c.bf16 %v542_v19, %v542_v19 }
  0xab   : > { %v1659_v41 = vsel %vm5333_vm11, %v1654_v33, %v1658_v31  ;;  %v1184_v60 = vld [vmem:[#allocation2 + $0x88] sm:$0xf]  ;;  %v1802_v38 = vld [vmem:[#allocation2 + $0x34] sm:$0xf]  ;;  %v1185_v4 = vld [vmem:[#allocation2 + $0x90] sm:$0xf]  ;;  %v1905_v48 = vsel %vm5663_vm14, %v4908_v55, %v1904_v51  ;;  %v1671_v20 = vpop.permute.xlu1 %1670  ;;  %v1673_v22 = vpop.permute.xlu0 %1672 }
  0xac   : > { %1722 = vrot.lane.b32.xlu1 %v1659_v41, %s5170_s21  ;;  %1216 = vst.msk [vmem:[#allocation3 + $0x5c] sm:$0xf] %vm963_vm7, %v1184_v60  ;;  %v1906_v6 = vrot.slane %v1904_v51, 4  ;;  %v1911_v11 = vrot.slane %v1799_v56, 5  ;;  %1217 = vst.msk [vmem:[#allocation3 + $0x60] sm:$0xf] %vm963_vm7, %v1185_v4 }
  0xad   : > { %2000 = vrot.lane.b32.xlu0 %v1891_v3, %s5171_s22  ;;  %v1186_v58 = vld [vmem:[#allocation2 + $0x94] sm:$0xf]  ;;  %v4909_v12 = vrot.slane %v1798_v61, 9  ;;  %v1800_v13 = vld [vmem:[#allocation2 + $0x2c] sm:$0x1]  ;;  %v1918_v63 = vrot.slane %v1802_v38, 5 }
  0xae   : > { %1218 = vst.msk [vmem:[#allocation3 + $0x64] sm:$0xf] %vm963_vm7, %v1186_v58  ;;  %v1801_v8 = vld [vmem:[#allocation2 + $0x30] sm:$0xe]  ;;  %v1187_v14 = vld [vmem:[#allocation2 + $0x9c] sm:$0xf]  ;;  %v1908_v10 = vsel %vm5663_vm14, %v1906_v6, %v1907_v7 }
  0xaf   : > { %1219 = vst.msk [vmem:[#allocation3 + $0x68] sm:$0xf] %vm963_vm7, %v1187_v14  ;;  %v1188_v59 = vld [vmem:[#allocation2 + $0xa0] sm:$0xf]  ;;  %v1913_v36 = vrot.slane %v1911_v11, 4  ;;  %v1914_v16 = vrot.slane %v1800_v13, 5  ;;  %v1912_v25 = vsel %vm5663_vm14, %v4909_v12, %v1911_v11 }
  0xb0   : > { %2002 = vrot.lane.b32.xlu1 %v1894_v47, %s5171_s22  ;;  %v1803_v17 = vld [vmem:[#allocation2 + $0x38] sm:$0x1]  ;;  %1758 = vst.msk [vmem:[#allocation3 + $0x4] sm:$0xf] %vm1756_vm15, %v5661_v23  ;;  %1759 = vst.msk [vmem:[#allocation3 + $0x8] sm:$0xf] %vm1756_vm15, %v1665_v9 }
  0xb1   : > { %2004 = vrot.lane.b32.xlu0 %v1898_v15, %s5171_s22  ;;  %1757 = vst.msk [vmem:[#allocation3] sm:$0xf] %vm1756_vm15, %v1661_v46  ;;  %1760 = vst.msk [vmem:[#allocation3 + $0xc] sm:$0xf] %vm1756_vm15, %v1667_v57  ;;  %v4910_v28 = vrot.slane %v1801_v8, 9  ;;  %v543_v23 = vld [vmem:[%s5257_s20 + $0xf8] sm:$0xff]  ;;  %v1915_v3 = vsel %vm5663_vm14, %v1913_v36, %v1914_v16  ;;  %v1675_v46 = vpop.permute.xlu1 %1674 }
  0xb2   : > { %1761 = vst.msk [vmem:[#allocation3 + $0x10] sm:$0xf] %vm1756_vm15, %v1669_v62  ;;  %v1805_v29 = vld [vmem:[#allocation2 + $0x40] sm:$0xf]  ;;  %1762 = vst.msk [vmem:[#allocation3 + $0x14] sm:$0xf] %vm1756_vm15, %v1671_v20  ;;  %v5027_v41 = vpack.c.bf16 %v543_v23, %v543_v23 }
  0xb3   : > { %1220 = vst.msk [vmem:[#allocation3 + $0x6c] sm:$0xf] %vm963_vm7, %v1188_v59  ;;  %v1804_v30 = vld [vmem:[#allocation2 + $0x3c] sm:$0xe]  ;;  %v1189_v31 = vld [vmem:[#allocation2 + $0xa8] sm:$0xf]  ;;  %v1919_v42 = vsel %vm5663_vm14, %v4910_v28, %v1918_v63 }
  0xb4   : > { %2006 = vrot.lane.b32.xlu1 %v1901_v5, %s5171_s22  ;;  %1763 = vst.msk [vmem:[#allocation3 + $0x18] sm:$0xf] %vm1756_vm15, %v1673_v22  ;;  %v1920_v32 = vrot.slane %v1918_v63, 4  ;;  %v1921_v33 = vrot.slane %v1803_v17, 5  ;;  %v1806_v34 = vld [vmem:[#allocation2 + $0x44] sm:$0x1] }
  0xb5   : > { %2008 = vrot.lane.b32.xlu0 %v1905_v48, %s5171_s22  ;;  %1221 = vst.msk [vmem:[#allocation3 + $0x70] sm:$0xf] %vm963_vm7, %v1189_v31  ;;  %v1190_v35 = vld [vmem:[#allocation2 + $0xac] sm:$0xf]  ;;  %v1925_v37 = vrot.slane %v1805_v29, 5  ;;  %v4911_v43 = vrot.slane %v1804_v30, 9 }
  0xb6   : > { %v1808_v39 = vld [vmem:[#allocation2 + $0x4c] sm:$0xf]  ;;  %1222 = vst.msk [vmem:[#allocation3 + $0x74] sm:$0xf] %vm963_vm7, %v1190_v35  ;;  %v1191_v40 = vld [vmem:[#allocation2 + $0xb4] sm:$0xf]  ;;  %v1922_v47 = vsel %vm5663_vm14, %v1920_v32, %v1921_v33 }
  0xb7   : > { %1223 = vst.msk [vmem:[#allocation3 + $0x78] sm:$0xf] %vm963_vm7, %v1191_v40  ;;  %v1192_v44 = vld [vmem:[#allocation2 + $0xb8] sm:$0xf]  ;;  %v1807_v45 = vld [vmem:[#allocation2 + $0x48] sm:$0xe]  ;;  %v1926_v61 = vsel %vm5663_vm14, %v4911_v43, %v1925_v37 }
  0xb8   : > { %2010 = vrot.lane.b32.xlu1 %v1908_v10, %s5171_s22  ;;  %1224 = vst.msk [vmem:[#allocation3 + $0x7c] sm:$0xf] %vm963_vm7, %v1192_v44  ;;  %v1928_v49 = vrot.slane %v1806_v34, 5  ;;  %v1932_v50 = vrot.slane %v1808_v39, 5  ;;  %v450_v51 = vld [vmem:[#allocation2 + $0xc0] sm:$0x1] }
  0xb9   : > { %2012 = vrot.lane.b32.xlu0 %v1912_v25, %s5171_s22  ;;  %1764 = vst.msk [vmem:[#allocation3 + $0x1c] sm:$0xf] %vm1756_vm15, %v1675_v46  ;;  %v898_v9 = vshrl.u32 %v5026_v1, 16  ;;  %v1927_v53 = vrot.slane %v1925_v37, 4  ;;  %v1809_v15 = vld [vmem:[#allocation2 + $0x50] sm:$0x1] }
  0xba   : > { %v451_v55 = vsel %vm5222_vm3, 0, %v450_v51  ;;  %v906_v56 = vshrl.u32 %v5027_v41, 16  ;;  %v909_v60 = vshll.u32 %v5027_v41, 16  ;;  %v4912_v38 = vrot.slane %v1807_v45, 9  ;;  %v1811_v62 = vld [vmem:[#allocation2 + $0x58] sm:$0xf]  ;;  %v1677_v16 = vpop.permute.xlu0 %1676 }
  0xbb   : > { %452 = vst [vmem:[#allocation2 + $0xc0] sm:$0x1] %v451_v55  ;;  %v900_v4 = vrot.slane %v898_v9, 7  ;;  %v901_v5 = vshll.u32 %v5026_v1, 16  ;;  %v1810_v6 = vld [vmem:[#allocation2 + $0x54] sm:$0xe]  ;;  %v1929_v58 = vsel %vm5663_vm14, %v1927_v53, %v1928_v49 }
  0xbc   : > { %2014 = vrot.lane.b32.xlu1 %v1915_v3, %s5171_s22  ;;  %v5731_v7 = vrot.slane %v906_v56, 7  ;;  %v1935_v11 = vrot.slane %v1809_v15, 5  ;;  %v1934_v48 = vrot.slane %v1932_v50, 4  ;;  %v1939_v12 = vrot.slane %v1811_v62, 5  ;;  %v1812_v63 = vld [vmem:[#allocation2 + $0x5c] sm:$0x1] }
  0xbd   : > { %2016 = vrot.lane.b32.xlu0 %v1919_v42, %s5171_s22  ;;  %v904_v57 = vrot.slane %v900_v4, 4  ;;  %v1933_v8 = vsel %vm5663_vm14, %v4912_v38, %v1932_v50  ;;  %v4913_v14 = vrot.slane %v1810_v6, 9  ;;  %v1814_v59 = vld [vmem:[#allocation2 + $0x64] sm:$0xf]  ;;  %v903_v10 = vor.u32 %v901_v5, %v900_v4  ;;  %v1813_v36 = vld [vmem:[#allocation2 + $0x60] sm:$0xe] }
  0xbe   : > { %v911_v13 = vor.u32 %v909_v60, %v5731_v7  ;;  %1765 = vst.msk [vmem:[#allocation3 + $0x20] sm:$0xf] %vm1756_vm15, %v1677_v16  ;;  %v1936_v20 = vsel %vm5663_vm14, %v1934_v48, %v1935_v11  ;;  %v1941_v22 = vrot.slane %v1939_v12, 4  ;;  %v1942_v19 = vrot.slane %v1812_v63, 5  ;;  %v1815_v23 = vld [vmem:[#allocation2 + $0x68] sm:$0x1] }
  0xbf   : > { %v1946_v25 = vrot.slane %v1814_v59, 5  ;;  %v1940_v29 = vsel %vm5663_vm14, %v4913_v14, %v1939_v12  ;;  %v4914_v21 = vrot.slane %v1813_v36, 9  ;;  %v1817_v30 = vld [vmem:[#allocation2 + $0x70] sm:$0xf]  ;;  %v1816_v32 = vld [vmem:[#allocation2 + $0x6c] sm:$0xe]  ;;  %v1679_v33 = vpop.permute.xlu1 %1678 }
  0xc0   : > { %2018 = vrot.lane.b32.xlu1 %v1922_v47, %s5171_s22  ;;  %v912_v17 = vsel %vm5248_vm6, %v904_v57, %v911_v13  ;;  %v1943_v34 = vsel %vm5663_vm14, %v1941_v22, %v1942_v19  ;;  %v1949_v1 = vrot.slane %v1815_v23, 5  ;;  %v1953_v3 = vrot.slane %v1817_v30, 5  ;;  %1766 = vst.msk [vmem:[#allocation3 + $0x24] sm:$0xf] %vm1756_vm15, %v1679_v33  ;;  %v1818_v40 = vld [vmem:[#allocation2 + $0x74] sm:$0x1] }
  0xc1   : > { %2020 = vrot.lane.b32.xlu0 %v1926_v61, %s5171_s22  ;;  %1074 = vst.msk [vmem:[#allocation2 + $0xc4] sm:$0xf] %vm963_vm7, %v912_v17  ;;  %v1948_v35 = vrot.slane %v1946_v25, 4  ;;  %v1947_v37 = vsel %vm5663_vm14, %v4914_v21, %v1946_v25  ;;  %v4915_v39 = vrot.slane %v1816_v32, 9  ;;  %v1820_v41 = vld [vmem:[#allocation2 + $0x7c] sm:$0xf] }
  0xc2   : > { %v1071_v28 = vld [vmem:[#allocation2 + $0xc0] sm:$0xf]  ;;  %v1819_v42 = vld [vmem:[#allocation2 + $0x78] sm:$0xe]  ;;  %v1955_v45 = vrot.slane %v1953_v3, 4  ;;  %v1956_v46 = vrot.slane %v1818_v40, 5 }
  0xc3   : > { %v1072_v31 = vsel %vm5286_vm8, %v903_v10, %v1071_v28  ;;  %v1950_v44 = vsel %vm5663_vm14, %v1948_v35, %v1949_v1  ;;  %v1960_v47 = vrot.slane %v1820_v41, 5  ;;  %v1954_v50 = vsel %vm5663_vm14, %v4915_v39, %v1953_v3  ;;  %v1821_v9 = vld [vmem:[#allocation2 + $0x80] sm:$0x1]  ;;  %v1823_v53 = vld [vmem:[#allocation2 + $0x88] sm:$0xf] }
  0xc4   : > { %2022 = vrot.lane.b32.xlu1 %v1929_v58, %s5171_s22  ;;  %1073 = vst [vmem:[#allocation2 + $0xc0] sm:$0xf] %v1072_v31  ;;  %v1683_v43 = vpop.permute.xlu1 %1682  ;;  %v4916_v51 = vrot.slane %v1819_v42, 9  ;;  %v1822_v15 = vld [vmem:[#allocation2 + $0x84] sm:$0xe]  ;;  %v1957_v55 = vsel %vm5663_vm14, %v1955_v45, %v1956_v46  ;;  %v1963_v60 = vrot.slane %v1821_v9, 5 }
  0xc5   : > { %2024 = vrot.lane.b32.xlu0 %v1933_v8, %s5171_s22  ;;  %v1681_v49 = vpop.permute.xlu0 %1680  ;;  %1768 = vst.msk [vmem:[#allocation3 + $0x2c] sm:$0xf] %vm1756_vm15, %v1683_v43  ;;  %v1962_v56 = vrot.slane %v1960_v47, 4  ;;  %v1967_v61 = vrot.slane %v1823_v53, 5  ;;  %v4917_v4 = vrot.slane %v1822_v15, 9  ;;  %vm4493_vm2 = vcmask 1041408  }
  0xc6   : > { %1767 = vst.msk [vmem:[#allocation3 + $0x28] sm:$0xf] %vm1756_vm15, %v1681_v49  ;;  %v1961_v62 = vsel %vm5663_vm14, %v4916_v51, %v1960_v47  ;;  %v1824_v5 = vld [vmem:[#allocation2 + $0x8c] sm:$0x1]  ;;  %v1826_v6 = vld [vmem:[#allocation2 + $0x94] sm:$0xf] }
  0xc7   : > { %v1825_v57 = vld [vmem:[#allocation2 + $0x90] sm:$0xe]  ;;  %v1964_v58 = vsel %vm5663_vm14, %v1962_v56, %v1963_v60  ;;  %v1969_v48 = vrot.slane %v1967_v61, 4  ;;  %v1970_v12 = vrot.slane %v1824_v5, 5  ;;  %v1974_v13 = vrot.slane %v1826_v6, 5 }
  0xc8   : > { %2026 = vrot.lane.b32.xlu1 %v1936_v20, %s5171_s22  ;;  %v1968_v8 = vsel %vm5663_vm14, %v4917_v4, %v1967_v61  ;;  %v4918_v14 = vrot.slane %v1825_v57, 9  ;;  %v1827_v63 = vld [vmem:[#allocation2 + $0x98] sm:$0x1]  ;;  %v1829_v59 = vld [vmem:[#allocation2 + $0xa0] sm:$0xf]  ;;  %vm2850_vm5 = vcmask 158848  }
  0xc9   : > { %2028 = vrot.lane.b32.xlu0 %v1940_v29, %s5171_s22  ;;  %v1828_v10 = vld [vmem:[#allocation2 + $0x9c] sm:$0xe]  ;;  %v1971_v16 = vsel %vm5663_vm14, %v1969_v48, %v1970_v12  ;;  %v1976_v17 = vrot.slane %v1974_v13, 4  ;;  %v1977_v20 = vrot.slane %v1827_v63, 5  ;;  %v1981_v22 = vrot.slane %v1829_v59, 5 }
  0xca   : > { %v1685_v38 = vpop.permute.xlu0 %1684  ;;  %v1975_v19 = vsel %vm5663_vm14, %v4918_v14, %v1974_v13  ;;  %v4919_v25 = vrot.slane %v1828_v10, 9  ;;  %v1830_v28 = vld [vmem:[#allocation2 + $0xa4] sm:$0x1]  ;;  %v1832_v29 = vld [vmem:[#allocation2 + $0xac] sm:$0xf]  ;;  %vm3187_vm6 = vcmask 191648  }
  0xcb   : > { %1769 = vst.msk [vmem:[#allocation3 + $0x30] sm:$0xf] %vm1756_vm15, %v1685_v38  ;;  %v1687_v11 = vpop.permute.xlu1 %1686  ;;  %v1831_v23 = vld [vmem:[#allocation2 + $0xa8] sm:$0xe]  ;;  %v1978_v30 = vsel %vm5663_vm14, %v1976_v17, %v1977_v20  ;;  %v1983_v31 = vrot.slane %v1981_v22, 4  ;;  %v1984_v32 = vrot.slane %v1830_v28, 5 }
  0xcc   : > { %2030 = vrot.lane.b32.xlu1 %v1943_v34, %s5171_s22  ;;  %1770 = vst.msk [vmem:[#allocation3 + $0x34] sm:$0xf] %vm1756_vm15, %v1687_v11  ;;  %v1988_v33 = vrot.slane %v1832_v29, 5  ;;  %v1982_v34 = vsel %vm5663_vm14, %v4919_v25, %v1981_v22  ;;  %v4920_v35 = vrot.slane %v1831_v23, 9  ;;  %v1833_v1 = vld [vmem:[#allocation2 + $0xb0] sm:$0x1] }
  0xcd   : > { %2032 = vrot.lane.b32.xlu0 %v1947_v37, %s5171_s22  ;;  %v1835_v3 = vld [vmem:[#allocation2 + $0xb8] sm:$0xf]  ;;  %v1834_v37 = vld [vmem:[#allocation2 + $0xb4] sm:$0xe]  ;;  %v1985_v39 = vsel %vm5663_vm14, %v1983_v31, %v1984_v32  ;;  %v1991_v41 = vrot.slane %v1833_v1, 5  ;;  %vm4279_vm7 = vcmask 290048  }
  0xce   : > { %v1990_v40 = vrot.slane %v1988_v33, 4  ;;  %v1995_v42 = vrot.slane %v1835_v3, 5  ;;  %v1989_v43 = vsel %vm5663_vm14, %v4920_v35, %v1988_v33  ;;  %v1836_v45 = vld [vmem:[#allocation2 + $0xbc] sm:$0x1]  ;;  %v2129_v15 = vld [vmem:[#allocation2 + $0xc] sm:$0xf] }
  0xcf   : > { %v1689_v36 = vpop.permute.xlu0 %1688  ;;  %v2131_v60 = vld [vmem:[#allocation2 + $0x18] sm:$0xf]  ;;  %v2132_v38 = vld [vmem:[#allocation2 + $0x1c] sm:$0xf]  ;;  %v2133_v4 = vld [vmem:[#allocation2 + $0x24] sm:$0xf] }
  0xd0   : > { %2034 = vrot.lane.b32.xlu1 %v1950_v44, %s5171_s22  ;;  %1771 = vst.msk [vmem:[#allocation3 + $0x38] sm:$0xf] %vm1756_vm15, %v1689_v36  ;;  %v4921_v44 = vrot.slane %v1834_v37, 9  ;;  %v1992_v47 = vsel %vm5663_vm14, %v1990_v40, %v1991_v41  ;;  %v1997_v49 = vrot.slane %v1995_v42, 4  ;;  %v2134_v6 = vld [vmem:[#allocation2 + $0x28] sm:$0xf] }
  0xd1   : > { %2036 = vrot.lane.b32.xlu0 %v1954_v50, %s5171_s22  ;;  %v1998_v50 = vrot.slane %v1836_v45, 5  ;;  %v2135_v11 = vld [vmem:[#allocation2 + $0x30] sm:$0xf]  ;;  %v2136_v57 = vld [vmem:[#allocation2 + $0x34] sm:$0xf] }
  0xd2   : > { %v1996_v51 = vsel %vm5663_vm14, %v4921_v44, %v1995_v42  ;;  %v2138_v13 = vld [vmem:[#allocation2 + $0x40] sm:$0xf]  ;;  %v2140_v14 = vld [vmem:[#allocation2 + $0x4c] sm:$0xf]  ;;  %v2141_v63 = vld [vmem:[#allocation2 + $0x54] sm:$0xf] }
  0xd3   : > { %v1691_v21 = vpop.permute.xlu1 %1690  ;;  %v1999_v9 = vsel %vm5663_vm14, %v1997_v49, %v1998_v50  ;;  %v2142_v10 = vld [vmem:[#allocation2 + $0x58] sm:$0xf]  ;;  %v2143_v36 = vld [vmem:[#allocation2 + $0x60] sm:$0xf]  ;;  %v2144_v17 = vld [vmem:[#allocation2 + $0x64] sm:$0xf] }
  0xd4   : > { %2038 = vrot.lane.b32.xlu1 %v1957_v55, %s5171_s22  ;;  %1772 = vst.msk [vmem:[#allocation3 + $0x3c] sm:$0xf] %vm1756_vm15, %v1691_v21  ;;  %v2130_v55 = vld [vmem:[#allocation2 + $0x10] sm:$0xf]  ;;  %v2145_v20 = vld [vmem:[#allocation2 + $0x6c] sm:$0xf] }
  0xd5   : > { %2040 = vrot.lane.b32.xlu0 %v1961_v62, %s5171_s22  ;;  %v2147_v25 = vld [vmem:[#allocation2 + $0x78] sm:$0xf]  ;;  %v2148_v29 = vld [vmem:[#allocation2 + $0x7c] sm:$0xf]  ;;  %v2149_v21 = vld [vmem:[#allocation2 + $0x84] sm:$0xf] }
  0xd6   : > { %v2322_v32 = vld [vmem:[#allocation2 + $0xc] sm:$0xf]  ;;  %v2151_v33 = vld [vmem:[#allocation2 + $0x90] sm:$0xf]  ;;  %v2152_v1 = vld [vmem:[#allocation2 + $0x94] sm:$0xf] }
  0xd7   : > { %v2374_v35 = vshll.u32 %v2322_v32, 16  ;;  %v2323_v3 = vld [vmem:[#allocation2 + $0x10] sm:$0xf]  ;;  %v2153_v37 = vld [vmem:[#allocation2 + $0x9c] sm:$0xf] }
  0xd8   : > { %2042 = vrot.lane.b32.xlu1 %v1964_v58, %s5171_s22  ;;  %v2137_v58 = vld [vmem:[#allocation2 + $0x3c] sm:$0xf]  ;;  %v2384_v44 = vshrl.u32 %v2323_v3, 16  ;;  %v2154_v45 = vld [vmem:[#allocation2 + $0xa0] sm:$0xf] }
  0xd9   : > { %2044 = vrot.lane.b32.xlu0 %v1968_v8, %s5171_s22  ;;  %v2139_v8 = vld [vmem:[#allocation2 + $0x48] sm:$0xf]  ;;  %v2376_v42 = vrot.slane %v2374_v35, 5  ;;  %v2330_v35 = vld [vmem:[#allocation2 + $0x2c] sm:$0x1] }
  0xdc   : > { %2046 = vrot.lane.b32.xlu1 %v1971_v16, %s5171_s22 }
  0xdd   : > { %2048 = vrot.lane.b32.xlu0 %v1975_v19, %s5171_s22  ;;  %v2146_v19 = vld [vmem:[#allocation2 + $0x70] sm:$0xf] }
  0xdf   : > { %v1693_v46 = vpop.permute.xlu0 %1692 }
  0xe0   : > { %2050 = vrot.lane.b32.xlu1 %v1978_v30, %s5171_s22  ;;  %1773 = vst.msk [vmem:[#allocation3 + $0x40] sm:$0xf] %vm1756_vm15, %v1693_v46  ;;  %v2150_v30 = vld [vmem:[#allocation2 + $0x88] sm:$0xf]  ;;  %v2326_v46 = vld [vmem:[#allocation2 + $0x1c] sm:$0xf] }
  0xe1   : > { %2052 = vrot.lane.b32.xlu0 %v1982_v34, %s5171_s22  ;;  %v2371_v34 = vshrl.u32 %v2322_v32, 16 }
  0xe3   : > { %v2373_v41 = vrot.slane %v2371_v34, 4 }
  0xe4   : > { %2054 = vrot.lane.b32.xlu1 %v1985_v39, %s5171_s22  ;;  %v2325_v39 = vld [vmem:[#allocation2 + $0x18] sm:$0xf] }
  0xe5   : > { %2056 = vrot.lane.b32.xlu0 %v1989_v43, %s5171_s22  ;;  %v2380_v43 = vshll.u32 %v2323_v3, 16  ;;  %v2398_v49 = vshll.u32 %v2325_v39, 16 }
  0xe6   : > { %v1695_v53 = vpop.permute.xlu1 %1694 }
  0xe7   : > { %1774 = vst.msk [vmem:[#allocation3 + $0x44] sm:$0xf] %vm1756_vm15, %v1695_v53  ;;  %v2156_v53 = vld [vmem:[#allocation2 + $0xac] sm:$0xf] }
  0xe8   : > { %2058 = vrot.lane.b32.xlu1 %v1992_v47, %s5171_s22  ;;  %v2395_v47 = vshrl.u32 %v2325_v39, 16 }
  0xe9   : > { %2060 = vrot.lane.b32.xlu0 %v1996_v51, %s5171_s22  ;;  %v2155_v51 = vld [vmem:[#allocation2 + $0xa8] sm:$0xf] }
  0xeb   : > { %v1697_v56 = vpop.permute.xlu0 %1696 }
  0xec   : > { %2062 = vrot.lane.b32.xlu1 %v1999_v9, %s5171_s22  ;;  %1775 = vst.msk [vmem:[#allocation3 + $0x48] sm:$0xf] %vm1756_vm15, %v1697_v56  ;;  %v2377_v56 = vor.u32 %v2376_v42, %v2373_v41 }
  0xed   : > { %2193 = vrot.lane.b32.xlu0 %v2129_v15, %s5172_s23  ;;  %v1699_v61 = vpop.permute.xlu1 %1698  ;;  %v2328_v15 = vld [vmem:[#allocation2 + $0x24] sm:$0xf] }
  0xee   : > { %1776 = vst.msk [vmem:[#allocation3 + $0x4c] sm:$0xf] %vm1756_vm15, %v1699_v61  ;;  %v2324_v61 = vld [vmem:[#allocation2 + $0x14] sm:$0x1] }
  0xef   : > { %v1701_v62 = vpop.permute.xlu0 %1700 }
  0xf0   : > { %2195 = vrot.lane.b32.xlu1 %v2130_v55, %s5172_s23  ;;  %1777 = vst.msk [vmem:[#allocation3 + $0x50] sm:$0xf] %vm1756_vm15, %v1701_v62  ;;  %v2329_v55 = vld [vmem:[#allocation2 + $0x28] sm:$0xf]  ;;  %v2404_v62 = vshll.u32 %v2326_v46, 16 }
  0xf1   : > { %2197 = vrot.lane.b32.xlu0 %v2131_v60, %s5172_s23  ;;  %v1703_v5 = vpop.permute.xlu1 %1702  ;;  %v5855_v60 = vrot.slane %v2380_v43, 5  ;;  %v2160_v43 = vld [vmem:[#allocation2 + $0xc4] sm:$0xf] }
  0xf2   : > { %1778 = vst.msk [vmem:[#allocation3 + $0x54] sm:$0xf] %vm1756_vm15, %v1703_v5  ;;  %v2397_v5 = vrot.slane %v2395_v47, 4 }
  0xf4   : > { %2199 = vrot.lane.b32.xlu1 %v2132_v38, %s5172_s23  ;;  %v2386_v38 = vrot.slane %v2384_v44, 4 }
  0xf5   : > { %2201 = vrot.lane.b32.xlu0 %v2133_v4, %s5172_s23  ;;  %v2157_v4 = vld [vmem:[#allocation2 + $0xb4] sm:$0xf] }
  0xf8   : > { %2203 = vrot.lane.b32.xlu1 %v2134_v6, %s5172_s23  ;;  %v1707_v48 = vpop.permute.xlu1 %1706  ;;  %v2400_v6 = vrot.slane %v2398_v49, 5  ;;  %v2335_v49 = vld [vmem:[#allocation2 + $0x40] sm:$0xf] }
  0xf9   : > { %2205 = vrot.lane.b32.xlu0 %v2135_v11, %s5172_s23  ;;  %1780 = vst.msk [vmem:[#allocation3 + $0x5c] sm:$0xf] %vm1756_vm15, %v1707_v48  ;;  %v2408_v11 = vshrl.u32 %v2326_v46, 16  ;;  %v2422_v48 = vshll.u32 %v2328_v15, 16 }
  0xfa   : > { %v1705_v12 = vpop.permute.xlu0 %1704 }
  0xfb   : > { %1779 = vst.msk [vmem:[#allocation3 + $0x58] sm:$0xf] %vm1756_vm15, %v1705_v12  ;;  %v2428_v12 = vshll.u32 %v2329_v55, 16 }
  0xfc   : > { %2207 = vrot.lane.b32.xlu1 %v2136_v57, %s5172_s23 }
  0xfd   : > { %2209 = vrot.lane.b32.xlu0 %v2137_v58, %s5172_s23  ;;  %v2419_v58 = vshrl.u32 %v2328_v15, 16  ;;  %v5865_v32 = vrot.slane %v2428_v12, 5  ;;  %v2438_v15 = vshll.u32 %v2330_v35, 16  ;;  %v2338_v12 = vld [vmem:[#allocation2 + $0x4c] sm:$0xf] }
 0x100   : > { %2211 = vrot.lane.b32.xlu1 %v2138_v13, %s5172_s23  ;;  %v2432_v13 = vshrl.u32 %v2329_v55, 16  ;;  %v2337_v55 = vld [vmem:[#allocation2 + $0x48] sm:$0xf] }
 0x101   : > { %2213 = vrot.lane.b32.xlu0 %v2139_v8, %s5172_s23  ;;  %v2331_v8 = vld [vmem:[#allocation2 + $0x30] sm:$0xf] }
 0x104   : > { %2215 = vrot.lane.b32.xlu1 %v2140_v14, %s5172_s23  ;;  %v1709_v59 = vpop.permute.xlu0 %1708 }
 0x105   : > { %2217 = vrot.lane.b32.xlu0 %v2141_v63, %s5172_s23  ;;  %1781 = vst.msk [vmem:[#allocation3 + $0x60] sm:$0xf] %vm1756_vm15, %v1709_v59  ;;  %v2158_v63 = vld [vmem:[#allocation2 + $0xb8] sm:$0xf]  ;;  %v2390_v59 = vshll.u32 %v2324_v61, 16 }
 0x106   : > { %v1711_v16 = vpop.permute.xlu1 %1710 }
 0x107   : > { %1782 = vst.msk [vmem:[#allocation3 + $0x64] sm:$0xf] %vm1756_vm15, %v1711_v16  ;;  %v5862_v16 = vrot.slane %v2404_v62, 5  ;;  %v2392_v41 = vrot.slane %v2390_v59, 5 }
 0x108   : > { %2219 = vrot.lane.b32.xlu1 %v2142_v10, %s5172_s23  ;;  %v2378_v10 = vrot.slane %v2377_v56, 4 }
 0x109   : > { %2221 = vrot.lane.b32.xlu0 %v2143_v36, %s5172_s23  ;;  %v2387_v36 = vor.u32 %v2386_v38, %v5855_v60 }
 0x10a   : > { %v2383_v44 = vsel %vm5333_vm11, %v2378_v10, %v5855_v60  ;;  %v2440_v10 = vrot.slane %v2438_v15, 5 }
 0x10c   : > { %v1713_v22 = vpop.permute.xlu0 %1712  ;;  %2223 = vrot.lane.b32.xlu1 %v2144_v17, %s5172_s23  ;;  %v2332_v17 = vld [vmem:[#allocation2 + $0x34] sm:$0xf] }
 0x10d   : > { %1783 = vst.msk [vmem:[#allocation3 + $0x68] sm:$0xf] %vm1756_vm15, %v1713_v22  ;;  %2225 = vrot.lane.b32.xlu0 %v2145_v20, %s5172_s23  ;;  %v2334_v20 = vld [vmem:[#allocation2 + $0x3c] sm:$0xf]  ;;  %v2401_v22 = vor.u32 %v2400_v6, %v2397_v5  ;;  %v2456_v3 = vshrl.u32 %v2332_v17, 16 }
 0x10e   : > { %v1715_v28 = vpop.permute.xlu1 %1714  ;;  %v2470_v39 = vshll.u32 %v2334_v20, 16  ;;  %v2333_v6 = vld [vmem:[#allocation2 + $0x38] sm:$0x1] }
 0x10f   : > { %1784 = vst.msk [vmem:[#allocation3 + $0x6c] sm:$0xf] %vm1756_vm15, %v1715_v28  ;;  %v2443_v28 = vshrl.u32 %v2331_v8, 16  ;;  %v2458_v38 = vrot.slane %v2456_v3, 4  ;;  %v2347_v3 = vld [vmem:[#allocation2 + $0x70] sm:$0xf] }
 0x110   : > { %2227 = vrot.lane.b32.xlu1 %v2146_v19, %s5172_s23  ;;  %v2327_v19 = vld [vmem:[#allocation2 + $0x20] sm:$0x1]  ;;  %v2472_v60 = vrot.slane %v2470_v39, 5  ;;  %v2576_v15 = vshrl.u32 %v2347_v3, 16 }
 0x111   : > { %2229 = vrot.lane.b32.xlu0 %v2147_v25, %s5172_s23  ;;  %v2410_v25 = vrot.slane %v2408_v11, 4  ;;  %v2414_v42 = vshll.u32 %v2327_v19, 16  ;;  %v2445_v46 = vrot.slane %v2443_v28, 4  ;;  %v2476_v11 = vshll.u32 %v2335_v49, 16 }
 0x113   : > { %v2416_v5 = vrot.slane %v2414_v42, 5  ;;  %v5891_v28 = vrot.slane %v2476_v11, 5 }
 0x114   : > { %2231 = vrot.lane.b32.xlu1 %v2148_v29, %s5172_s23  ;;  %v2446_v29 = vshll.u32 %v2331_v8, 16  ;;  %v2494_v8 = vshll.u32 %v2337_v55, 16 }
 0x115   : > { %v1717_v23 = vpop.permute.xlu0 %1716  ;;  %2233 = vrot.lane.b32.xlu0 %v2149_v21, %s5172_s23  ;;  %v1719_v31 = vpop.permute.xlu1 %1718 }
 0x116   : > { %1785 = vst.msk [vmem:[#allocation3 + $0x70] sm:$0xf] %vm1756_vm15, %v1717_v23  ;;  %1786 = vst.msk [vmem:[#allocation3 + $0x74] sm:$0xf] %vm1756_vm15, %v1719_v31  ;;  %v2159_v23 = vld [vmem:[#allocation2 + $0xc0] sm:$0xf] }
 0x117   : > { %v2424_v31 = vrot.slane %v2422_v48, 5  ;;  %v2448_v47 = vrot.slane %v2446_v29, 5  ;;  %v2336_v29 = vld [vmem:[#allocation2 + $0x44] sm:$0x1] }
 0x118   : > { %2235 = vrot.lane.b32.xlu1 %v2150_v30, %s5172_s23  ;;  %v2421_v30 = vrot.slane %v2419_v58, 4 }
 0x119   : > { %2237 = vrot.lane.b32.xlu0 %v2151_v33, %s5172_s23  ;;  %v2434_v33 = vrot.slane %v2432_v13, 4  ;;  %v2449_v48 = vor.u32 %v2448_v47, %v2445_v46  ;;  %v2491_v13 = vshrl.u32 %v2337_v55, 16 }
 0x11b   : > { %v1721_v40 = vpop.permute.xlu0 %1720 }
 0x11c   : > { %2239 = vrot.lane.b32.xlu1 %v2152_v1, %s5172_s23  ;;  %1787 = vst.msk [vmem:[#allocation3 + $0x78] sm:$0xf] %vm1756_vm15, %v1721_v40  ;;  %v2452_v1 = vshll.u32 %v2332_v17, 16  ;;  %v2388_v40 = vrot.slane %v2387_v36, 4 }
 0x11d   : > { %2241 = vrot.lane.b32.xlu0 %v2153_v37, %s5172_s23  ;;  %v2467_v37 = vshrl.u32 %v2334_v20, 16 }
 0x11e   : > { %v1723_v50 = vpop.permute.xlu1 %1722  ;;  %v5877_v61 = vrot.slane %v2452_v1, 5 }
 0x11f   : > { %1788 = vst.msk [vmem:[#allocation3 + $0x7c] sm:$0xf] %vm1756_vm15, %v1723_v50  ;;  %v2001_v9 = vpop.permute.xlu0 %2000  ;;  %v2469_v62 = vrot.slane %v2467_v37, 4 }
 0x120   : > { %2243 = vrot.lane.b32.xlu1 %v2154_v45, %s5172_s23  ;;  %2097 = vst.msk [vmem:[#allocation3] sm:$0xf] %vm2096_vm0, %v2001_v9  ;;  %v2411_v45 = vor.u32 %v2410_v25, %v5862_v16  ;;  %v2425_v9 = vor.u32 %v2424_v31, %v2421_v30  ;;  %v2459_v20 = vor.u32 %v2458_v38, %v5877_v61  ;;  %v2346_v25 = vld [vmem:[#allocation2 + $0x6c] sm:$0xf]  ;;  %v2450_v31 = vrot.slane %v2449_v48, 4 }
 0x121   : > { %2245 = vrot.lane.b32.xlu0 %v2155_v51, %s5172_s23  ;;  %v2402_v51 = vrot.slane %v2401_v22, 4  ;;  %v2462_v22 = vshll.u32 %v2333_v6, 16  ;;  %v2473_v19 = vor.u32 %v2472_v60, %v2469_v62  ;;  %v2563_v37 = vshrl.u32 %v2346_v25, 16  ;;  %v2350_v62 = vld [vmem:[#allocation2 + $0x7c] sm:$0xf] }
 0x122   : > { %v2003_v57 = vpop.permute.xlu1 %2002  ;;  %v2412_v58 = vrot.slane %v2411_v45, 4  ;;  %v2426_v59 = vrot.slane %v2425_v9, 4  ;;  %v2566_v39 = vshll.u32 %v2346_v25, 16  ;;  %v2460_v42 = vrot.slane %v2459_v20, 4  ;;  %v2349_v45 = vld [vmem:[#allocation2 + $0x78] sm:$0xf] }
 0x123   : > { %2098 = vst.msk [vmem:[#allocation3 + $0x4] sm:$0xf] %vm2096_vm0, %v2003_v57  ;;  %v2005_v14 = vpop.permute.xlu0 %2004  ;;  %v2480_v57 = vshrl.u32 %v2335_v49, 16  ;;  %v2474_v46 = vrot.slane %v2473_v19, 4  ;;  %v2339_v9 = vld [vmem:[#allocation2 + $0x50] sm:$0x1] }
 0x124   : > { %2247 = vrot.lane.b32.xlu1 %v2156_v53, %s5172_s23  ;;  %2099 = vst.msk [vmem:[#allocation3 + $0x8] sm:$0xf] %vm2096_vm0, %v2005_v14  ;;  %v2435_v53 = vor.u32 %v2434_v33, %v5865_v32  ;;  %v2417_v30 = vsel %vm5333_vm11, %v2412_v58, %v2416_v5  ;;  %v2493_v33 = vrot.slane %v2491_v13, 4  ;;  %v2431_v1 = vsel %vm5333_vm11, %v2426_v59, %v5865_v32  ;;  %v2348_v13 = vld [vmem:[#allocation2 + $0x74] sm:$0x1] }
 0x125   : > { %2249 = vrot.lane.b32.xlu0 %v2157_v4, %s5172_s23  ;;  %v2393_v4 = vsel %vm5333_vm11, %v2388_v40, %v2392_v41  ;;  %v2568_v38 = vrot.slane %v2566_v39, 5  ;;  %v2587_v60 = vshrl.u32 %v2349_v45, 16  ;;  %v2510_v48 = vshll.u32 %v2339_v9, 16 }
 0x126   : > { %v2007_v21 = vpop.permute.xlu1 %2006  ;;  %v2436_v17 = vrot.slane %v2435_v53, 4  ;;  %v2572_v53 = vshll.u32 %v2347_v3, 16 }
 0x127   : > { %2100 = vst.msk [vmem:[#allocation3 + $0xc] sm:$0xf] %vm2096_vm0, %v2007_v21  ;;  %v2009_v34 = vpop.permute.xlu0 %2008  ;;  %v2482_v21 = vrot.slane %v2480_v57, 4  ;;  %v2512_v25 = vrot.slane %v2510_v48, 5  ;;  %v2887_v48 = vld [vmem:[#allocation2 + $0x1c] sm:$0xf] }
 0x128   : > { %2251 = vrot.lane.b32.xlu1 %v2158_v63, %s5172_s23  ;;  %2101 = vst.msk [vmem:[#allocation3 + $0x10] sm:$0xf] %vm2096_vm0, %v2009_v34  ;;  %v2407_v63 = vsel %vm5333_vm11, %v2402_v51, %v5862_v16  ;;  %v2500_v16 = vshll.u32 %v2338_v12, 16  ;;  %v2496_v34 = vrot.slane %v2494_v8, 5  ;;  %v2441_v41 = vsel %vm5333_vm11, %v2436_v17, %v2440_v10 }
 0x129   : > { %2253 = vrot.lane.b32.xlu0 %v2159_v23, %s5172_s23  ;;  %v2504_v23 = vshrl.u32 %v2338_v12, 16  ;;  %v2483_v32 = vor.u32 %v2482_v21, %v5891_v28  ;;  %v2574_v12 = vrot.slane %v2572_v53, 5  ;;  %v2578_v8 = vrot.slane %v2576_v15, 4 }
 0x12a   : > { %v2011_v50 = vpop.permute.xlu1 %2010  ;;  %v2502_v47 = vrot.slane %v2500_v16, 5  ;;  %v2497_v51 = vor.u32 %v2496_v34, %v2493_v33  ;;  %v2589_v17 = vrot.slane %v2587_v60, 4 }
 0x12b   : > { %2102 = vst.msk [vmem:[#allocation3 + $0x14] sm:$0xf] %vm2096_vm0, %v2011_v50  ;;  %v2013_v56 = vpop.permute.xlu0 %2012  ;;  %v2506_v49 = vrot.slane %v2504_v23, 4  ;;  %v2455_v50 = vsel %vm5333_vm11, %v2450_v31, %v5877_v61  ;;  %v2479_v61 = vsel %vm5333_vm11, %v2474_v46, %v5891_v28  ;;  %v2484_v57 = vrot.slane %v2483_v32, 4  ;;  %v2883_v32 = vld [vmem:[#allocation2 + $0xc] sm:$0xe] }
 0x12c   : > { %2255 = vrot.lane.b32.xlu1 %v2160_v43, %s5172_s23  ;;  %2103 = vst.msk [vmem:[#allocation3 + $0x18] sm:$0xf] %vm2096_vm0, %v2013_v56  ;;  %v2464_v43 = vrot.slane %v2462_v22, 5  ;;  %v2565_v56 = vrot.slane %v2563_v37, 4  ;;  %v2498_v10 = vrot.slane %v2497_v51, 4  ;;  %v2582_v28 = vshll.u32 %v2348_v13, 16 }
 0x12d   : > { %2754 = vrot.lane.b32.xlu0 %v2383_v44, %s5173_s24  ;;  %v2486_v44 = vshll.u32 %v2336_v29, 16  ;;  %v2507_v58 = vor.u32 %v2506_v49, %v2502_v47  ;;  %v2579_v21 = vor.u32 %v2578_v8, %v2574_v12  ;;  %v4922_v15 = vrot.slane %v2883_v32, 9  ;;  %v2886_v13 = vld [vmem:[#allocation2 + $0x18] sm:$0xe] }
 0x12e   : > { %v2015_v14 = vpop.permute.xlu1 %2014  ;;  %v2465_v6 = vsel %vm5333_vm11, %v2460_v42, %v2464_v43  ;;  %v2503_v31 = vsel %vm5333_vm11, %v2498_v10, %v2502_v47  ;;  %v2584_v3 = vrot.slane %v2582_v28, 5  ;;  %v3221_v32 = vld [vmem:[#allocation2 + $0x18] sm:$0xf] }
 0x12f   : > { %2104 = vst.msk [vmem:[#allocation3 + $0x1c] sm:$0xf] %vm2096_vm0, %v2015_v14  ;;  %v2017_v36 = vpop.permute.xlu0 %2016  ;;  %v2488_v11 = vrot.slane %v2486_v44, 5  ;;  %v2596_v14 = vshll.u32 %v2350_v62, 16  ;;  %v2508_v29 = vrot.slane %v2507_v58, 4  ;;  %v2580_v39 = vrot.slane %v2579_v21, 4 }
 0x130   : > { %2756 = vrot.lane.b32.xlu1 %v2393_v4, %s5173_s24  ;;  %2105 = vst.msk [vmem:[#allocation3 + $0x20] sm:$0xf] %vm2096_vm0, %v2017_v36  ;;  %v2590_v4 = vshll.u32 %v2349_v45, 16  ;;  %v2569_v36 = vor.u32 %v2568_v38, %v2565_v56  ;;  %v2884_v45 = vld [vmem:[#allocation2 + $0x10] sm:$0xf] }
 0x131   : > { %2758 = vrot.lane.b32.xlu0 %v2407_v63, %s5173_s24  ;;  %v2600_v63 = vshrl.u32 %v2350_v62, 16  ;;  %v2489_v19 = vsel %vm5333_vm11, %v2484_v57, %v2488_v11  ;;  %v2598_v16 = vrot.slane %v2596_v14, 5  ;;  %v2513_v37 = vsel %vm5333_vm11, %v2508_v29, %v2512_v25  ;;  %v2908_v56 = vld [vmem:[#allocation2 + $0x70] sm:$0xf]  ;;  %v2907_v62 = vld [vmem:[#allocation2 + $0x6c] sm:$0xe] }
 0x132   : > { %v2019_v35 = vpop.permute.xlu1 %2018  ;;  %v2592_v20 = vrot.slane %v2590_v4, 5  ;;  %v2570_v33 = vrot.slane %v2569_v36, 4  ;;  %v2585_v47 = vsel %vm5333_vm11, %v2580_v39, %v2584_v3  ;;  %v2981_v51 = vrot.slane %v2884_v45, 5  ;;  %v2909_v58 = vld [vmem:[#allocation2 + $0x74] sm:$0x1] }
 0x133   : > { %2106 = vst.msk [vmem:[#allocation3 + $0x24] sm:$0xf] %vm2096_vm0, %v2019_v35  ;;  %v2021_v40 = vpop.permute.xlu0 %2020  ;;  %v2602_v23 = vrot.slane %v2600_v63, 4  ;;  %v2351_v35 = vld [vmem:[#allocation2 + $0x80] sm:$0x1]  ;;  %v4930_v57 = vrot.slane %v2907_v62, 9 }
 0x134   : > { %2760 = vrot.lane.b32.xlu1 %v2417_v30, %s5173_s24  ;;  %2107 = vst.msk [vmem:[#allocation3 + $0x28] sm:$0xf] %vm2096_vm0, %v2021_v40  ;;  %v2593_v34 = vor.u32 %v2592_v20, %v2589_v17  ;;  %v2575_v43 = vsel %vm5333_vm11, %v2570_v33, %v2574_v12  ;;  %v2983_v4 = vrot.slane %v2981_v51, 4  ;;  %v3040_v63 = vrot.slane %v2909_v58, 5  ;;  %v2888_v20 = vld [vmem:[#allocation2 + $0x20] sm:$0x1] }
 0x135   : > { %2762 = vrot.lane.b32.xlu0 %v2431_v1, %s5173_s24  ;;  %v2603_v40 = vor.u32 %v2602_v23, %v2598_v16  ;;  %v4923_v17 = vrot.slane %v2886_v13, 9  ;;  %v2910_v25 = vld [vmem:[#allocation2 + $0x78] sm:$0xe]  ;;  %v2991_v21 = vrot.slane %v2888_v20, 5  ;;  %v2912_v33 = vld [vmem:[#allocation2 + $0x80] sm:$0x1] }
 0x136   : > { %v2023_v55 = vpop.permute.xlu1 %2022  ;;  %v2594_v44 = vrot.slane %v2593_v34, 4  ;;  %v3047_v3 = vrot.slane %v2912_v33, 5 }
 0x137   : > { %2108 = vst.msk [vmem:[#allocation3 + $0x2c] sm:$0xf] %vm2096_vm0, %v2023_v55  ;;  %v2025_v5 = vpop.permute.xlu0 %2024  ;;  %v2604_v49 = vrot.slane %v2603_v40, 4  ;;  %v2885_v55 = vld [vmem:[#allocation2 + $0x14] sm:$0x1] }
 0x138   : > { %2764 = vrot.lane.b32.xlu1 %v2441_v41, %s5173_s24  ;;  %2109 = vst.msk [vmem:[#allocation3 + $0x30] sm:$0xf] %vm2096_vm0, %v2025_v5  ;;  %v2606_v41 = vshll.u32 %v2351_v35, 16  ;;  %v2599_v53 = vsel %vm5333_vm11, %v2594_v44, %v2598_v16  ;;  %v2984_v5 = vrot.slane %v2885_v55, 5  ;;  %v3439_v55 = vld [vmem:[#allocation2 + $0x7c] sm:$0xf] }
 0x139   : > { %2766 = vrot.lane.b32.xlu0 %v2455_v50, %s5173_s24  ;;  %v3664_v58 = vshll.u32 %v3439_v55, 16 }
 0x13a   : > { %v2027_v59 = vpop.permute.xlu1 %2026  ;;  %v2608_v50 = vrot.slane %v2606_v41, 5  ;;  %v2985_v8 = vsel %vm5663_vm14, %v2983_v4, %v2984_v5 }
 0x13b   : > { %2110 = vst.msk [vmem:[#allocation3 + $0x34] sm:$0xf] %vm2096_vm0, %v2027_v59  ;;  %v2029_v22 = vpop.permute.xlu0 %2028  ;;  %v2988_v59 = vrot.slane %v2887_v48, 5  ;;  %v3668_v48 = vshrl.u32 %v3439_v55, 16 }
 0x13c   : > { %2768 = vrot.lane.b32.xlu1 %v2465_v6, %s5173_s24  ;;  %2111 = vst.msk [vmem:[#allocation3 + $0x38] sm:$0xf] %vm2096_vm0, %v2029_v22  ;;  %v2609_v60 = vsel %vm5333_vm11, %v2604_v49, %v2608_v50  ;;  %v3037_v6 = vrot.slane %v2908_v56, 5  ;;  %v2911_v22 = vld [vmem:[#allocation2 + $0x7c] sm:$0xf] }
 0x13d   : > { %2770 = vrot.lane.b32.xlu0 %v2479_v61, %s5173_s24  ;;  %v2982_v61 = vsel %vm5663_vm14, %v4922_v15, %v2981_v51  ;;  %v2990_v29 = vrot.slane %v2988_v59, 4  ;;  %v3044_v16 = vrot.slane %v2911_v22, 5  ;;  %v3222_v51 = vld [vmem:[#allocation2 + $0x1c] sm:$0xf]  ;;  %v3441_v22 = vld [vmem:[#allocation2 + $0x84] sm:$0xf] }
 0x13e   : > { %v2031_v30 = vpop.permute.xlu1 %2030  ;;  %v3039_v14 = vrot.slane %v3037_v6, 4  ;;  %v3038_v36 = vsel %vm5663_vm14, %v4930_v57, %v3037_v6  ;;  %v3417_v6 = vld [vmem:[#allocation2 + $0x24] sm:$0xf] }
 0x13f   : > { %2112 = vst.msk [vmem:[#allocation3 + $0x3c] sm:$0xf] %vm2096_vm0, %v2031_v30  ;;  %v2033_v1 = vpop.permute.xlu0 %2032  ;;  %v2989_v30 = vsel %vm5663_vm14, %v4923_v17, %v2988_v59  ;;  %v2992_v35 = vsel %vm5663_vm14, %v2990_v29, %v2991_v21  ;;  %v3418_v59 = vld [vmem:[#allocation2 + $0x28] sm:$0xf]  ;;  %v3666_v29 = vrot.slane %v3664_v58, 5  ;;  %v3670_v21 = vrot.slane %v3668_v48, 4 }
 0x140   : > { %2772 = vrot.lane.b32.xlu1 %v2489_v19, %s5173_s24  ;;  %2113 = vst.msk [vmem:[#allocation3 + $0x40] sm:$0xf] %vm2096_vm0, %v2033_v1  ;;  %v3041_v28 = vsel %vm5663_vm14, %v3039_v14, %v3040_v63  ;;  %v3046_v1 = vrot.slane %v3044_v16, 4  ;;  %v3223_v63 = vld [vmem:[#allocation2 + $0x24] sm:$0xf]  ;;  %v3500_v33 = vshrl.u32 %v3418_v59, 16 }
 0x141   : > { %2774 = vrot.lane.b32.xlu0 %v2503_v31, %s5173_s24  ;;  %v4931_v31 = vrot.slane %v2910_v25, 9 }
 0x142   : > { %v2035_v42 = vpop.permute.xlu1 %2034  ;;  %v3048_v45 = vsel %vm5663_vm14, %v3046_v1, %v3047_v3  ;;  %v3442_v3 = vld [vmem:[#allocation2 + $0x88] sm:$0xf] }
 0x143   : > { %2114 = vst.msk [vmem:[#allocation3 + $0x44] sm:$0xf] %vm2096_vm0, %v2035_v42  ;;  %v2037_v46 = vpop.permute.xlu0 %2036  ;;  %v3045_v40 = vsel %vm5663_vm14, %v4931_v31, %v3044_v16  ;;  %v3415_v42 = vld [vmem:[#allocation2 + $0x1c] sm:$0xf]  ;;  %v3239_v16 = vld [vmem:[#allocation2 + $0x84] sm:$0xf] }
 0x144   : > { %2776 = vrot.lane.b32.xlu1 %v2513_v37, %s5173_s24  ;;  %2115 = vst.msk [vmem:[#allocation3 + $0x48] sm:$0xf] %vm2096_vm0, %v2037_v46  ;;  %v3414_v37 = vld [vmem:[#allocation2 + $0x18] sm:$0xf]  ;;  %v3472_v50 = vshll.u32 %v3415_v42, 16  ;;  %v3476_v15 = vshrl.u32 %v3415_v42, 16 }
 0x145   : > { %2786 = vrot.lane.b32.xlu0 %v2575_v43, %s5173_s24  ;;  %v3463_v43 = vshrl.u32 %v3414_v37, 16  ;;  %v3466_v44 = vshll.u32 %v3414_v37, 16  ;;  %v3496_v31 = vshll.u32 %v3418_v59, 16  ;;  %v3679_v37 = vshrl.u32 %v3441_v22, 16  ;;  %v3240_v42 = vld [vmem:[#allocation2 + $0x88] sm:$0xf] }
 0x146   : > { %v2039_v9 = vpop.permute.xlu1 %2038  ;;  %v5985_v5 = vrot.slane %v3472_v50, 5  ;;  %v3478_v57 = vrot.slane %v3476_v15, 4  ;;  %v3688_v50 = vshll.u32 %v3442_v3, 16 }
 0x147   : > { %2116 = vst.msk [vmem:[#allocation3 + $0x4c] sm:$0xf] %vm2096_vm0, %v2039_v9  ;;  %v2041_v38 = vpop.permute.xlu0 %2040  ;;  %v3465_v9 = vrot.slane %v3463_v43, 4  ;;  %v3681_v55 = vrot.slane %v3679_v37, 4 }
 0x148   : > { %2788 = vrot.lane.b32.xlu1 %v2585_v47, %s5173_s24  ;;  %2117 = vst.msk [vmem:[#allocation3 + $0x50] sm:$0xf] %vm2096_vm0, %v2041_v38  ;;  %v3438_v47 = vld [vmem:[#allocation2 + $0x78] sm:$0xf] }
 0x149   : > { %2790 = vrot.lane.b32.xlu0 %v2599_v53, %s5173_s24  ;;  %v3468_v53 = vrot.slane %v3466_v44, 5  ;;  %v3655_v56 = vshrl.u32 %v3438_v47, 16  ;;  %v3658_v38 = vshll.u32 %v3438_v47, 16  ;;  %v3419_v47 = vld [vmem:[#allocation2 + $0x2c] sm:$0x1] }
 0x14a   : > { %v2043_v11 = vpop.permute.xlu1 %2042 }
 0x14b   : > { %2118 = vst.msk [vmem:[#allocation3 + $0x54] sm:$0xf] %vm2096_vm0, %v2043_v11  ;;  %v2045_v12 = vpop.permute.xlu0 %2044  ;;  %v3469_v11 = vor.u32 %v3468_v53, %v3465_v9  ;;  %v3657_v13 = vrot.slane %v3655_v56, 4 }
 0x14c   : > { %2792 = vrot.lane.b32.xlu1 %v2609_v60, %s5173_s24  ;;  %2119 = vst.msk [vmem:[#allocation3 + $0x58] sm:$0xf] %vm2096_vm0, %v2045_v12  ;;  %v3237_v60 = vld [vmem:[#allocation2 + $0x78] sm:$0xf]  ;;  %v3238_v12 = vld [vmem:[#allocation2 + $0x7c] sm:$0xf] }
 0x14d   : > { %3091 = vrot.lane.b32.xlu0 %v2982_v61, %s5174_s25  ;;  %v3416_v61 = vld [vmem:[#allocation2 + $0x20] sm:$0x1]  ;;  %v3470_v25 = vrot.slane %v3469_v11, 4  ;;  %v3690_v11 = vrot.slane %v3688_v50, 5 }
 0x14e   : > { %v2047_v10 = vpop.permute.xlu1 %2046  ;;  %v3482_v20 = vshll.u32 %v3416_v61, 16 }
 0x14f   : > { %2120 = vst.msk [vmem:[#allocation3 + $0x5c] sm:$0xf] %vm2096_vm0, %v2047_v10  ;;  %v2049_v19 = vpop.permute.xlu0 %2048  ;;  %v3487_v10 = vshrl.u32 %v3417_v6, 16  ;;  %v3475_v43 = vsel %vm5333_vm11, %v3470_v25, %v5985_v5 }
 0x150   : > { %3093 = vrot.lane.b32.xlu1 %v2985_v8, %s5174_s25  ;;  %2121 = vst.msk [vmem:[#allocation3 + $0x60] sm:$0xf] %vm2096_vm0, %v2049_v19  ;;  %v3660_v8 = vrot.slane %v3658_v38, 5  ;;  %v3224_v19 = vld [vmem:[#allocation2 + $0x28] sm:$0xf] }
 0x151   : > { %3123 = vrot.lane.b32.xlu0 %v3038_v36, %s5174_s25  ;;  %v3490_v36 = vshll.u32 %v3417_v6, 16 }
 0x152   : > { %v2051_v23 = vpop.permute.xlu1 %2050 }
 0x153   : > { %2122 = vst.msk [vmem:[#allocation3 + $0x64] sm:$0xf] %vm2096_vm0, %v2051_v23  ;;  %v2053_v34 = vpop.permute.xlu0 %2052  ;;  %v3661_v23 = vor.u32 %v3660_v8, %v3657_v13  ;;  %v3492_v1 = vrot.slane %v3490_v36, 5  ;;  %v3443_v13 = vld [vmem:[#allocation2 + $0x8c] sm:$0x1] }
 0x154   : > { %3125 = vrot.lane.b32.xlu1 %v3041_v28, %s5174_s25  ;;  %2123 = vst.msk [vmem:[#allocation3 + $0x68] sm:$0xf] %vm2096_vm0, %v2053_v34  ;;  %v3479_v28 = vor.u32 %v3478_v57, %v5985_v5  ;;  %v3698_v36 = vshll.u32 %v3443_v13, 16 }
 0x155   : > { %3095 = vrot.lane.b32.xlu0 %v2989_v30, %s5174_s25  ;;  %v3440_v30 = vld [vmem:[#allocation2 + $0x80] sm:$0x1]  ;;  %v3662_v53 = vrot.slane %v3661_v23, 4 }
 0x156   : > { %v2055_v39 = vpop.permute.xlu1 %2054  ;;  %v3480_v44 = vrot.slane %v3479_v28, 4  ;;  %v3975_v28 = vld [vmem:[#allocation2 + $0x18] sm:$0xe] }
 0x157   : > { %2124 = vst.msk [vmem:[#allocation3 + $0x6c] sm:$0xf] %vm2096_vm0, %v2055_v39  ;;  %v2057_v41 = vpop.permute.xlu0 %2056  ;;  %v3682_v39 = vshll.u32 %v3441_v22, 16  ;;  %v3667_v58 = vsel %vm5333_vm11, %v3662_v53, %v3666_v29 }
 0x158   : > { %3097 = vrot.lane.b32.xlu1 %v2992_v35, %s5174_s25  ;;  %2125 = vst.msk [vmem:[#allocation3 + $0x70] sm:$0xf] %vm2096_vm0, %v2057_v41  ;;  %v3489_v35 = vrot.slane %v3487_v10, 4  ;;  %v3484_v41 = vrot.slane %v3482_v20, 5 }
 0x159   : > { %3127 = vrot.lane.b32.xlu0 %v3045_v40, %s5174_s25  ;;  %v3684_v56 = vrot.slane %v3682_v39, 5  ;;  %v3999_v39 = vld [vmem:[#allocation2 + $0x78] sm:$0xe] }
 0x15a   : > { %v2059_v46 = vpop.permute.xlu1 %2058  ;;  %v3493_v15 = vor.u32 %v3492_v1, %v3489_v35  ;;  %v4938_v35 = vrot.slane %v3975_v28, 9  ;;  %v2352_v1 = vld [vmem:[#allocation2 + $0x84] sm:$0xf]  ;;  %v4004_v28 = vld [vmem:[#allocation2 + $0x8c] sm:$0x1] }
 0x15b   : > { %2126 = vst.msk [vmem:[#allocation3 + $0x74] sm:$0xf] %vm2096_vm0, %v2059_v46  ;;  %v2061_v49 = vpop.permute.xlu0 %2060  ;;  %v3674_v46 = vshll.u32 %v3440_v30, 16  ;;  %v3700_v30 = vrot.slane %v3698_v36, 5  ;;  %v2614_v53 = vshll.u32 %v2352_v1, 16 }
 0x15c   : > { %3129 = vrot.lane.b32.xlu1 %v3048_v45, %s5174_s25  ;;  %2127 = vst.msk [vmem:[#allocation3 + $0x78] sm:$0xf] %vm2096_vm0, %v2061_v49  ;;  %v3671_v45 = vor.u32 %v3670_v21, %v3666_v29  ;;  %v3502_v49 = vrot.slane %v3500_v33, 4  ;;  %v3494_v48 = vrot.slane %v3493_v15, 4  ;;  %v4000_v21 = vld [vmem:[#allocation2 + $0x7c] sm:$0xf] }
 0x15d   : > { %3285 = vrot.lane.b32.xlu0 %v3221_v32, %s5175_s26  ;;  %v3498_v32 = vrot.slane %v3496_v31, 5  ;;  %v3977_v31 = vld [vmem:[#allocation2 + $0x20] sm:$0x1]  ;;  %v5127_v15 = vld [vmem:[%s6642_s3 + $0x8] sm:$0xff]   ;;  %v2616_v13 = vrot.slane %v2614_v53, 5 }
 0x15e   : > { %v2063_v62 = vpop.permute.xlu1 %2062  ;;  %v3672_v5 = vrot.slane %v3671_v45, 4  ;;  %v4076_v45 = vrot.slane %v3977_v31, 5 }
 0x15f   : > { %2128 = vst.msk [vmem:[#allocation3 + $0x7c] sm:$0xf] %vm2096_vm0, %v2063_v62  ;;  %v2194_v4 = vpop.permute.xlu0 %2193  ;;  %v3485_v62 = vsel %vm5333_vm11, %v3480_v44, %v3484_v41  ;;  %v3503_v6 = vor.u32 %v3502_v49, %v3498_v32  ;;  %v3499_v22 = vsel %vm5333_vm11, %v3494_v48, %v3498_v32  ;;  %v3979_v32 = vld [vmem:[#allocation2 + $0x28] sm:$0xf] }
 0x160   : > { %3287 = vrot.lane.b32.xlu1 %v3222_v51, %s5175_s26  ;;  %2290 = vst.msk [vmem:[#allocation3] sm:$0xf] %vm2289_vm1, %v2194_v4  ;;  %v3692_v51 = vshrl.u32 %v3442_v3, 16  ;;  %v3506_v4 = vshll.u32 %v3419_v47, 16  ;;  %v2611_v47 = vshrl.u32 %v2352_v1, 16 }
 0x161   : > { %3317 = vrot.lane.b32.xlu0 %v3237_v60, %s5175_s26  ;;  %v3676_v60 = vrot.slane %v3674_v46, 5  ;;  %v3504_v59 = vrot.slane %v3503_v6, 4  ;;  %v5126_v3 = vld [vmem:[%s6642_s3 + $0x10] ss:$0 sps:$4 sm:$0x33]  }
 0x162   : > { %v2196_v14 = vpop.permute.xlu1 %2195  ;;  %v3694_v61 = vrot.slane %v3692_v51, 4  ;;  %5091 = vmatprep.subr.msk.bf16.mxu0 %vm4493_vm2, %v5126_v3  ;;  %v3978_v46 = vld [vmem:[#allocation2 + $0x24] sm:$0xe]  ;;  %v4946_v51 = vrot.slane %v3999_v39, 9  ;;  %5092 = vmatprep.subr.msk.bf16.mxu1 %vm4493_vm2, %v5126_v3 }
 0x163   : > { %2291 = vst.msk [vmem:[#allocation3 + $0x4] sm:$0xf] %vm2289_vm1, %v2196_v14  ;;  %v2198_v17 = vpop.permute.xlu0 %2197  ;;  %v3508_v14 = vrot.slane %v3506_v4, 5  ;;  %v4080_v4 = vrot.slane %v3979_v32, 5 }
 0x164   : > { %3319 = vrot.lane.b32.xlu1 %v3238_v12, %s5175_s26  ;;  %2292 = vst.msk [vmem:[#allocation3 + $0x8] sm:$0xf] %vm2289_vm1, %v2198_v17  ;;  %v3685_v12 = vor.u32 %v3684_v56, %v3681_v55  ;;  %v3695_v10 = vor.u32 %v3694_v61, %v3690_v11  ;;  %v3976_v17 = vld [vmem:[#allocation2 + $0x1c] sm:$0xf]  ;;  %v2613_v61 = vrot.slane %v2611_v47, 4 }
 0x165   : > { %3289 = vrot.lane.b32.xlu0 %v3223_v63, %s5175_s26  ;;  %v3677_v63 = vsel %vm5333_vm11, %v3672_v5, %v3676_v60  ;;  %v4073_v29 = vrot.slane %v3976_v17, 5  ;;  %v4939_v60 = vrot.slane %v3978_v46, 9  ;;  %v3980_v5 = vld [vmem:[#allocation2 + $0x2c] sm:$0x1]  ;;  %v4002_v17 = vld [vmem:[#allocation2 + $0x84] sm:$0xe] }
 0x166   : > { %v2200_v34 = vpop.permute.xlu1 %2199  ;;  %v3696_v23 = vrot.slane %v3695_v10, 4  ;;  %v4947_v31 = vrot.slane %v4002_v17, 9 }
 0x167   : > { %2293 = vst.msk [vmem:[#allocation3 + $0xc] sm:$0xf] %vm2289_vm1, %v2200_v34  ;;  %v2202_v40 = vpop.permute.xlu0 %2201  ;;  %v4075_v41 = vrot.slane %v4073_v29, 4  ;;  %v4074_v50 = vsel %vm5663_vm14, %v4938_v35, %v4073_v29 }
 0x168   : > { %3291 = vrot.lane.b32.xlu1 %v3224_v19, %s5175_s26  ;;  %2294 = vst.msk [vmem:[#allocation3 + $0x10] sm:$0xf] %vm2289_vm1, %v2202_v40  ;;  %v3686_v19 = vrot.slane %v3685_v12, 4  ;;  %v4129_v40 = vrot.slane %v4000_v21, 5  ;;  %v3701_v44 = vsel %vm5333_vm11, %v3696_v23, %v3700_v30 }
 0x169   : > { %3321 = vrot.lane.b32.xlu0 %v3239_v16, %s5175_s26  ;;  %v3509_v16 = vsel %vm5333_vm11, %v3504_v59, %v3508_v14  ;;  %v4077_v6 = vsel %vm5663_vm14, %v4075_v41, %v4076_v45  ;;  %v5129_v59 = vld [vmem:[%s6642_s3] sm:$0xff]  }
 0x16a   : > { %v2204_v9 = vpop.permute.xlu1 %2203  ;;  %v3691_v34 = vsel %vm5333_vm11, %v3686_v19, %v3690_v11  ;;  %v4131_v56 = vrot.slane %v4129_v40, 4  ;;  %v4003_v11 = vld [vmem:[#allocation2 + $0x88] sm:$0xf]  ;;  %v4130_v12 = vsel %vm5663_vm14, %v4946_v51, %v4129_v40  ;;  %v4083_v19 = vrot.slane %v3980_v5, 5  ;;  %v2889_v5 = vld [vmem:[#allocation2 + $0x24] sm:$0xe] }
 0x16b   : > { %2295 = vst.msk [vmem:[#allocation3 + $0x14] sm:$0xf] %vm2289_vm1, %v2204_v9  ;;  %v2206_v38 = vpop.permute.xlu0 %2205  ;;  %v2353_v9 = vld [vmem:[#allocation2 + $0x88] sm:$0xf]  ;;  %v4139_v40 = vrot.slane %v4004_v28, 5 }
 0x16c   : > { %3323 = vrot.lane.b32.xlu1 %v3240_v42, %s5175_s26  ;;  %2296 = vst.msk [vmem:[#allocation3 + $0x18] sm:$0xf] %vm2289_vm1, %v2206_v38  ;;  %v4001_v42 = vld [vmem:[#allocation2 + $0x80] sm:$0x1]  ;;  %v2893_v28 = vld [vmem:[#allocation2 + $0x34] sm:$0xf] }
 0x16d   : > { %3846 = vrot.lane.b32.xlu0 %v3475_v43, %s5176_s27  ;;  %v4495_v43 = vsel %vm4493_vm2, %v5126_v3, 0  ;;  %v4132_v38 = vrot.slane %v4001_v42, 5 }
 0x16e   : > { %v2208_v57 = vpop.permute.xlu1 %2207  ;;  %5048 = vmatpush3.bf16.msra.mxu0 %v4495_v43  ;;  %5088 = vmatpush3.bf16.msra.mxu1 %v4495_v43 }
 0x16f   : > { %2297 = vst.msk [vmem:[#allocation3 + $0x1c] sm:$0xf] %vm2289_vm1, %v2208_v57  ;;  %v2210_v8 = vpop.permute.xlu0 %2209  ;;  %5049 = vmatprep.subr.bf16.mxu0 %v5127_v15  ;;  %v2620_v57 = vshll.u32 %v2353_v9, 16  ;;  %5086 = vmatprep.subr.bf16.mxu1 %v5127_v15  ;;  %v4133_v36 = vsel %vm5663_vm14, %v4131_v56, %v4132_v38  ;;  %v2890_v56 = vld [vmem:[#allocation2 + $0x28] sm:$0xf] }
 0x170   : > { %3848 = vrot.lane.b32.xlu1 %v3485_v62, %s5176_s27  ;;  %2298 = vst.msk [vmem:[#allocation3 + $0x20] sm:$0xf] %vm2289_vm1, %v2210_v8  ;;  %v2355_v62 = vld [vmem:[#allocation2 + $0x90] sm:$0xf]  ;;  %v2356_v8 = vld [vmem:[#allocation2 + $0x94] sm:$0xf] }
 0x171   : > { %3878 = vrot.lane.b32.xlu0 %v3667_v58, %s5176_s27  ;;  %v2624_v58 = vshrl.u32 %v2353_v9, 16  ;;  %v2635_v14 = vshrl.u32 %v2355_v62, 16  ;;  %v2622_v29 = vrot.slane %v2620_v57, 5  ;;  %v2648_v23 = vshrl.u32 %v2356_v8, 16 }
 0x172   : > { %v2212_v20 = vpop.permute.xlu1 %2211  ;;  %5050 = vmatpush3.bf16.msra.mxu0 %v5127_v15  ;;  %5089 = vmatpush3.bf16.msra.mxu1 %v5127_v15 }
 0x173   : > { %2299 = vst.msk [vmem:[#allocation3 + $0x24] sm:$0xf] %vm2289_vm1, %v2212_v20  ;;  %v2214_v25 = vpop.permute.xlu0 %2213  ;;  %v4081_v20 = vsel %vm5663_vm14, %v4939_v60, %v4080_v4  ;;  %5051 = vmatprep.subr.bf16.mxu0 %v5129_v59  ;;  %v2626_v21 = vrot.slane %v2624_v58, 4  ;;  %v2637_v35 = vrot.slane %v2635_v14, 4  ;;  %5087 = vmatprep.subr.bf16.mxu1 %v5129_v59  ;;  %v2891_v58 = vld [vmem:[#allocation2 + $0x2c] sm:$0x1] }
 0x174   : > { %3880 = vrot.lane.b32.xlu1 %v3677_v63, %s5176_s27  ;;  %2300 = vst.msk [vmem:[#allocation3 + $0x28] sm:$0xf] %vm2289_vm1, %v2214_v25  ;;  %v2638_v63 = vshll.u32 %v2355_v62, 16  ;;  %v4136_v25 = vrot.slane %v4003_v11, 5 }
 0x175   : > { %3850 = vrot.lane.b32.xlu0 %v3499_v22, %s5176_s27  ;;  %v4082_v22 = vrot.slane %v4080_v4, 4  ;;  %v2627_v41 = vor.u32 %v2626_v21, %v2622_v29  ;;  %v2892_v21 = vld [vmem:[#allocation2 + $0x30] sm:$0xe] }
 0x176   : > { %v2216_v33 = vpop.permute.xlu1 %2215  ;;  %5052 = vmatpush3.bf16.msra.mxu0 %v5129_v59  ;;  %v2640_v1 = vrot.slane %v2638_v63, 5  ;;  %5090 = vmatpush3.bf16.msra.mxu1 %v5129_v59  ;;  %v4138_v39 = vrot.slane %v4136_v25, 4  ;;  %v4137_v46 = vsel %vm5663_vm14, %v4947_v31, %v4136_v25  ;;  %v2913_v63 = vld [vmem:[#allocation2 + $0x84] sm:$0xe]  ;;  %v2915_v25 = vld [vmem:[#allocation2 + $0x8c] sm:$0x1] }
 0x177   : > { %2301 = vst.msk [vmem:[#allocation3 + $0x2c] sm:$0xf] %vm2289_vm1, %v2216_v33  ;;  %v2218_v37 = vpop.permute.xlu0 %2217  ;;  %v2617_v33 = vor.u32 %v2616_v13, %v2613_v61  ;;  %v2628_v9 = vrot.slane %v2627_v41, 4  ;;  %v4924_v13 = vrot.slane %v2889_v5, 9  ;;  %v3054_v31 = vrot.slane %v2915_v25, 5 }
 0x178   : > { %3852 = vrot.lane.b32.xlu1 %v3509_v16, %s5176_s27  ;;  %2302 = vst.msk [vmem:[#allocation3 + $0x30] sm:$0xf] %vm2289_vm1, %v2218_v37  ;;  %v2644_v16 = vshll.u32 %v2356_v8, 16  ;;  %v4084_v37 = vsel %vm5663_vm14, %v4082_v22, %v4083_v19  ;;  %v2641_v47 = vor.u32 %v2640_v1, %v2637_v35  ;;  %v4140_v51 = vsel %vm5663_vm14, %v4138_v39, %v4139_v40  ;;  %v2914_v8 = vld [vmem:[#allocation2 + $0x88] sm:$0xf] }
 0x179   : > { %3882 = vrot.lane.b32.xlu0 %v3691_v34, %s5176_s27  ;;  %v2354_v34 = vld [vmem:[#allocation2 + $0x8c] sm:$0x1]  ;;  %v2618_v32 = vrot.slane %v2617_v33, 4  ;;  %v3051_v17 = vrot.slane %v2914_v8, 5  ;;  %v4932_v19 = vrot.slane %v2913_v63, 9  ;;  %v3002_v33 = vrot.slane %v2893_v28, 5 }
 0x17a   : > { %v2220_v49 = vpop.permute.xlu1 %2219  ;;  %v2630_v42 = vshll.u32 %v2354_v34, 16  ;;  %v2646_v43 = vrot.slane %v2644_v16, 5  ;;  %v2642_v60 = vrot.slane %v2641_v47, 4  ;;  %v2917_v39 = vld [vmem:[#allocation2 + $0x94] sm:$0xf] }
 0x17b   : > { %2303 = vst.msk [vmem:[#allocation3 + $0x34] sm:$0xf] %vm2289_vm1, %v2220_v49  ;;  %v2222_v55 = vpop.permute.xlu0 %2221  ;;  %v2357_v49 = vld [vmem:[#allocation2 + $0x98] sm:$0x1]  ;;  %v2623_v62 = vsel %vm5333_vm11, %v2618_v32, %v2622_v29  ;;  %v3052_v1 = vsel %vm5663_vm14, %v4932_v19, %v3051_v17  ;;  %v2916_v41 = vld [vmem:[#allocation2 + $0x90] sm:$0xe] }
 0x17c   : > { %3884 = vrot.lane.b32.xlu1 %v3701_v44, %s5176_s27  ;;  %2304 = vst.msk [vmem:[#allocation3 + $0x38] sm:$0xf] %vm2289_vm1, %v2222_v55  ;;  %v2650_v44 = vrot.slane %v2648_v23, 4  ;;  %v2632_v53 = vrot.slane %v2630_v42, 5  ;;  %v2654_v55 = vshll.u32 %v2357_v49, 16  ;;  %v4933_v47 = vrot.slane %v2916_v41, 9 }
 0x17d   : > { %4183 = vrot.lane.b32.xlu0 %v4074_v50, %s5177_s6  ;;  %v506_v23 = vld [vmem:[#allocation2 + $0xc8] sm:$0x1]  ;;  %v2918_v49 = vld [vmem:[#allocation2 + $0x98] sm:$0x1]  ;;  %v3226_v63 = vld [vmem:[#allocation2 + $0x34] sm:$0xf] }
 0x17e   : > { %v2224_v48 = vpop.permute.xlu1 %2223  ;;  %v2651_v15 = vor.u32 %v2650_v44, %v2646_v43  ;;  %v2633_v11 = vsel %vm5333_vm11, %v2628_v9, %v2632_v53  ;;  %v2656_v57 = vrot.slane %v2654_v55, 5  ;;  %v507_v34 = vsel %vm5227_vm4, 0, %v506_v23  ;;  %v3420_v55 = vld [vmem:[#allocation2 + $0x30] sm:$0xf]  ;;  %v3423_v25 = vld [vmem:[#allocation2 + $0x3c] sm:$0xf] }
 0x17f   : > { %2305 = vst.msk [vmem:[#allocation3 + $0x3c] sm:$0xf] %vm2289_vm1, %v2224_v48  ;;  %v2226_v10 = vpop.permute.xlu0 %2225  ;;  %508 = vst [vmem:[#allocation2 + $0xc8] sm:$0x1] %v507_v34  ;;  %v3511_v5 = vshrl.u32 %v3420_v55, 16 }
 0x180   : > { %4185 = vrot.lane.b32.xlu1 %v4077_v6, %s5177_s6  ;;  %2306 = vst.msk [vmem:[#allocation3 + $0x40] sm:$0xf] %vm2289_vm1, %v2226_v10  ;;  %v2995_v6 = vrot.slane %v2890_v56, 5  ;;  %v2652_v61 = vrot.slane %v2651_v15, 4  ;;  %v2998_v10 = vrot.slane %v2891_v58, 5  ;;  %v3061_v15 = vrot.slane %v2918_v49, 5 }
 0x181   : > { %4215 = vrot.lane.b32.xlu0 %v4130_v12, %s5177_s6  ;;  %v2647_v12 = vsel %vm5333_vm11, %v2642_v60, %v2646_v43  ;;  %v3004_v43 = vrot.slane %v3002_v33, 4  ;;  %v3444_v58 = vld [vmem:[#allocation2 + $0x90] sm:$0xf]  ;;  %v3447_v41 = vld [vmem:[#allocation2 + $0x9c] sm:$0xf] }
 0x182   : > { %v2228_v30 = vpop.permute.xlu1 %2227  ;;  %v2997_v59 = vrot.slane %v2995_v6, 4  ;;  %v2996_v22 = vsel %vm5663_vm14, %v4924_v13, %v2995_v6  ;;  %v3514_v6 = vshll.u32 %v3420_v55, 16  ;;  %v3513_v13 = vrot.slane %v3511_v5, 4  ;;  %v3446_v49 = vld [vmem:[#allocation2 + $0x98] sm:$0x1] }
 0x183   : > { %2307 = vst.msk [vmem:[#allocation3 + $0x44] sm:$0xf] %vm2289_vm1, %v2228_v30  ;;  %v2230_v3 = vpop.permute.xlu0 %2229  ;;  %v3053_v30 = vrot.slane %v3051_v17, 4  ;;  %v3448_v55 = vld [vmem:[#allocation2 + $0xa0] sm:$0xf] }
 0x184   : > { %4217 = vrot.lane.b32.xlu1 %v4133_v36, %s5177_s6  ;;  %2308 = vst.msk [vmem:[#allocation3 + $0x48] sm:$0xf] %vm2289_vm1, %v2230_v3  ;;  %v2657_v36 = vsel %vm5333_vm11, %v2652_v61, %v2656_v57  ;;  %v2999_v16 = vsel %vm5663_vm14, %v2997_v59, %v2998_v10  ;;  %v4925_v3 = vrot.slane %v2892_v21, 9  ;;  %v3225_v57 = vld [vmem:[#allocation2 + $0x30] sm:$0xf]  ;;  %v3516_v8 = vrot.slane %v3514_v6, 5 }
 0x185   : > { %4187 = vrot.lane.b32.xlu0 %v4081_v20, %s5177_s6  ;;  %v3055_v42 = vsel %vm5663_vm14, %v3053_v30, %v3054_v31  ;;  %v3445_v59 = vld [vmem:[#allocation2 + $0x94] sm:$0xf]  ;;  %v3703_v10 = vshrl.u32 %v3444_v58, 16 }
 0x186   : > { %v2232_v45 = vpop.permute.xlu1 %2231  ;;  %v3003_v32 = vsel %vm5663_vm14, %v4925_v3, %v3002_v33  ;;  %v1075_v56 = vld [vmem:[#allocation2 + $0xc8] sm:$0x1]  ;;  %v3517_v28 = vor.u32 %v3516_v8, %v3513_v13  ;;  %v3716_v23 = vshrl.u32 %v3445_v59, 16  ;;  %v3242_v30 = vld [vmem:[#allocation2 + $0x94] sm:$0xf]  ;;  %v3535_v3 = vshrl.u32 %v3423_v25, 16 }
 0x187   : > { %2309 = vst.msk [vmem:[#allocation3 + $0x4c] sm:$0xf] %vm2289_vm1, %v2232_v45  ;;  %v2234_v50 = vpop.permute.xlu0 %2233  ;;  %v3058_v45 = vrot.slane %v2917_v39, 5  ;;  %v3705_v31 = vrot.slane %v3703_v10, 4 }
 0x188   : > { %4189 = vrot.lane.b32.xlu1 %v4084_v37, %s5177_s6  ;;  %2310 = vst.msk [vmem:[#allocation3 + $0x50] sm:$0xf] %vm2289_vm1, %v2234_v50  ;;  %v2894_v37 = vld [vmem:[#allocation2 + $0x38] sm:$0x1]  ;;  %v913_v50 = vrot.slane %v5731_v7, 4 }
 0x189   : > { %4219 = vrot.lane.b32.xlu0 %v4137_v46, %s5177_s6  ;;  %v3005_v44 = vrot.slane %v2894_v37, 5  ;;  %v3060_v53 = vrot.slane %v3058_v45, 4  ;;  %v3059_v7 = vsel %vm5663_vm14, %v4933_v47, %v3058_v45  ;;  %v3538_v37 = vshll.u32 %v3423_v25, 16 }
 0x18a   : > { %v2236_v38 = vpop.permute.xlu1 %2235  ;;  %v1076_v60 = vsel %vm5222_vm3, %v913_v50, %v1075_v56  ;;  %v3727_v56 = vshrl.u32 %v3447_v41, 16 }
 0x18b   : > { %2311 = vst.msk [vmem:[#allocation3 + $0x54] sm:$0xf] %vm2289_vm1, %v2236_v38  ;;  %v2238_v4 = vpop.permute.xlu0 %2237  ;;  %v3006_v9 = vsel %vm5663_vm14, %v3004_v43, %v3005_v44  ;;  %1077 = vst [vmem:[#allocation2 + $0xc8] sm:$0x1] %v1076_v60  ;;  %v3518_v43 = vrot.slane %v3517_v28, 4 }
 0x18c   : > { %4221 = vrot.lane.b32.xlu1 %v4140_v51, %s5177_s6  ;;  %2312 = vst.msk [vmem:[#allocation3 + $0x58] sm:$0xf] %vm2289_vm1, %v2238_v4  ;;  %v3421_v4 = vld [vmem:[#allocation2 + $0x34] sm:$0xf]  ;;  %v3244_v60 = vld [vmem:[#allocation2 + $0xa0] sm:$0xf] }
 0x18d   : > { %2794 = vrot.lane.b32.xlu0 %v2623_v62, %s5173_s24 }
 0x18e   : > { %v2240_v48 = vpop.permute.xlu1 %2239 }
 0x18f   : > { %2313 = vst.msk [vmem:[#allocation3 + $0x5c] sm:$0xf] %vm2289_vm1, %v2240_v48  ;;  %v2242_v14 = vpop.permute.xlu0 %2241 }
 0x190   : > { %2796 = vrot.lane.b32.xlu1 %v2633_v11, %s5173_s24  ;;  %2314 = vst.msk [vmem:[#allocation3 + $0x60] sm:$0xf] %vm2289_vm1, %v2242_v14  ;;  %v3062_v11 = vsel %vm5663_vm14, %v3060_v53, %v3061_v15  ;;  %v3524_v14 = vshrl.u32 %v3421_v4, 16  ;;  %v3537_v53 = vrot.slane %v3535_v3, 4  ;;  %v3540_v15 = vrot.slane %v3538_v37, 5 }
 0x191   : > { %2798 = vrot.lane.b32.xlu0 %v2647_v12, %s5173_s24  ;;  %v3520_v12 = vshll.u32 %v3421_v4, 16  ;;  %v3982_v37 = vld [vmem:[#allocation2 + $0x34] sm:$0xf] }
 0x192   : > { %v2244_v20 = vpop.permute.xlu1 %2243  ;;  %v3526_v21 = vrot.slane %v3524_v14, 4  ;;  %v3541_v14 = vor.u32 %v3540_v15, %v3537_v53 }
 0x193   : > { %2315 = vst.msk [vmem:[#allocation3 + $0x64] sm:$0xf] %vm2289_vm1, %v2244_v20  ;;  %v2246_v29 = vpop.permute.xlu0 %2245  ;;  %v3241_v20 = vld [vmem:[#allocation2 + $0x90] sm:$0xf]  ;;  %v6134_v19 = vrot.slane %v3520_v12, 5  ;;  %v3740_v12 = vshrl.u32 %v3448_v55, 16 }
 0x194   : > { %2800 = vrot.lane.b32.xlu1 %v2657_v36, %s5173_s24  ;;  %2316 = vst.msk [vmem:[#allocation3 + $0x68] sm:$0xf] %vm2289_vm1, %v2246_v29  ;;  %v3706_v36 = vshll.u32 %v3444_v58, 16  ;;  %v3422_v29 = vld [vmem:[#allocation2 + $0x38] sm:$0x1] }
 0x195   : > { %3099 = vrot.lane.b32.xlu0 %v2996_v22, %s5174_s25  ;;  %v3527_v44 = vor.u32 %v3526_v21, %v6134_v19  ;;  %v3523_v4 = vsel %vm5333_vm11, %v3518_v43, %v6134_v19  ;;  %v3742_v28 = vrot.slane %v3740_v12, 4 }
 0x196   : > { %v2248_v35 = vpop.permute.xlu1 %2247  ;;  %v3708_v33 = vrot.slane %v3706_v36, 5 }
 0x197   : > { %2317 = vst.msk [vmem:[#allocation3 + $0x6c] sm:$0xf] %vm2289_vm1, %v2248_v35  ;;  %v2250_v40 = vpop.permute.xlu0 %2249  ;;  %v3227_v35 = vld [vmem:[#allocation2 + $0x3c] sm:$0xf]  ;;  %v3528_v5 = vrot.slane %v3527_v44, 4 }
 0x198   : > { %3101 = vrot.lane.b32.xlu1 %v2999_v16, %s5174_s25  ;;  %2318 = vst.msk [vmem:[#allocation3 + $0x70] sm:$0xf] %vm2289_vm1, %v2250_v40  ;;  %v3712_v16 = vshll.u32 %v3445_v59, 16  ;;  %v3530_v40 = vshll.u32 %v3422_v29, 16  ;;  %v3709_v47 = vor.u32 %v3708_v33, %v3705_v31 }
 0x199   : > { %3131 = vrot.lane.b32.xlu0 %v3052_v1, %s5174_s25  ;;  %v3424_v1 = vld [vmem:[#allocation2 + $0x40] sm:$0xf] }
 0x19a   : > { %v2252_v46 = vpop.permute.xlu1 %2251  ;;  %v3714_v45 = vrot.slane %v3712_v16, 5  ;;  %v3544_v50 = vshll.u32 %v3424_v1, 16  ;;  %v3710_v8 = vrot.slane %v3709_v47, 4  ;;  %v3542_v16 = vrot.slane %v3541_v14, 4 }
 0x19b   : > { %2319 = vst.msk [vmem:[#allocation3 + $0x74] sm:$0xf] %vm2289_vm1, %v2252_v46  ;;  %v2254_v51 = vpop.permute.xlu0 %2253  ;;  %v3718_v46 = vrot.slane %v3716_v23, 4 }
 0x19c   : > { %3133 = vrot.lane.b32.xlu1 %v3055_v42, %s5174_s25  ;;  %2320 = vst.msk [vmem:[#allocation3 + $0x78] sm:$0xf] %vm2289_vm1, %v2254_v51  ;;  %v3228_v42 = vld [vmem:[#allocation2 + $0x40] sm:$0xf]  ;;  %v3548_v51 = vshrl.u32 %v3424_v1, 16  ;;  %v3715_v21 = vsel %vm5333_vm11, %v3710_v8, %v3714_v45 }
 0x19d   : > { %3103 = vrot.lane.b32.xlu0 %v3003_v32, %s5174_s25  ;;  %v3243_v32 = vld [vmem:[#allocation2 + $0x9c] sm:$0xf]  ;;  %v3719_v6 = vor.u32 %v3718_v46, %v3714_v45  ;;  %v3981_v45 = vld [vmem:[#allocation2 + $0x30] sm:$0xe]  ;;  %v4087_v46 = vrot.slane %v3982_v37, 5 }
 0x19e   : > { %v2256_v38 = vpop.permute.xlu1 %2255  ;;  %v3550_v58 = vrot.slane %v3548_v51, 4  ;;  %v3983_v51 = vld [vmem:[#allocation2 + $0x38] sm:$0x1]  ;;  %v4940_v15 = vrot.slane %v3981_v45, 9 }
 0x19f   : > { %2321 = vst.msk [vmem:[#allocation3 + $0x7c] sm:$0xf] %vm2289_vm1, %v2256_v38  ;;  %v2755_v62 = vpop.permute.xlu0 %2754  ;;  %v3730_v38 = vshll.u32 %v3447_v41, 16 }
 0x1a0   : > { %3105 = vrot.lane.b32.xlu1 %v3006_v9, %s5174_s25  ;;  %2851 = vst.msk [vmem:[#allocation3] sm:$0xf] %vm2850_vm5, %v2755_v62  ;;  %v3532_v62 = vrot.slane %v3530_v40, 5 }
 0x1a1   : > { %3135 = vrot.lane.b32.xlu0 %v3059_v7, %s5174_s25  ;;  %v3732_v59 = vrot.slane %v3730_v38, 5 }
 0x1a2   : > { %v2757_v61 = vpop.permute.xlu1 %2756  ;;  %v3533_v36 = vsel %vm5333_vm11, %v3528_v5, %v3532_v62  ;;  %v4089_v62 = vrot.slane %v4087_v46, 4 }
 0x1a3   : > { %2852 = vst.msk [vmem:[#allocation3 + $0x4] sm:$0xf] %vm2850_vm5, %v2757_v61  ;;  %v2759_v48 = vpop.permute.xlu0 %2758  ;;  %v3546_v61 = vrot.slane %v3544_v50, 5 }
 0x1a4   : > { %3137 = vrot.lane.b32.xlu1 %v3062_v11, %s5174_s25  ;;  %2853 = vst.msk [vmem:[#allocation3 + $0x8] sm:$0xf] %vm2850_vm5, %v2759_v48  ;;  %v3722_v11 = vshll.u32 %v3446_v49, 16  ;;  %v3736_v48 = vshll.u32 %v3448_v55, 16  ;;  %v4005_v55 = vld [vmem:[#allocation2 + $0x90] sm:$0xe] }
 0x1a5   : > { %3293 = vrot.lane.b32.xlu0 %v3225_v57, %s5175_s26  ;;  %v3425_v57 = vld [vmem:[#allocation2 + $0x44] sm:$0x1]  ;;  %v3551_v19 = vor.u32 %v3550_v58, %v3546_v61  ;;  %v3547_v41 = vsel %vm5333_vm11, %v3542_v16, %v3546_v61  ;;  %v3985_v61 = vld [vmem:[#allocation2 + $0x40] sm:$0xf]  ;;  %v4088_v58 = vsel %vm5663_vm14, %v4940_v15, %v4087_v46 }
 0x1a6   : > { %v2761_v17 = vpop.permute.xlu1 %2760  ;;  %v3738_v25 = vrot.slane %v3736_v48, 5  ;;  %v2359_v48 = vld [vmem:[#allocation2 + $0xa0] sm:$0xf] }
 0x1a7   : > { %2854 = vst.msk [vmem:[#allocation3 + $0xc] sm:$0xf] %vm2850_vm5, %v2761_v17  ;;  %v2763_v22 = vpop.permute.xlu0 %2762  ;;  %v3724_v17 = vrot.slane %v3722_v11, 5  ;;  %v3984_v11 = vld [vmem:[#allocation2 + $0x3c] sm:$0xe]  ;;  %v2668_v52 = vshll.u32 %v2359_v48, 16 }
 0x1a8   : > { %3295 = vrot.lane.b32.xlu1 %v3226_v63, %s5175_s26  ;;  %2855 = vst.msk [vmem:[#allocation3 + $0x10] sm:$0xf] %vm2850_vm5, %v2763_v22  ;;  %v3729_v63 = vrot.slane %v3727_v56, 4  ;;  %v3720_v22 = vrot.slane %v3719_v6, 4  ;;  %v3743_v1 = vor.u32 %v3742_v28, %v3738_v25  ;;  %v4948_v6 = vrot.slane %v4005_v55, 9 }
 0x1a9   : > { %3325 = vrot.lane.b32.xlu0 %v3241_v20, %s5175_s26  ;;  %v3554_v20 = vshll.u32 %v3425_v57, 16 }
 0x1aa   : > { %v2765_v34 = vpop.permute.xlu1 %2764  ;;  %v3733_v23 = vor.u32 %v3732_v59, %v3729_v63  ;;  %v3744_v49 = vrot.slane %v3743_v1, 4 }
 0x1ab   : > { %2856 = vst.msk [vmem:[#allocation3 + $0x14] sm:$0xf] %vm2850_vm5, %v2765_v34  ;;  %v2767_v39 = vpop.permute.xlu0 %2766  ;;  %v3556_v33 = vrot.slane %v3554_v20, 5  ;;  %v3725_v34 = vsel %vm5333_vm11, %v3720_v22, %v3724_v17  ;;  %v4941_v20 = vrot.slane %v3984_v11, 9  ;;  %v4094_v22 = vrot.slane %v3985_v61, 5 }
 0x1ac   : > { %3327 = vrot.lane.b32.xlu1 %v3242_v30, %s5175_s26  ;;  %2857 = vst.msk [vmem:[#allocation3 + $0x18] sm:$0xf] %vm2850_vm5, %v2767_v39  ;;  %v3449_v30 = vld [vmem:[#allocation2 + $0xa4] sm:$0x1]  ;;  %v453_v39 = vld [vmem:[#allocation2 + $0xcc] sm:$0x1] }
 0x1ad   : > { %3297 = vrot.lane.b32.xlu0 %v3227_v35, %s5175_s26  ;;  %v3552_v35 = vrot.slane %v3551_v19, 4  ;;  %v3746_v3 = vshll.u32 %v3449_v30, 16  ;;  %v454_v43 = vsel %vm5222_vm3, 0, %v453_v39  ;;  %v3986_v19 = vld [vmem:[#allocation2 + $0x44] sm:$0x1]  ;;  %v4095_v2 = vsel %vm5663_vm14, %v4941_v20, %v4094_v22 }
 0x1ae   : > { %v2769_v9 = vpop.permute.xlu1 %2768  ;;  %455 = vst [vmem:[#allocation2 + $0xcc] sm:$0x1] %v454_v43  ;;  %v4096_v37 = vrot.slane %v4094_v22, 4  ;;  %v4097_v39 = vrot.slane %v3986_v19, 5  ;;  %v2363_v61 = vld [vmem:[#allocation2 + $0xb0] sm:$0x1] }
 0x1af   : > { %2858 = vst.msk [vmem:[#allocation3 + $0x1c] sm:$0xf] %vm2850_vm5, %v2769_v9  ;;  %v2771_v7 = vpop.permute.xlu0 %2770  ;;  %v3557_v47 = vsel %vm5333_vm11, %v3552_v35, %v3556_v33  ;;  %v3748_v50 = vrot.slane %v3746_v3, 5  ;;  %v4008_v3 = vld [vmem:[#allocation2 + $0x9c] sm:$0xe]  ;;  %v2702_v18 = vshll.u32 %v2363_v61, 16 }
 0x1b0   : > { %3299 = vrot.lane.b32.xlu1 %v3228_v42, %s5175_s26  ;;  %2859 = vst.msk [vmem:[#allocation3 + $0x20] sm:$0xf] %vm2850_vm5, %v2771_v7  ;;  %v3734_v42 = vrot.slane %v3733_v23, 4  ;;  %v2358_v7 = vld [vmem:[#allocation2 + $0x9c] sm:$0xf] }
 0x1b1   : > { %3329 = vrot.lane.b32.xlu0 %v3243_v32, %s5175_s26  ;;  %v4006_v32 = vld [vmem:[#allocation2 + $0x94] sm:$0xf]  ;;  %v3749_v5 = vsel %vm5333_vm11, %v3744_v49, %v3748_v50  ;;  %v2659_v12 = vshrl.u32 %v2358_v7, 16  ;;  %v2360_v49 = vld [vmem:[#allocation2 + $0xa4] sm:$0x1]  ;;  %v2704_v22 = vrot.slane %v2702_v18, 5 }
 0x1b2   : > { %v2773_v13 = vpop.permute.xlu1 %2772  ;;  %v3739_v53 = vsel %vm5333_vm11, %v3734_v42, %v3738_v25  ;;  %v4143_v38 = vrot.slane %v4006_v32, 5  ;;  %v509_v25 = vld [vmem:[#allocation2 + $0xd4] sm:$0x1]  ;;  %v2670_v42 = vrot.slane %v2668_v52, 5  ;;  %v4949_v32 = vrot.slane %v4008_v3, 9 }
 0x1b3   : > { %2860 = vst.msk [vmem:[#allocation3 + $0x24] sm:$0xf] %vm2850_vm5, %v2773_v13  ;;  %v2775_v10 = vpop.permute.xlu0 %2774  ;;  %v2662_v13 = vshll.u32 %v2358_v7, 16  ;;  %v2661_v23 = vrot.slane %v2659_v12, 4  ;;  %v2897_v19 = vld [vmem:[#allocation2 + $0x44] sm:$0x1] }
 0x1b4   : > { %3331 = vrot.lane.b32.xlu1 %v3244_v60, %s5175_s26  ;;  %2861 = vst.msk [vmem:[#allocation3 + $0x28] sm:$0xf] %vm2850_vm5, %v2775_v10  ;;  %v4090_v60 = vrot.slane %v3983_v51, 5  ;;  %v4145_v63 = vrot.slane %v4143_v38, 4  ;;  %v2361_v10 = vld [vmem:[#allocation2 + $0xa8] sm:$0xf]  ;;  %v4144_v28 = vsel %vm5663_vm14, %v4948_v6, %v4143_v38 }
 0x1b5   : > { %3854 = vrot.lane.b32.xlu0 %v3523_v4, %s5176_s27  ;;  %v4007_v4 = vld [vmem:[#allocation2 + $0x98] sm:$0x1]  ;;  %v1154_v8 = vld [vmem:[#allocation2 + $0xcc] sm:$0xf]  ;;  %v2664_v30 = vrot.slane %v2662_v13, 5  ;;  %v2683_v33 = vshrl.u32 %v2361_v10, 16 }
 0x1b6   : > { %v2777_v29 = vpop.permute.xlu1 %2776  ;;  %v4146_v59 = vrot.slane %v4007_v4, 5  ;;  %v4091_v17 = vsel %vm5663_vm14, %v4089_v62, %v4090_v60  ;;  %v2678_v38 = vshll.u32 %v2360_v49, 16  ;;  %v2920_v52 = vld [vmem:[#allocation2 + $0xa0] sm:$0xf]  ;;  %v2899_v3 = vld [vmem:[#allocation2 + $0x4c] sm:$0xf] }
 0x1b7   : > { %2862 = vst.msk [vmem:[#allocation3 + $0x2c] sm:$0xf] %vm2850_vm5, %v2777_v29  ;;  %v2787_v31 = vpop.permute.xlu0 %2786  ;;  %v4009_v29 = vld [vmem:[#allocation2 + $0xa0] sm:$0xf]  ;;  %v2685_v50 = vrot.slane %v2683_v33, 4 }
 0x1b8   : > { %3856 = vrot.lane.b32.xlu1 %v3533_v36, %s5176_s27  ;;  %2867 = vst.msk [vmem:[#allocation3 + $0x40] sm:$0xf] %vm2850_vm5, %v2787_v31  ;;  %v1155_v36 = vsel %vm5286_vm8, %v5259_v24, %v1154_v8  ;;  %v2672_v24 = vshrl.u32 %v2359_v48, 16  ;;  %v2362_v31 = vld [vmem:[#allocation2 + $0xac] sm:$0xf]  ;;  %v4147_v1 = vsel %vm5663_vm14, %v4145_v63, %v4146_v59  ;;  %v2680_v13 = vrot.slane %v2678_v38, 5 }
 0x1b9   : > { %3886 = vrot.lane.b32.xlu0 %v3715_v21, %s5176_s27  ;;  %1156 = vst [vmem:[#allocation2 + $0xcc] sm:$0xf] %v1155_v36  ;;  %v510_v21 = vsel %vm5227_vm4, 0, %v509_v25  ;;  %v2696_v45 = vshrl.u32 %v2362_v31, 16  ;;  %vm3381_vm4 = vcmask 224448   ;;  %vm4444_vm8 = vcmask 293888  }
 0x1ba   : > { %v2789_v40 = vpop.permute.xlu1 %2788  ;;  %511 = vst [vmem:[#allocation2 + $0xd4] sm:$0x1] %v510_v21  ;;  %v2674_v43 = vrot.slane %v2672_v24, 4  ;;  %v2919_v21 = vld [vmem:[#allocation2 + $0x9c] sm:$0xe] }
 0x1bb   : > { %2868 = vst.msk [vmem:[#allocation3 + $0x44] sm:$0xf] %vm2850_vm5, %v2789_v40  ;;  %v2791_v44 = vpop.permute.xlu0 %2790  ;;  %v4150_v40 = vrot.slane %v4009_v29, 5  ;;  %v2698_v62 = vrot.slane %v2696_v45, 4  ;;  %v2922_v49 = vld [vmem:[#allocation2 + $0xa8] sm:$0xe] }
 0x1bc   : > { %3888 = vrot.lane.b32.xlu1 %v3725_v34, %s5176_s27  ;;  %2869 = vst.msk [vmem:[#allocation3 + $0x48] sm:$0xf] %vm2850_vm5, %v2791_v44  ;;  %v2686_v34 = vshll.u32 %v2361_v10, 16  ;;  %v2692_v44 = vshll.u32 %v2362_v31, 16  ;;  %v2895_v10 = vld [vmem:[#allocation2 + $0x3c] sm:$0xe] }
 0x1bd   : > { %3858 = vrot.lane.b32.xlu0 %v3547_v41, %s5176_s27  ;;  %v4010_v41 = vld [vmem:[#allocation2 + $0xa4] sm:$0x1]  ;;  %v4152_v15 = vrot.slane %v4150_v40, 4  ;;  %v4926_v29 = vrot.slane %v2895_v10, 9  ;;  %v3065_v31 = vrot.slane %v2920_v52, 5 }
 0x1be   : > { %v2793_v9 = vpop.permute.xlu1 %2792  ;;  %v2688_v51 = vrot.slane %v2686_v34, 5  ;;  %v4153_v55 = vrot.slane %v4010_v41, 5  ;;  %v2694_v7 = vrot.slane %v2692_v44, 5  ;;  %v2924_v38 = vld [vmem:[#allocation2 + $0xb0] sm:$0x1] }
 0x1bf   : > { %2870 = vst.msk [vmem:[#allocation3 + $0x4c] sm:$0xf] %vm2850_vm5, %v2793_v9  ;;  %v3092_v56 = vpop.permute.xlu0 %3091  ;;  %v3450_v18 = vld [vmem:[#allocation2 + $0xa8] sm:$0xf] }
 0x1c0   : > { %3860 = vrot.lane.b32.xlu1 %v3557_v47, %s5176_s27  ;;  %3188 = vst.msk [vmem:[#allocation3] sm:$0xf] %vm3187_vm6, %v3092_v56  ;;  %v2665_v47 = vor.u32 %v2664_v30, %v2661_v23  ;;  %v2675_v56 = vor.u32 %v2674_v43, %v2670_v42  ;;  %v2689_v11 = vor.u32 %v2688_v51, %v2685_v50  ;;  %v3012_v23 = vrot.slane %v2897_v19, 5  ;;  %v3245_v19 = vld [vmem:[#allocation2 + $0xa8] sm:$0xf] }
 0x1c1   : > { %3890 = vrot.lane.b32.xlu0 %v3739_v53, %s5176_s27  ;;  %v4098_v53 = vsel %vm5663_vm14, %v4096_v37, %v4097_v39  ;;  %v1158_v60 = vld [vmem:[#allocation2 + $0xd4] sm:$0x1]  ;;  %v4154_v48 = vsel %vm5663_vm14, %v4152_v15, %v4153_v55  ;;  %v2699_v8 = vor.u32 %v2698_v62, %v2694_v7  ;;  %v2898_v37 = vld [vmem:[#allocation2 + $0x48] sm:$0xe] }
 0x1c2   : > { %v3094_v57 = vpop.permute.xlu1 %3093  ;;  %v2666_v6 = vrot.slane %v2665_v47, 4  ;;  %v2676_v12 = vrot.slane %v2675_v56, 4  ;;  %v2690_v63 = vrot.slane %v2689_v11, 4  ;;  %v4927_v45 = vrot.slane %v2898_v37, 9 }
 0x1c3   : > { %3189 = vst.msk [vmem:[#allocation3 + $0x4] sm:$0xf] %vm3187_vm6, %v3094_v57  ;;  %v3124_v14 = vpop.permute.xlu0 %3123  ;;  %v1159_v57 = vsel %vm5222_vm3, %v1108_v27, %v1158_v60  ;;  %v2700_v20 = vrot.slane %v2699_v8, 4  ;;  %vm3942_vm3 = vcmask 257248   ;;  %v4935_v56 = vrot.slane %v2922_v49, 9 }
 0x1c4   : > { %3892 = vrot.lane.b32.xlu1 %v3749_v5, %s5176_s27  ;;  %3204 = vst.msk [vmem:[#allocation3 + $0x40] sm:$0xf] %vm3187_vm6, %v3124_v14  ;;  %v4151_v5 = vsel %vm5663_vm14, %v4949_v32, %v4150_v40  ;;  %1160 = vst [vmem:[#allocation2 + $0xd4] sm:$0x1] %v1159_v57  ;;  %v2896_v14 = vld [vmem:[#allocation2 + $0x40] sm:$0xf]  ;;  %v2671_v27 = vsel %vm5333_vm11, %v2666_v6, %v2670_v42 }
 0x1c5   : > { %4191 = vrot.lane.b32.xlu0 %v4088_v58, %s5177_s6  ;;  %v3009_v36 = vrot.slane %v2896_v14, 5  ;;  %v2705_v30 = vsel %vm5333_vm11, %v2700_v20, %v2704_v22  ;;  %v3067_v40 = vrot.slane %v3065_v31, 4  ;;  %v3016_v42 = vrot.slane %v2899_v3, 5  ;;  %v2923_v32 = vld [vmem:[#allocation2 + $0xac] sm:$0xf] }
 0x1c6   : > { %v3126_v16 = vpop.permute.xlu1 %3125  ;;  %v3427_v57 = vld [vmem:[#allocation2 + $0x4c] sm:$0xf]  ;;  %v3229_v8 = vld [vmem:[#allocation2 + $0x48] sm:$0xf]  ;;  %v3754_v20 = vshll.u32 %v3450_v18, 16 }
 0x1c7   : > { %3205 = vst.msk [vmem:[#allocation3 + $0x44] sm:$0xf] %vm3187_vm6, %v3126_v16  ;;  %v3096_v35 = vpop.permute.xlu0 %3095  ;;  %v3011_v16 = vrot.slane %v3009_v36, 4  ;;  %v3010_v34 = vsel %vm5663_vm14, %v4926_v29, %v3009_v36  ;;  %v3018_v51 = vrot.slane %v3016_v42, 4  ;;  %v3017_v55 = vsel %vm5663_vm14, %v4927_v45, %v3016_v42  ;;  %v3451_v36 = vld [vmem:[#allocation2 + $0xac] sm:$0xf] }
 0x1c8   : > { %4193 = vrot.lane.b32.xlu1 %v4091_v17, %s5177_s6  ;;  %3190 = vst.msk [vmem:[#allocation3 + $0x8] sm:$0xf] %vm3187_vm6, %v3096_v35  ;;  %v2681_v17 = vsel %vm5333_vm11, %v2676_v12, %v2680_v13  ;;  %v4934_v35 = vrot.slane %v2919_v21, 9  ;;  %v3572_v10 = vshrl.u32 %v3427_v57, 16  ;;  %v3429_v29 = vld [vmem:[#allocation2 + $0x54] sm:$0xf] }
 0x1c9   : > { %4223 = vrot.lane.b32.xlu0 %v4144_v28, %s5177_s6  ;;  %v2695_v28 = vsel %vm5333_vm11, %v2690_v63, %v2694_v7  ;;  %v3013_v39 = vsel %vm5663_vm14, %v3011_v16, %v3012_v23  ;;  %v3760_v16 = vshll.u32 %v3451_v36, 16  ;;  %v3764_v23 = vshrl.u32 %v3451_v36, 16 }
 0x1ca   : > { %v3098_v46 = vpop.permute.xlu1 %3097  ;;  %v3066_v44 = vsel %vm5663_vm14, %v4934_v35, %v3065_v31  ;;  %v3574_v21 = vrot.slane %v3572_v10, 4  ;;  %v3231_v35 = vld [vmem:[#allocation2 + $0x54] sm:$0xf]  ;;  %v3583_v3 = vshrl.u32 %v3429_v29, 16 }
 0x1cb   : > { %3191 = vst.msk [vmem:[#allocation3 + $0xc] sm:$0xf] %vm3187_vm6, %v3098_v46  ;;  %v3128_v9 = vpop.permute.xlu0 %3127  ;;  %v2900_v46 = vld [vmem:[#allocation2 + $0x50] sm:$0x1]  ;;  %v3766_v45 = vrot.slane %v3764_v23, 4 }
 0x1cc   : > { %4225 = vrot.lane.b32.xlu1 %v4147_v1, %s5177_s6  ;;  %3206 = vst.msk [vmem:[#allocation3 + $0x48] sm:$0xf] %vm3187_vm6, %v3128_v9  ;;  %v2921_v1 = vld [vmem:[#allocation2 + $0xa4] sm:$0x1]  ;;  %v3019_v9 = vrot.slane %v2900_v46, 5 }
 0x1cd   : > { %4195 = vrot.lane.b32.xlu0 %v4095_v2, %s5177_s6  ;;  %v3068_v41 = vrot.slane %v2921_v1, 5  ;;  %v3430_v1 = vld [vmem:[#allocation2 + $0x58] sm:$0xf]  ;;  %v3247_v46 = vld [vmem:[#allocation2 + $0xb4] sm:$0xf] }
 0x1ce   : > { %v3130_v4 = vpop.permute.xlu1 %3129  ;;  %v3020_v62 = vsel %vm5663_vm14, %v3018_v51, %v3019_v9  ;;  %v3592_v49 = vshll.u32 %v3430_v1, 16  ;;  %v3585_v9 = vrot.slane %v3583_v3, 4 }
 0x1cf   : > { %3207 = vst.msk [vmem:[#allocation3 + $0x4c] sm:$0xf] %vm3187_vm6, %v3130_v4  ;;  %v3286_v58 = vpop.permute.xlu0 %3285  ;;  %v3069_v50 = vsel %vm5663_vm14, %v3067_v40, %v3068_v41  ;;  %v3075_v4 = vrot.slane %v2924_v38, 5  ;;  %v3453_v40 = vld [vmem:[#allocation2 + $0xb4] sm:$0xf] }
 0x1d0   : > { %4197 = vrot.lane.b32.xlu1 %v4098_v53, %s5177_s6  ;;  %3382 = vst.msk [vmem:[#allocation3] sm:$0xf] %vm3381_vm4, %v3286_v58  ;;  %v3072_v53 = vrot.slane %v2923_v32, 5  ;;  %v3232_v41 = vld [vmem:[#allocation2 + $0x58] sm:$0xf] }
 0x1d1   : > { %4227 = vrot.lane.b32.xlu0 %v4151_v5, %s5177_s6  ;;  %v3426_v5 = vld [vmem:[#allocation2 + $0x48] sm:$0xf] }
 0x1d2   : > { %v3288_v0 = vpop.permute.xlu1 %3287  ;;  %v3074_v60 = vrot.slane %v3072_v53, 4  ;;  %v3073_v11 = vsel %vm5663_vm14, %v4935_v56, %v3072_v53  ;;  %v3559_v58 = vshrl.u32 %v3426_v5, 16  ;;  %v3778_v56 = vshll.u32 %v3453_v40, 16 }
 0x1d3   : > { %3383 = vst.msk [vmem:[#allocation3 + $0x4] sm:$0xf] %vm3381_vm4, %v3288_v0  ;;  %v3318_v59 = vpop.permute.xlu0 %3317  ;;  %v3568_v0 = vshll.u32 %v3427_v57, 16 }
 0x1d4   : > { %4229 = vrot.lane.b32.xlu1 %v4154_v48, %s5177_s6  ;;  %3398 = vst.msk [vmem:[#allocation3 + $0x40] sm:$0xf] %vm3381_vm4, %v3318_v59  ;;  %v3562_v48 = vshll.u32 %v3426_v5, 16  ;;  %v3076_v12 = vsel %vm5663_vm14, %v3074_v60, %v3075_v4  ;;  %v3561_v63 = vrot.slane %v3559_v58, 4 }
 0x1d5   : > { %2802 = vrot.lane.b32.xlu0 %v2671_v27, %s5173_s24  ;;  %v3230_v27 = vld [vmem:[#allocation2 + $0x4c] sm:$0xf] }
 0x1d6   : > { %v3320_v25 = vpop.permute.xlu1 %3319  ;;  %v3564_v59 = vrot.slane %v3562_v48, 5 }
 0x1d7   : > { %3399 = vst.msk [vmem:[#allocation3 + $0x44] sm:$0xf] %vm3381_vm4, %v3320_v25  ;;  %v3290_v24 = vpop.permute.xlu0 %3289 }
 0x1d8   : > { %2804 = vrot.lane.b32.xlu1 %v2681_v17, %s5173_s24  ;;  %3384 = vst.msk [vmem:[#allocation3 + $0x8] sm:$0xf] %vm3381_vm4, %v3290_v24  ;;  %v3751_v17 = vshrl.u32 %v3450_v18, 16  ;;  %v3565_v52 = vor.u32 %v3564_v59, %v3561_v63  ;;  %v3428_v24 = vld [vmem:[#allocation2 + $0x50] sm:$0x1] }
 0x1d9   : > { %2806 = vrot.lane.b32.xlu0 %v2695_v28, %s5173_s24  ;;  %v6277_v28 = vrot.slane %v3568_v0, 5  ;;  %v3780_v0 = vrot.slane %v3778_v56, 5  ;;  %v2341_v56 = vld [vmem:[#allocation2 + $0x58] sm:$0xf] }
 0x1da   : > { %v3292_v33 = vpop.permute.xlu1 %3291  ;;  %v3753_v31 = vrot.slane %v3751_v17, 4  ;;  %v3566_v42 = vrot.slane %v3565_v52, 4 }
 0x1db   : > { %3385 = vst.msk [vmem:[#allocation3 + $0xc] sm:$0xf] %vm3381_vm4, %v3292_v33  ;;  %v3322_v2 = vpop.permute.xlu0 %3321  ;;  %v3756_v33 = vrot.slane %v3754_v20, 5 }
 0x1dc   : > { %2808 = vrot.lane.b32.xlu1 %v2705_v30, %s5173_s24  ;;  %3400 = vst.msk [vmem:[#allocation3 + $0x48] sm:$0xf] %vm3381_vm4, %v3322_v2  ;;  %v3246_v30 = vld [vmem:[#allocation2 + $0xac] sm:$0xf]  ;;  %v3586_v2 = vshll.u32 %v3429_v29, 16  ;;  %v3571_v60 = vsel %vm5333_vm11, %v3566_v42, %v6277_v28 }
 0x1dd   : > { %3107 = vrot.lane.b32.xlu0 %v3010_v34, %s5174_s25  ;;  %v3757_v32 = vor.u32 %v3756_v33, %v3753_v31 }
 0x1de   : > { %v3324_v43 = vpop.permute.xlu1 %3323  ;;  %v3588_v53 = vrot.slane %v3586_v2, 5 }
 0x1df   : > { %3401 = vst.msk [vmem:[#allocation3 + $0x4c] sm:$0xf] %vm3381_vm4, %v3324_v43  ;;  %v3847_v47 = vpop.permute.xlu0 %3846  ;;  %v3575_v43 = vor.u32 %v3574_v21, %v6277_v28 }
 0x1e0   : > { %3109 = vrot.lane.b32.xlu1 %v3013_v39, %s5174_s25  ;;  %3943 = vst.msk [vmem:[#allocation3] sm:$0xf] %vm3942_vm3, %v3847_v47  ;;  %v3578_v39 = vshll.u32 %v3428_v24, 16  ;;  %v3452_v47 = vld [vmem:[#allocation2 + $0xb0] sm:$0x1]  ;;  %v3589_v18 = vor.u32 %v3588_v53, %v3585_v9 }
 0x1e1   : > { %3139 = vrot.lane.b32.xlu0 %v3066_v44, %s5174_s25  ;;  %v6286_v44 = vrot.slane %v3760_v16, 5  ;;  %v3576_v4 = vrot.slane %v3575_v43, 4  ;;  %v3455_v24 = vld [vmem:[#allocation2 + $0xbc] sm:$0x1]  ;;  %v4011_v9 = vld [vmem:[#allocation2 + $0xa8] sm:$0xe] }
 0x1e2   : > { %v3849_v15 = vpop.permute.xlu1 %3848  ;;  %v3590_v29 = vrot.slane %v3589_v18, 4  ;;  %v3794_v33 = vshll.u32 %v3455_v24, 16  ;;  %v6326_v53 = vld [vmem:[#allocation2 + $0x58] sm:$0xf] }
 0x1e3   : > { %3944 = vst.msk [vmem:[#allocation3 + $0x4] sm:$0xf] %vm3942_vm3, %v3849_v15  ;;  %v3879_v7 = vpop.permute.xlu0 %3878  ;;  %v3454_v15 = vld [vmem:[#allocation2 + $0xb8] sm:$0xf]  ;;  %v3767_v5 = vor.u32 %v3766_v45, %v6286_v44  ;;  %v2340_v45 = vld [vmem:[#allocation2 + $0x54] sm:$0xf] }
 0x1e4   : > { %3141 = vrot.lane.b32.xlu1 %v3069_v50, %s5174_s25  ;;  %3959 = vst.msk [vmem:[#allocation3 + $0x40] sm:$0xf] %vm3942_vm3, %v3879_v7  ;;  %v3596_v50 = vshrl.u32 %v3430_v1, 16  ;;  %v3580_v7 = vrot.slane %v3578_v39, 5  ;;  %v3784_v58 = vshll.u32 %v3454_v15, 16  ;;  %v3788_v48 = vshrl.u32 %v3454_v15, 16 }
 0x1e5   : > { %3111 = vrot.lane.b32.xlu0 %v3017_v55, %s5174_s25  ;;  %v3775_v55 = vshrl.u32 %v3453_v40, 16  ;;  %v3768_v59 = vrot.slane %v3767_v5, 4  ;;  %v3987_v39 = vld [vmem:[#allocation2 + $0x48] sm:$0xe]  ;;  %v3796_v43 = vrot.slane %v3794_v33, 5 }
 0x1e6   : > { %v3881_v6 = vpop.permute.xlu1 %3880  ;;  %v3598_v57 = vrot.slane %v3596_v50, 4  ;;  %v3581_v63 = vsel %vm5333_vm11, %v3576_v4, %v3580_v7  ;;  %v3786_v20 = vrot.slane %v3784_v58, 5  ;;  %v4012_v50 = vld [vmem:[#allocation2 + $0xac] sm:$0xf]  ;;  %v2518_v7 = vshll.u32 %v2340_v45, 16 }
 0x1e7   : > { %3960 = vst.msk [vmem:[#allocation3 + $0x44] sm:$0xf] %vm3942_vm3, %v3881_v6  ;;  %v3851_v61 = vpop.permute.xlu0 %3850  ;;  %v3770_v6 = vshll.u32 %v3452_v47, 16  ;;  %v4015_v18 = vld [vmem:[#allocation2 + $0xb8] sm:$0xf] }
 0x1e8   : > { %3113 = vrot.lane.b32.xlu1 %v3020_v62, %s5174_s25  ;;  %3945 = vst.msk [vmem:[#allocation3 + $0x8] sm:$0xf] %vm3942_vm3, %v3851_v61  ;;  %v3248_v62 = vld [vmem:[#allocation2 + $0xb8] sm:$0xf]  ;;  %v3431_v61 = vld [vmem:[#allocation2 + $0x5c] sm:$0x1] }
 0x1e9   : > { %3143 = vrot.lane.b32.xlu0 %v3073_v11, %s5174_s25  ;;  %v3594_v11 = vrot.slane %v3592_v49, 5  ;;  %v3772_v10 = vrot.slane %v3770_v6, 5  ;;  %v3602_v17 = vshll.u32 %v3431_v61, 16  ;;  %v4942_v49 = vrot.slane %v3987_v39, 9 }
 0x1ea   : > { %v3853_v13 = vpop.permute.xlu1 %3852  ;;  %v4950_v6 = vrot.slane %v4011_v9, 9  ;;  %v4108_v61 = vrot.slane %v6326_v53, 5  ;;  %v4164_v24 = vrot.slane %v4015_v18, 5 }
 0x1eb   : > { %3946 = vst.msk [vmem:[#allocation3 + $0xc] sm:$0xf] %vm3942_vm3, %v3853_v13  ;;  %v3883_v14 = vpop.permute.xlu0 %3882  ;;  %v3599_v36 = vor.u32 %v3598_v57, %v3594_v11  ;;  %v3773_v16 = vsel %vm5333_vm11, %v3768_v59, %v3772_v10  ;;  %v3595_v3 = vsel %vm5333_vm11, %v3590_v29, %v3594_v11  ;;  %v4013_v11 = vld [vmem:[#allocation2 + $0xb0] sm:$0x1]  ;;  %v2364_v57 = vld [vmem:[#allocation2 + $0xb4] sm:$0xf] }
 0x1ec   : > { %3145 = vrot.lane.b32.xlu1 %v3076_v12, %s5174_s25  ;;  %3961 = vst.msk [vmem:[#allocation3 + $0x48] sm:$0xf] %vm3942_vm3, %v3883_v14  ;;  %v3777_v14 = vrot.slane %v3775_v55, 4  ;;  %v4160_v59 = vrot.slane %v4013_v11, 5  ;;  %v2365_v10 = vld [vmem:[#allocation2 + $0xb8] sm:$0xf] }
 0x1ed   : > { %3301 = vrot.lane.b32.xlu0 %v3229_v8, %s5175_s26  ;;  %v3758_v8 = vrot.slane %v3757_v32, 4  ;;  %v3600_v23 = vrot.slane %v3599_v36, 4  ;;  %v2707_v36 = vshrl.u32 %v2364_v57, 16  ;;  %v4014_v29 = vld [vmem:[#allocation2 + $0xb4] sm:$0xe] }
 0x1ee   : > { %v3885_v22 = vpop.permute.xlu1 %3884  ;;  %v3781_v52 = vor.u32 %v3780_v0, %v3777_v14  ;;  %v2520_v0 = vrot.slane %v2518_v7, 5 }
 0x1ef   : > { %3962 = vst.msk [vmem:[#allocation3 + $0x4c] sm:$0xf] %vm3942_vm3, %v3885_v22  ;;  %v4184_v25 = vpop.permute.xlu0 %4183  ;;  %v3790_v22 = vrot.slane %v3788_v48, 4  ;;  %v3763_v28 = vsel %vm5333_vm11, %v3758_v8, %v6286_v44  ;;  %v3989_v44 = vld [vmem:[#allocation2 + $0x50] sm:$0x1] }
 0x1f0   : > { %3303 = vrot.lane.b32.xlu1 %v3230_v27, %s5175_s26  ;;  %4280 = vst.msk [vmem:[#allocation3] sm:$0xf] %vm4279_vm7, %v4184_v25  ;;  %v3782_v2 = vrot.slane %v3781_v52, 4  ;;  %v4104_v55 = vrot.slane %v3989_v44, 5  ;;  %v3990_v48 = vld [vmem:[#allocation2 + $0x54] sm:$0xe] }
 0x1f1   : > { %3333 = vrot.lane.b32.xlu0 %v3245_v19, %s5175_s26  ;;  %v3791_v31 = vor.u32 %v3790_v22, %v3786_v20 }
 0x1f2   : > { %v4186_v34 = vpop.permute.xlu1 %4185  ;;  %v3787_v47 = vsel %vm5333_vm11, %v3782_v2, %v3786_v20  ;;  %v2709_v2 = vrot.slane %v2707_v36, 4  ;;  %v2345_v36 = vld [vmem:[#allocation2 + $0x68] sm:$0x1] }
 0x1f3   : > { %4281 = vst.msk [vmem:[#allocation3 + $0x4] sm:$0xf] %vm4279_vm7, %v4186_v34  ;;  %v4216_v37 = vpop.permute.xlu0 %4215  ;;  %v3988_v34 = vld [vmem:[#allocation2 + $0x4c] sm:$0xf]  ;;  %v3792_v42 = vrot.slane %v3791_v31, 4 }
 0x1f4   : > { %3335 = vrot.lane.b32.xlu1 %v3246_v30, %s5175_s26  ;;  %4296 = vst.msk [vmem:[#allocation3 + $0x40] sm:$0xf] %vm4279_vm7, %v4216_v37  ;;  %v3604_v30 = vrot.slane %v3602_v17, 5  ;;  %v4101_v40 = vrot.slane %v3988_v34, 5  ;;  %v2710_v17 = vshll.u32 %v2364_v57, 16  ;;  %v2716_v34 = vshll.u32 %v2365_v10, 16 }
 0x1f5   : > { %3305 = vrot.lane.b32.xlu0 %v3231_v35, %s5175_s26  ;;  %v2342_v31 = vld [vmem:[#allocation2 + $0x5c] sm:$0x1] }
 0x1f6   : > { %v4218_v51 = vpop.permute.xlu1 %4217  ;;  %v4103_v15 = vrot.slane %v4101_v40, 4  ;;  %v4102_v5 = vsel %vm5663_vm14, %v4942_v49, %v4101_v40  ;;  %v2367_v49 = vld [vmem:[#allocation2 + $0xc0] sm:$0xf]  ;;  %v2718_v9 = vrot.slane %v2716_v34, 5 }
 0x1f7   : > { %4297 = vst.msk [vmem:[#allocation3 + $0x44] sm:$0xf] %vm4279_vm7, %v4218_v51  ;;  %v4188_v38 = vpop.permute.xlu0 %4187  ;;  %v2734_v11 = vshll.u32 %v2367_v49, 16 }
 0x1f8   : > { %3307 = vrot.lane.b32.xlu1 %v3232_v41, %s5175_s26  ;;  %4282 = vst.msk [vmem:[#allocation3 + $0x8] sm:$0xf] %vm4279_vm7, %v4188_v38  ;;  %v3605_v41 = vsel %vm5333_vm11, %v3600_v23, %v3604_v30  ;;  %v2515_v38 = vshrl.u32 %v2340_v45, 16  ;;  %v4105_v8 = vsel %vm5663_vm14, %v4103_v15, %v4104_v55  ;;  %v2343_v23 = vld [vmem:[#allocation2 + $0x60] sm:$0xf] }
 0x1f9   : > { %3337 = vrot.lane.b32.xlu0 %v3247_v46, %s5175_s26 }
 0x1fa   : > { %v4190_v12 = vpop.permute.xlu1 %4189  ;;  %v5128_v13 = vld [vmem:[#allocation3] sm:$0xff]   ;;  %v2517_v14 = vrot.slane %v2515_v38, 4 }
 0x1fb   : > { %4283 = vst.msk [vmem:[#allocation3 + $0xc] sm:$0xf] %vm4279_vm7, %v4190_v12  ;;  %v4220_v27 = vpop.permute.xlu0 %4219  ;;  %5053 = vmatprep.mubr.msk.bf16.mxu0 %vm4444_vm8, %v5128_v13  ;;  %v3992_v12 = vld [vmem:[#allocation2 + $0x5c] sm:$0x1]  ;;  %v2524_v13 = vshll.u32 %v2341_v56, 16 }
 0x1fc   : > { %3339 = vrot.lane.b32.xlu1 %v3248_v62, %s5175_s26  ;;  %4298 = vst.msk [vmem:[#allocation3 + $0x48] sm:$0xf] %vm4279_vm7, %v4220_v27  ;;  %v3797_v62 = vsel %vm5333_vm11, %v3792_v42, %v3796_v43  ;;  %v2528_v27 = vshrl.u32 %v2341_v56, 16  ;;  %v2521_v30 = vor.u32 %v2520_v0, %v2517_v14  ;;  %v2539_v42 = vshrl.u32 %v2343_v23, 16  ;;  %v2366_v56 = vld [vmem:[#allocation2 + $0xbc] sm:$0x1] }
 0x1fd   : > { %3862 = vrot.lane.b32.xlu0 %v3571_v60, %s5176_s27  ;;  %v4157_v60 = vrot.slane %v4012_v50, 5  ;;  %v2542_v43 = vshll.u32 %v2343_v23, 16 }
 0x1fe   : > { %v4222_v19 = vpop.permute.xlu1 %4221  ;;  %v5130_v25 = vld [vmem:[#allocation3 + $0x40] sm:$0xff]   ;;  %v2530_v33 = vrot.slane %v2528_v27, 4  ;;  %v2522_v50 = vrot.slane %v2521_v30, 4 }
 0x1ff   : > { %4299 = vst.msk [vmem:[#allocation3 + $0x4c] sm:$0xf] %vm4279_vm7, %v4222_v19  ;;  %v2795_v21 = vpop.permute.xlu0 %2794  ;;  %5069 = vmatprep.mubr.msk.bf16.mxu1 %vm4444_vm8, %v5130_v25  ;;  %v4158_v22 = vsel %vm5663_vm14, %v4950_v6, %v4157_v60  ;;  %v4943_v19 = vrot.slane %v3990_v48, 9  ;;  %v4110_v25 = vrot.slane %v4108_v61, 4  ;;  %v2731_v6 = vshrl.u32 %v2367_v49, 16 }
 0x200   : > { %3864 = vrot.lane.b32.xlu1 %v3581_v63, %s5176_s27  ;;  %2871 = vst.msk [vmem:[#allocation3 + $0x50] sm:$0xf] %vm2850_vm5, %v2795_v21  ;;  %v4159_v63 = vrot.slane %v4157_v60, 4  ;;  %v4016_v21 = vld [vmem:[#allocation2 + $0xbc] sm:$0x1]  ;;  %v2541_v60 = vrot.slane %v2539_v42, 4 }
 0x201   : > { %3894 = vrot.lane.b32.xlu0 %v3763_v28, %s5176_s27  ;;  %v4111_v28 = vrot.slane %v3992_v12, 5  ;;  %v4109_v40 = vsel %vm5663_vm14, %v4943_v19, %v4108_v61  ;;  %v2902_v42 = vld [vmem:[#allocation2 + $0x58] sm:$0xf] }
 0x202   : > { %v2797_v35 = vpop.permute.xlu1 %2796  ;;  %v5131_v1 = vld [vmem:[#allocation3 + $0x8] sm:$0xff]  }
 0x203   : > { %2872 = vst.msk [vmem:[#allocation3 + $0x54] sm:$0xf] %vm2850_vm5, %v2797_v35  ;;  %v2799_v37 = vpop.permute.xlu0 %2798  ;;  %5054 = vmatmul.mubr.msk.bf16.vlgmr.msra.gmra.mxu0 %vm4444_vm8, %v5131_v1  ;;  %v2720_v35 = vshrl.u32 %v2365_v10, 16  ;;  %v4161_v1 = vsel %vm5663_vm14, %v4159_v63, %v4160_v59  ;;  %v4112_v45 = vsel %vm5663_vm14, %v4110_v25, %v4111_v28 }
 0x204   : > { %3896 = vrot.lane.b32.xlu1 %v3773_v16, %s5176_s27  ;;  %2873 = vst.msk [vmem:[#allocation3 + $0x58] sm:$0xf] %vm2850_vm5, %v2799_v37  ;;  %v6346_v16 = vrot.slane %v2524_v13, 5  ;;  %v2712_v37 = vrot.slane %v2710_v17, 5  ;;  %v2733_v17 = vrot.slane %v2731_v6, 4 }
 0x205   : > { %3866 = vrot.lane.b32.xlu0 %v3595_v3, %s5176_s27  ;;  %v4951_v3 = vrot.slane %v4014_v29, 9  ;;  %v2722_v53 = vrot.slane %v2720_v35, 4  ;;  %v2927_v6 = vld [vmem:[#allocation2 + $0xbc] sm:$0x1] }
 0x206   : > { %v2801_v46 = vpop.permute.xlu1 %2800  ;;  %v5132_v32 = vld [vmem:[#allocation3 + $0x48] sm:$0xff]   ;;  %v2713_v55 = vor.u32 %v2712_v37, %v2709_v2  ;;  %v2527_v48 = vsel %vm5333_vm11, %v2522_v50, %v6346_v16 }
 0x207   : > { %2874 = vst.msk [vmem:[#allocation3 + $0x5c] sm:$0xf] %vm2850_vm5, %v2801_v46  ;;  %v3100_v51 = vpop.permute.xlu0 %3099  ;;  %5070 = vmatmul.mubr.msk.bf16.vlgmr.msra.gmra.mxu1 %vm4444_vm8, %v5132_v32  ;;  %v4166_v46 = vrot.slane %v4164_v24, 4  ;;  %v4167_v32 = vrot.slane %v4016_v21, 5  ;;  %v4165_v15 = vsel %vm5663_vm14, %v4951_v3, %v4164_v24  ;;  %v2723_v13 = vor.u32 %v2722_v53, %v2718_v9  ;;  %v2926_v53 = vld [vmem:[#allocation2 + $0xb8] sm:$0xf] }
 0x208   : > { %3868 = vrot.lane.b32.xlu1 %v3605_v41, %s5176_s27  ;;  %3192 = vst.msk [vmem:[#allocation3 + $0x10] sm:$0xf] %vm3187_vm6, %v3100_v51  ;;  %v2344_v41 = vld [vmem:[#allocation2 + $0x64] sm:$0xf]  ;;  %v2531_v51 = vor.u32 %v2530_v33, %v6346_v16  ;;  %v2714_v59 = vrot.slane %v2713_v55, 4 }
 0x209   : > { %3898 = vrot.lane.b32.xlu0 %v3787_v47, %s5176_s27  ;;  %v2534_v47 = vshll.u32 %v2342_v31, 16  ;;  %v2548_v38 = vshll.u32 %v2344_v41, 16  ;;  %v2552_v7 = vshrl.u32 %v2344_v41, 16  ;;  %v4168_v57 = vsel %vm5663_vm14, %v4166_v46, %v4167_v32  ;;  %v2369_v33 = vld [vmem:[#allocation2 + $0xc8] sm:$0x1] }
 0x20a   : > { %v3102_v4 = vpop.permute.xlu1 %3101  ;;  %v2532_v12 = vrot.slane %v2531_v51, 4  ;;  %v2724_v25 = vrot.slane %v2723_v13, 4  ;;  %v2719_v23 = vsel %vm5333_vm11, %v2714_v59, %v2718_v9  ;;  %v2750_v37 = vshll.u32 %v2369_v33, 16  ;;  %v2903_v9 = vld [vmem:[#allocation2 + $0x5c] sm:$0x1] }
 0x20b   : > { %3193 = vst.msk [vmem:[#allocation3 + $0x14] sm:$0xf] %vm3187_vm6, %v3102_v4  ;;  %v3132_v58 = vpop.permute.xlu0 %3131  ;;  %v2544_v4 = vrot.slane %v2542_v43, 5  ;;  %v2550_v18 = vrot.slane %v2548_v38, 5  ;;  %v2554_v14 = vrot.slane %v2552_v7, 4  ;;  %v3026_v7 = vrot.slane %v2903_v9, 5 }
 0x20c   : > { %3900 = vrot.lane.b32.xlu1 %v3797_v62, %s5176_s27  ;;  %3208 = vst.msk [vmem:[#allocation3 + $0x50] sm:$0xf] %vm3187_vm6, %v3132_v58  ;;  %v2536_v58 = vrot.slane %v2534_v47, 5  ;;  %v2752_v32 = vrot.slane %v2750_v37, 5  ;;  %v3023_v47 = vrot.slane %v2902_v42, 5 }
 0x20d   : > { %4199 = vrot.lane.b32.xlu0 %v4102_v5, %s5177_s6  ;;  %v2368_v5 = vld [vmem:[#allocation2 + $0xc4] sm:$0xf]  ;;  %v2545_v10 = vor.u32 %v2544_v4, %v2541_v60  ;;  %v2555_v29 = vor.u32 %v2554_v14, %v2550_v18  ;;  %v2925_v55 = vld [vmem:[#allocation2 + $0xb4] sm:$0xe]  ;;  %v2928_v59 = vld [vmem:[#allocation2 + $0xc0] sm:$0xe] }
 0x20e   : > { %v3134_v20 = vpop.permute.xlu1 %3133  ;;  %v2740_v0 = vshll.u32 %v2368_v5, 16  ;;  %v2744_v27 = vshrl.u32 %v2368_v5, 16  ;;  %v2537_v19 = vsel %vm5333_vm11, %v2532_v12, %v2536_v58  ;;  %v3025_v38 = vrot.slane %v3023_v47, 4  ;;  %v3433_v33 = vld [vmem:[#allocation2 + $0x64] sm:$0xf] }
 0x20f   : > { %3209 = vst.msk [vmem:[#allocation3 + $0x54] sm:$0xf] %vm3187_vm6, %v3134_v20  ;;  %v3104_v52 = vpop.permute.xlu0 %3103  ;;  %v2736_v20 = vrot.slane %v2734_v11, 5  ;;  %v2546_v30 = vrot.slane %v2545_v10, 4  ;;  %v4936_v5 = vrot.slane %v2925_v55, 9  ;;  %v3082_v12 = vrot.slane %v2927_v6, 5 }
 0x210   : > { %4201 = vrot.lane.b32.xlu1 %v4105_v8, %s5177_s6  ;;  %3194 = vst.msk [vmem:[#allocation3 + $0x18] sm:$0xf] %vm3187_vm6, %v3104_v52  ;;  %v2726_v8 = vshll.u32 %v2366_v56, 16  ;;  %v2558_v52 = vshll.u32 %v2345_v36, 16  ;;  %v2742_v24 = vrot.slane %v2740_v0, 5  ;;  %v2746_v21 = vrot.slane %v2744_v27, 4 }
 0x211   : > { %4231 = vrot.lane.b32.xlu0 %v4158_v22, %s5177_s6  ;;  %v2737_v31 = vor.u32 %v2736_v20, %v2733_v17  ;;  %v2905_v11 = vld [vmem:[#allocation2 + $0x64] sm:$0xf]  ;;  %v3027_v58 = vsel %vm5663_vm14, %v3025_v38, %v3026_v7  ;;  %v2906_v0 = vld [vmem:[#allocation2 + $0x68] sm:$0x1]  ;;  %v3456_v37 = vld [vmem:[#allocation2 + $0xc0] sm:$0xf] }
 0x212   : > { %v3106_v39 = vpop.permute.xlu1 %3105  ;;  %v2728_v28 = vrot.slane %v2726_v8, 5  ;;  %v2560_v3 = vrot.slane %v2558_v52, 5  ;;  %v2747_v2 = vor.u32 %v2746_v21, %v2742_v24  ;;  %v3030_v13 = vrot.slane %v2905_v11, 5  ;;  %v2929_v27 = vld [vmem:[#allocation2 + $0xc4] sm:$0xf] }
 0x213   : > { %3195 = vst.msk [vmem:[#allocation3 + $0x1c] sm:$0xf] %vm3187_vm6, %v3106_v39  ;;  %v3136_v44 = vpop.permute.xlu0 %3135  ;;  %v2738_v41 = vrot.slane %v2737_v31, 4  ;;  %v3033_v17 = vrot.slane %v2906_v0, 5  ;;  %v3086_v20 = vrot.slane %v2929_v27, 5 }
 0x214   : > { %4233 = vrot.lane.b32.xlu1 %v4161_v1, %s5177_s6  ;;  %3210 = vst.msk [vmem:[#allocation3 + $0x58] sm:$0xf] %vm3187_vm6, %v3136_v44  ;;  %v2729_v35 = vsel %vm5333_vm11, %v2724_v25, %v2728_v28  ;;  %v2556_v1 = vrot.slane %v2555_v29, 4  ;;  %v2901_v44 = vld [vmem:[#allocation2 + $0x54] sm:$0xe]  ;;  %v2748_v46 = vrot.slane %v2747_v2, 4 }
 0x215   : > { %4203 = vrot.lane.b32.xlu0 %v4109_v40, %s5177_s6  ;;  %v2551_v40 = vsel %vm5333_vm11, %v2546_v30, %v2550_v18  ;;  %v2743_v50 = vsel %vm5333_vm11, %v2738_v41, %v2742_v24  ;;  %v4928_v51 = vrot.slane %v2901_v44, 9  ;;  %v3032_v36 = vrot.slane %v3030_v13, 4  ;;  %v2930_v28 = vld [vmem:[#allocation2 + $0xc8] sm:$0x1]  ;;  %v3233_v2 = vld [vmem:[#allocation2 + $0x60] sm:$0xf] }
 0x216   : > { %v3138_v62 = vpop.permute.xlu1 %3137  ;;  %v2753_v56 = vsel %vm5333_vm11, %v2748_v46, %v2752_v32  ;;  %v4937_v25 = vrot.slane %v2928_v59, 9  ;;  %v3088_v24 = vrot.slane %v3086_v20, 4  ;;  %v3089_v21 = vrot.slane %v2930_v28, 5  ;;  %v3234_v44 = vld [vmem:[#allocation2 + $0x64] sm:$0xf] }
 0x217   : > { %3211 = vst.msk [vmem:[#allocation3 + $0x5c] sm:$0xf] %vm3187_vm6, %v3138_v62  ;;  %v3294_v61 = vpop.permute.xlu0 %3293  ;;  %v3079_v62 = vrot.slane %v2926_v53, 5  ;;  %v3024_v4 = vsel %vm5663_vm14, %v4928_v51, %v3023_v47  ;;  %v3034_v52 = vsel %vm5663_vm14, %v3032_v36, %v3033_v17  ;;  %v3799_v46 = vshrl.u32 %v3456_v37, 16  ;;  %v3250_v9 = vld [vmem:[#allocation2 + $0xc4] sm:$0xf] }
 0x218   : > { %4205 = vrot.lane.b32.xlu1 %v4112_v45, %s5177_s6  ;;  %3386 = vst.msk [vmem:[#allocation3 + $0x10] sm:$0xf] %vm3381_vm4, %v3294_v61  ;;  %v2561_v45 = vsel %vm5333_vm11, %v2556_v1, %v2560_v3  ;;  %v3087_v30 = vsel %vm5663_vm14, %v4937_v25, %v3086_v20  ;;  %v3090_v1 = vsel %vm5663_vm14, %v3088_v24, %v3089_v21  ;;  %v3802_v32 = vshll.u32 %v3456_v37, 16  ;;  %v3434_v55 = vld [vmem:[#allocation2 + $0x68] sm:$0x1] }
 0x219   : > { %4235 = vrot.lane.b32.xlu0 %v4165_v15, %s5177_s6  ;;  %v3080_v18 = vsel %vm5663_vm14, %v4936_v5, %v3079_v62  ;;  %v3458_v27 = vld [vmem:[#allocation2 + $0xc8] sm:$0x1]  ;;  %v3460_v17 = vld [vmem:[#allocation2 + $0xd0] sm:$0xf] }
 0x21a   : > { %v3296_v63 = vpop.permute.xlu1 %3295  ;;  %v3252_v21 = vld [vmem:[#allocation2 + $0xd0] sm:$0xf] }
 0x21b   : > { %3387 = vst.msk [vmem:[#allocation3 + $0x14] sm:$0xf] %vm3381_vm4, %v3296_v63  ;;  %v3326_v22 = vpop.permute.xlu0 %3325 }
 0x21c   : > { %4237 = vrot.lane.b32.xlu1 %v4168_v57, %s5177_s6  ;;  %3402 = vst.msk [vmem:[#allocation3 + $0x50] sm:$0xf] %vm3381_vm4, %v3326_v22  ;;  %v2904_v57 = vld [vmem:[#allocation2 + $0x60] sm:$0xe] }
 0x21d   : > { %2778 = vrot.lane.b32.xlu0 %v2527_v48, %s5173_s24  ;;  %v3081_v48 = vrot.slane %v3079_v62, 4  ;;  %v4929_v14 = vrot.slane %v2904_v57, 9  ;;  %v3235_v62 = vld [vmem:[#allocation2 + $0x6c] sm:$0xf] }
 0x21e   : > { %v3328_v16 = vpop.permute.xlu1 %3327 }
 0x21f   : > { %3403 = vst.msk [vmem:[#allocation3 + $0x54] sm:$0xf] %vm3381_vm4, %v3328_v16  ;;  %v3298_v34 = vpop.permute.xlu0 %3297  ;;  %v3083_v10 = vsel %vm5663_vm14, %v3081_v48, %v3082_v12  ;;  %v3432_v16 = vld [vmem:[#allocation2 + $0x60] sm:$0xf]  ;;  %v3236_v48 = vld [vmem:[#allocation2 + $0x70] sm:$0xf] }
 0x220   : > { %2780 = vrot.lane.b32.xlu1 %v2537_v19, %s5173_s24  ;;  %3388 = vst.msk [vmem:[#allocation3 + $0x18] sm:$0xf] %vm3381_vm4, %v3298_v34  ;;  %v3031_v19 = vsel %vm5663_vm14, %v4929_v14, %v3030_v13  ;;  %v3607_v34 = vshrl.u32 %v3432_v16, 16  ;;  %v3626_v12 = vshll.u32 %v3434_v55, 16  ;;  %v3459_v13 = vld [vmem:[#allocation2 + $0xcc] sm:$0xf] }
 0x221   : > { %2810 = vrot.lane.b32.xlu0 %v2719_v23, %s5173_s24  ;;  %v3823_v28 = vshrl.u32 %v3459_v13, 16 }
 0x222   : > { %v3300_v39 = vpop.permute.xlu1 %3299  ;;  %v3609_v41 = vrot.slane %v3607_v34, 4  ;;  %v3628_v24 = vrot.slane %v3626_v12, 5  ;;  %v3437_v34 = vld [vmem:[#allocation2 + $0x74] sm:$0x1] }
 0x223   : > { %3389 = vst.msk [vmem:[#allocation3 + $0x1c] sm:$0xf] %vm3381_vm4, %v3300_v39  ;;  %v3330_v43 = vpop.permute.xlu0 %3329 }
 0x224   : > { %2812 = vrot.lane.b32.xlu1 %v2729_v35, %s5173_s24  ;;  %3404 = vst.msk [vmem:[#allocation3 + $0x58] sm:$0xf] %vm3381_vm4, %v3330_v43  ;;  %v3610_v35 = vshll.u32 %v3432_v16, 16  ;;  %v3620_v43 = vshrl.u32 %v3433_v33, 16 }
 0x225   : > { %2782 = vrot.lane.b32.xlu0 %v2551_v40, %s5173_s24  ;;  %v3616_v40 = vshll.u32 %v3433_v33, 16 }
 0x226   : > { %v3332_v49 = vpop.permute.xlu1 %3331  ;;  %v3612_v42 = vrot.slane %v3610_v35, 5 }
 0x227   : > { %3405 = vst.msk [vmem:[#allocation3 + $0x5c] sm:$0xf] %vm3381_vm4, %v3332_v49  ;;  %v3855_v15 = vpop.permute.xlu0 %3854  ;;  %v3249_v49 = vld [vmem:[#allocation2 + $0xc0] sm:$0xf]  ;;  %v6440_v53 = vrot.slane %v3616_v40, 5 }
 0x228   : > { %2784 = vrot.lane.b32.xlu1 %v2561_v45, %s5173_s24  ;;  %3947 = vst.msk [vmem:[#allocation3 + $0x10] sm:$0xf] %vm3942_vm3, %v3855_v15  ;;  %v3457_v45 = vld [vmem:[#allocation2 + $0xc4] sm:$0xf]  ;;  %v3613_v15 = vor.u32 %v3612_v42, %v3609_v41  ;;  %v3825_v41 = vrot.slane %v3823_v28, 4 }
 0x229   : > { %2814 = vrot.lane.b32.xlu0 %v2743_v50, %s5173_s24  ;;  %v3435_v50 = vld [vmem:[#allocation2 + $0x6c] sm:$0xf]  ;;  %v3808_v38 = vshll.u32 %v3457_v45, 16  ;;  %v3812_v7 = vshrl.u32 %v3457_v45, 16 }
 0x22a   : > { %v3857_v60 = vpop.permute.xlu1 %3856  ;;  %v3631_v5 = vshrl.u32 %v3435_v50, 16  ;;  %v3634_v57 = vshll.u32 %v3435_v50, 16 }
 0x22b   : > { %3948 = vst.msk [vmem:[#allocation3 + $0x14] sm:$0xf] %vm3942_vm3, %v3857_v60  ;;  %v3887_v61 = vpop.permute.xlu0 %3886  ;;  %v3801_v60 = vrot.slane %v3799_v46, 4  ;;  %v3810_v0 = vrot.slane %v3808_v38, 5  ;;  %v3650_v46 = vshll.u32 %v3437_v34, 16 }
 0x22c   : > { %2816 = vrot.lane.b32.xlu1 %v2753_v56, %s5173_s24  ;;  %3963 = vst.msk [vmem:[#allocation3 + $0x50] sm:$0xf] %vm3942_vm3, %v3887_v61  ;;  %v3622_v56 = vrot.slane %v3620_v43, 4  ;;  %v3436_v61 = vld [vmem:[#allocation2 + $0x70] sm:$0xf]  ;;  %v3633_v59 = vrot.slane %v3631_v5, 4 }
 0x22d   : > { %3115 = vrot.lane.b32.xlu0 %v3024_v4, %s5174_s25  ;;  %v3804_v4 = vrot.slane %v3802_v32, 5  ;;  %v3644_v36 = vshrl.u32 %v3436_v61, 16  ;;  %v3636_v25 = vrot.slane %v3634_v57, 5  ;;  %v3994_v57 = vld [vmem:[#allocation2 + $0x64] sm:$0xf] }
 0x22e   : > { %v3889_v8 = vpop.permute.xlu1 %3888  ;;  %v3623_v14 = vor.u32 %v3622_v56, %v6440_v53  ;;  %v3461_v56 = vld [vmem:[#allocation2 + $0xd4] sm:$0x1] }
 0x22f   : > { %3964 = vst.msk [vmem:[#allocation3 + $0x54] sm:$0xf] %vm3942_vm3, %v3889_v8  ;;  %v3859_v63 = vpop.permute.xlu0 %3858  ;;  %v3251_v8 = vld [vmem:[#allocation2 + $0xcc] sm:$0xf]  ;;  %v3646_v35 = vrot.slane %v3644_v36, 4  ;;  %v3637_v40 = vor.u32 %v3636_v25, %v3633_v59  ;;  %v3842_v5 = vshll.u32 %v3461_v56, 16 }
 0x230   : > { %3117 = vrot.lane.b32.xlu1 %v3027_v58, %s5174_s25  ;;  %3949 = vst.msk [vmem:[#allocation3 + $0x18] sm:$0xf] %vm3942_vm3, %v3859_v63  ;;  %v3814_v63 = vrot.slane %v3812_v7, 4  ;;  %v3652_v7 = vrot.slane %v3650_v46, 5  ;;  %v4018_v59 = vld [vmem:[#allocation2 + $0xc4] sm:$0xf] }
 0x231   : > { %3147 = vrot.lane.b32.xlu0 %v3080_v18, %s5174_s25  ;;  %v3614_v18 = vrot.slane %v3613_v15, 4  ;;  %v3638_v15 = vrot.slane %v3637_v40, 4  ;;  %v4017_v36 = vld [vmem:[#allocation2 + $0xc0] sm:$0xe]  ;;  %v4022_v46 = vld [vmem:[#allocation2 + $0xd4] sm:$0x1] }
 0x232   : > { %v3861_v22 = vpop.permute.xlu1 %3860 }
 0x233   : > { %3950 = vst.msk [vmem:[#allocation3 + $0x1c] sm:$0xf] %vm3942_vm3, %v3861_v22  ;;  %v3891_v29 = vpop.permute.xlu0 %3890  ;;  %v3619_v16 = vsel %vm5333_vm11, %v3614_v18, %v6440_v53  ;;  %v4115_v18 = vrot.slane %v3994_v57, 5 }
 0x234   : > { %3149 = vrot.lane.b32.xlu1 %v3083_v10, %s5174_s25  ;;  %3965 = vst.msk [vmem:[#allocation3 + $0x58] sm:$0xf] %vm3942_vm3, %v3891_v29  ;;  %v3640_v10 = vshll.u32 %v3436_v61, 16  ;;  %v3826_v29 = vshll.u32 %v3459_v13, 16 }
 0x235   : > { %3119 = vrot.lane.b32.xlu0 %v3031_v19, %s5174_s25  ;;  %v3805_v19 = vor.u32 %v3804_v4, %v3801_v60 }
 0x236   : > { %v3893_v23 = vpop.permute.xlu1 %3892  ;;  %v3642_v33 = vrot.slane %v3640_v10, 5  ;;  %v3828_v42 = vrot.slane %v3826_v29, 5  ;;  %v4952_v29 = vrot.slane %v4017_v36, 9 }
 0x237   : > { %3966 = vst.msk [vmem:[#allocation3 + $0x5c] sm:$0xf] %vm3942_vm3, %v3893_v23  ;;  %v4192_v31 = vpop.permute.xlu0 %4191  ;;  %v3624_v23 = vrot.slane %v3623_v14, 4 }
 0x238   : > { %3121 = vrot.lane.b32.xlu1 %v3034_v52, %s5174_s25  ;;  %4284 = vst.msk [vmem:[#allocation3 + $0x10] sm:$0xf] %vm4279_vm7, %v4192_v31  ;;  %v3818_v31 = vshll.u32 %v3458_v27, 16  ;;  %v3829_v55 = vor.u32 %v3828_v42, %v3825_v41 }
 0x239   : > { %3151 = vrot.lane.b32.xlu0 %v3087_v30, %s5174_s25  ;;  %v3815_v30 = vor.u32 %v3814_v63, %v3810_v0  ;;  %v3995_v63 = vld [vmem:[#allocation2 + $0x68] sm:$0x1] }
 0x23a   : > { %v4194_v3 = vpop.permute.xlu1 %4193  ;;  %v3820_v45 = vrot.slane %v3818_v31, 5  ;;  %v3830_v61 = vrot.slane %v3829_v55, 4 }
 0x23b   : > { %4285 = vst.msk [vmem:[#allocation3 + $0x14] sm:$0xf] %vm4279_vm7, %v4194_v3  ;;  %v4224_v39 = vpop.permute.xlu0 %4223  ;;  %v3836_v3 = vshrl.u32 %v3460_v17, 16  ;;  %v3816_v32 = vrot.slane %v3815_v30, 4 }
 0x23c   : > { %3153 = vrot.lane.b32.xlu1 %v3090_v1, %s5174_s25  ;;  %4300 = vst.msk [vmem:[#allocation3 + $0x50] sm:$0xf] %vm4279_vm7, %v4224_v39  ;;  %v3832_v1 = vshll.u32 %v3460_v17, 16  ;;  %v3806_v39 = vrot.slane %v3805_v19, 4  ;;  %v4171_v19 = vrot.slane %v4018_v59, 5 }
 0x23d   : > { %3309 = vrot.lane.b32.xlu0 %v3233_v2, %s5175_s26  ;;  %v3838_v50 = vrot.slane %v3836_v3, 4  ;;  %v4021_v3 = vld [vmem:[#allocation2 + $0xd0] sm:$0xf] }
 0x23e   : > { %v4226_v47 = vpop.permute.xlu1 %4225  ;;  %v3811_v53 = vsel %vm5333_vm11, %v3806_v39, %v3810_v0  ;;  %v4172_v34 = vsel %vm5663_vm14, %v4952_v29, %v4171_v19  ;;  %v4178_v42 = vrot.slane %v4021_v3, 5 }
 0x23f   : > { %4301 = vst.msk [vmem:[#allocation3 + $0x54] sm:$0xf] %vm4279_vm7, %v4226_v47  ;;  %v4196_v51 = vpop.permute.xlu0 %4195  ;;  %v3647_v47 = vor.u32 %v3646_v35, %v3642_v33 }
 0x240   : > { %3311 = vrot.lane.b32.xlu1 %v3234_v44, %s5175_s26  ;;  %4286 = vst.msk [vmem:[#allocation3 + $0x18] sm:$0xf] %vm4279_vm7, %v4196_v51  ;;  %v3629_v44 = vsel %vm5333_vm11, %v3624_v23, %v3628_v24  ;;  %v3997_v24 = vld [vmem:[#allocation2 + $0x70] sm:$0xf]  ;;  %v4173_v23 = vrot.slane %v4171_v19, 4 }
 0x241   : > { %3341 = vrot.lane.b32.xlu0 %v3249_v49, %s5175_s26  ;;  %v3834_v49 = vrot.slane %v3832_v1, 5  ;;  %v3648_v60 = vrot.slane %v3647_v47, 4  ;;  %v4122_v31 = vrot.slane %v3997_v24, 5  ;;  %v3998_v1 = vld [vmem:[#allocation2 + $0x74] sm:$0x1] }
 0x242   : > { %v4198_v6 = vpop.permute.xlu1 %4197  ;;  %v5133_v11 = vld [vmem:[#allocation3 + $0x10] sm:$0xff]   ;;  %v4125_v41 = vrot.slane %v3998_v1, 5 }
 0x243   : > { %4287 = vst.msk [vmem:[#allocation3 + $0x1c] sm:$0xf] %vm4279_vm7, %v4198_v6  ;;  %v4228_v58 = vpop.permute.xlu0 %4227  ;;  %5057 = vmatprep.mubr.msk.bf16.mxu0 %vm4444_vm8, %v5133_v11  ;;  %v3839_v4 = vor.u32 %v3838_v50, %v3834_v49  ;;  %v3643_v11 = vsel %vm5333_vm11, %v3638_v15, %v3642_v33  ;;  %v3653_v12 = vsel %vm5333_vm11, %v3648_v60, %v3652_v7  ;;  %v4124_v40 = vrot.slane %v4122_v31, 4 }
 0x244   : > { %3343 = vrot.lane.b32.xlu1 %v3250_v9, %s5175_s26  ;;  %4302 = vst.msk [vmem:[#allocation3 + $0x58] sm:$0xf] %vm4279_vm7, %v4228_v58  ;;  %v3835_v0 = vsel %vm5333_vm11, %v3830_v61, %v3834_v49  ;;  %v4180_v49 = vrot.slane %v4178_v42, 4  ;;  %v4181_v50 = vrot.slane %v4022_v46, 5 }
 0x245   : > { %3313 = vrot.lane.b32.xlu0 %v3235_v62, %s5175_s26  ;;  %v3821_v62 = vsel %vm5333_vm11, %v3816_v32, %v3820_v45  ;;  %v3840_v13 = vrot.slane %v3839_v4, 4  ;;  %v4126_v47 = vsel %vm5663_vm14, %v4124_v40, %v4125_v41 }
 0x246   : > { %v4230_v20 = vpop.permute.xlu1 %4229  ;;  %v5134_v22 = vld [vmem:[#allocation3 + $0x50] sm:$0xff]   ;;  %v4182_v15 = vsel %vm5663_vm14, %v4180_v49, %v4181_v50 }
 0x247   : > { %4303 = vst.msk [vmem:[#allocation3 + $0x5c] sm:$0xf] %vm4279_vm7, %v4230_v20  ;;  %v2803_v52 = vpop.permute.xlu0 %2802  ;;  %5073 = vmatprep.mubr.msk.bf16.mxu1 %vm4444_vm8, %v5134_v22  ;;  %v4117_v20 = vrot.slane %v4115_v18, 4  ;;  %v4118_v22 = vrot.slane %v3995_v63, 5 }
 0x248   : > { %3315 = vrot.lane.b32.xlu1 %v3236_v48, %s5175_s26  ;;  %2875 = vst.msk [vmem:[#allocation3 + $0x60] sm:$0xf] %vm2850_vm5, %v2803_v52  ;;  %v3993_v48 = vld [vmem:[#allocation2 + $0x60] sm:$0xe]  ;;  %v4019_v52 = vld [vmem:[#allocation2 + $0xc8] sm:$0x1] }
 0x249   : > { %3345 = vrot.lane.b32.xlu0 %v3251_v8, %s5175_s26  ;;  %v3844_v8 = vrot.slane %v3842_v5, 5  ;;  %v4944_v27 = vrot.slane %v3993_v48, 9  ;;  %v4119_v54 = vsel %vm5663_vm14, %v4117_v20, %v4118_v22  ;;  %v4174_v30 = vrot.slane %v4019_v52, 5 }
 0x24a   : > { %v2805_v2 = vpop.permute.xlu1 %2804  ;;  %v5135_v37 = vld [vmem:[#allocation3 + $0x18] sm:$0xff]  }
 0x24b   : > { %2876 = vst.msk [vmem:[#allocation3 + $0x64] sm:$0xf] %vm2850_vm5, %v2805_v2  ;;  %v2807_v43 = vpop.permute.xlu0 %2806  ;;  %5058 = vmatmul.mubr.msk.bf16.gmra.mxu0 %vm4444_vm8, %v5135_v37  ;;  %v3845_v17 = vsel %vm5333_vm11, %v3840_v13, %v3844_v8  ;;  %v4116_v28 = vsel %vm5663_vm14, %v4944_v27, %v4115_v18  ;;  %v4020_v37 = vld [vmem:[#allocation2 + $0xcc] sm:$0xe]  ;;  %v4175_v39 = vsel %vm5663_vm14, %v4173_v23, %v4174_v30 }
 0x24c   : > { %3347 = vrot.lane.b32.xlu1 %v3252_v21, %s5175_s26  ;;  %2877 = vst.msk [vmem:[#allocation3 + $0x68] sm:$0xf] %vm2850_vm5, %v2807_v43  ;;  %v4953_v45 = vrot.slane %v4020_v37, 9 }
 0x24d   : > { %3870 = vrot.lane.b32.xlu0 %v3619_v16, %s5176_s27  ;;  %v3996_v16 = vld [vmem:[#allocation2 + $0x6c] sm:$0xe] }
 0x24e   : > { %v2809_v51 = vpop.permute.xlu1 %2808  ;;  %v5136_v9 = vld [vmem:[#allocation3 + $0x58] sm:$0xff]   ;;  %v4945_v35 = vrot.slane %v3996_v16, 9 }
 0x24f   : > { %2878 = vst.msk [vmem:[#allocation3 + $0x6c] sm:$0xf] %vm2850_vm5, %v2809_v51  ;;  %v3108_v38 = vpop.permute.xlu0 %3107  ;;  %5074 = vmatmul.mubr.msk.bf16.gmra.mxu1 %vm4444_vm8, %v5136_v9  ;;  %v4179_v9 = vsel %vm5663_vm14, %v4953_v45, %v4178_v42 }
 0x250   : > { %3872 = vrot.lane.b32.xlu1 %v3629_v44, %s5176_s27  ;;  %3196 = vst.msk [vmem:[#allocation3 + $0x20] sm:$0xf] %vm3187_vm6, %v3108_v38  ;;  %v4123_v44 = vsel %vm5663_vm14, %v4945_v35, %v4122_v31 }
 0x251   : > { %3902 = vrot.lane.b32.xlu0 %v3811_v53, %s5176_s27 }
 0x252   : > { %v3110_v6 = vpop.permute.xlu1 %3109 }
 0x253   : > { %3197 = vst.msk [vmem:[#allocation3 + $0x24] sm:$0xf] %vm3187_vm6, %v3110_v6  ;;  %v3140_v58 = vpop.permute.xlu0 %3139 }
 0x254   : > { %3904 = vrot.lane.b32.xlu1 %v3821_v62, %s5176_s27  ;;  %3212 = vst.msk [vmem:[#allocation3 + $0x60] sm:$0xf] %vm3187_vm6, %v3140_v58 }
 0x255   : > { %3874 = vrot.lane.b32.xlu0 %v3643_v11, %s5176_s27 }
 0x256   : > { %v3142_v14 = vpop.permute.xlu1 %3141 }
 0x257   : > { %3213 = vst.msk [vmem:[#allocation3 + $0x64] sm:$0xf] %vm3187_vm6, %v3142_v14  ;;  %v3112_v10 = vpop.permute.xlu0 %3111 }
 0x258   : > { %3876 = vrot.lane.b32.xlu1 %v3653_v12, %s5176_s27  ;;  %3198 = vst.msk [vmem:[#allocation3 + $0x28] sm:$0xf] %vm3187_vm6, %v3112_v10 }
 0x259   : > { %3906 = vrot.lane.b32.xlu0 %v3835_v0, %s5176_s27 }
 0x25a   : > { %v3114_v25 = vpop.permute.xlu1 %3113 }
 0x25b   : > { %3199 = vst.msk [vmem:[#allocation3 + $0x2c] sm:$0xf] %vm3187_vm6, %v3114_v25  ;;  %v3144_v21 = vpop.permute.xlu0 %3143 }
 0x25c   : > { %3908 = vrot.lane.b32.xlu1 %v3845_v17, %s5176_s27  ;;  %3214 = vst.msk [vmem:[#allocation3 + $0x68] sm:$0xf] %vm3187_vm6, %v3144_v21 }
 0x25d   : > { %4207 = vrot.lane.b32.xlu0 %v4116_v28, %s5177_s6 }
 0x25e   : > { %v3146_v33 = vpop.permute.xlu1 %3145 }
 0x25f   : > { %3215 = vst.msk [vmem:[#allocation3 + $0x6c] sm:$0xf] %vm3187_vm6, %v3146_v33  ;;  %v3302_v2 = vpop.permute.xlu0 %3301 }
 0x260   : > { %4209 = vrot.lane.b32.xlu1 %v4119_v54, %s5177_s6  ;;  %3390 = vst.msk [vmem:[#allocation3 + $0x20] sm:$0xf] %vm3381_vm4, %v3302_v2 }
 0x261   : > { %4239 = vrot.lane.b32.xlu0 %v4172_v34, %s5177_s6 }
 0x262   : > { %v3304_v43 = vpop.permute.xlu1 %3303 }
 0x263   : > { %3391 = vst.msk [vmem:[#allocation3 + $0x24] sm:$0xf] %vm3381_vm4, %v3304_v43  ;;  %v3334_v32 = vpop.permute.xlu0 %3333 }
 0x264   : > { %4241 = vrot.lane.b32.xlu1 %v4175_v39, %s5177_s6  ;;  %3406 = vst.msk [vmem:[#allocation3 + $0x60] sm:$0xf] %vm3381_vm4, %v3334_v32 }
 0x265   : > { %4211 = vrot.lane.b32.xlu0 %v4123_v44, %s5177_s6 }
 0x266   : > { %v3336_v51 = vpop.permute.xlu1 %3335 }
 0x267   : > { %3407 = vst.msk [vmem:[#allocation3 + $0x64] sm:$0xf] %vm3381_vm4, %v3336_v51  ;;  %v3306_v53 = vpop.permute.xlu0 %3305 }
 0x268   : > { %4213 = vrot.lane.b32.xlu1 %v4126_v47, %s5177_s6  ;;  %3392 = vst.msk [vmem:[#allocation3 + $0x28] sm:$0xf] %vm3381_vm4, %v3306_v53 }
 0x269   : > { %4243 = vrot.lane.b32.xlu0 %v4179_v9, %s5177_s6 }
 0x26a   : > { %v3308_v55 = vpop.permute.xlu1 %3307 }
 0x26b   : > { %3393 = vst.msk [vmem:[#allocation3 + $0x2c] sm:$0xf] %vm3381_vm4, %v3308_v55  ;;  %v3338_v56 = vpop.permute.xlu0 %3337 }
 0x26c   : > { %4245 = vrot.lane.b32.xlu1 %v4182_v15, %s5177_s6  ;;  %3408 = vst.msk [vmem:[#allocation3 + $0x68] sm:$0xf] %vm3381_vm4, %v3338_v56 }
 0x26e   : > { %v3340_v38 = vpop.permute.xlu1 %3339 }
 0x26f   : > { %3409 = vst.msk [vmem:[#allocation3 + $0x6c] sm:$0xf] %vm3381_vm4, %v3340_v38  ;;  %v3863_v7 = vpop.permute.xlu0 %3862 }
 0x270   : > { %3951 = vst.msk [vmem:[#allocation3 + $0x20] sm:$0xf] %vm3942_vm3, %v3863_v7 }
 0x272   : > { %v3865_v62 = vpop.permute.xlu1 %3864 }
 0x273   : > { %3952 = vst.msk [vmem:[#allocation3 + $0x24] sm:$0xf] %vm3942_vm3, %v3865_v62  ;;  %v3895_v60 = vpop.permute.xlu0 %3894 }
 0x274   : > { %3967 = vst.msk [vmem:[#allocation3 + $0x60] sm:$0xf] %vm3942_vm3, %v3895_v60 }
 0x276   : > { %v3897_v26 = vpop.permute.xlu1 %3896 }
 0x277   : > { %3968 = vst.msk [vmem:[#allocation3 + $0x64] sm:$0xf] %vm3942_vm3, %v3897_v26  ;;  %v3867_v4 = vpop.permute.xlu0 %3866 }
 0x278   : > { %3953 = vst.msk [vmem:[#allocation3 + $0x28] sm:$0xf] %vm3942_vm3, %v3867_v4 }
 0x27a   : > { %v3869_v5 = vpop.permute.xlu1 %3868 }
 0x27b   : > { %3954 = vst.msk [vmem:[#allocation3 + $0x2c] sm:$0xf] %vm3942_vm3, %v3869_v5  ;;  %v3899_v6 = vpop.permute.xlu0 %3898 }
 0x27c   : > { %3969 = vst.msk [vmem:[#allocation3 + $0x68] sm:$0xf] %vm3942_vm3, %v3899_v6 }
 0x27e   : > { %v3901_v11 = vpop.permute.xlu1 %3900 }
 0x27f   : > { %3970 = vst.msk [vmem:[#allocation3 + $0x6c] sm:$0xf] %vm3942_vm3, %v3901_v11  ;;  %v4200_v61 = vpop.permute.xlu0 %4199 }
 0x280   : > { %4288 = vst.msk [vmem:[#allocation3 + $0x20] sm:$0xf] %vm4279_vm7, %v4200_v61 }
 0x282   : > { %v4202_v57 = vpop.permute.xlu1 %4201 }
 0x283   : > { %4289 = vst.msk [vmem:[#allocation3 + $0x24] sm:$0xf] %vm4279_vm7, %v4202_v57  ;;  %v4232_v58 = vpop.permute.xlu0 %4231 }
 0x284   : > { %4304 = vst.msk [vmem:[#allocation3 + $0x60] sm:$0xf] %vm4279_vm7, %v4232_v58 }
 0x286   : > { %v4234_v48 = vpop.permute.xlu1 %4233 }
 0x287   : > { %4305 = vst.msk [vmem:[#allocation3 + $0x64] sm:$0xf] %vm4279_vm7, %v4234_v48  ;;  %v4204_v12 = vpop.permute.xlu0 %4203 }
 0x288   : > { %4290 = vst.msk [vmem:[#allocation3 + $0x28] sm:$0xf] %vm4279_vm7, %v4204_v12 }
 0x28a   : > { %v4206_v13 = vpop.permute.xlu1 %4205  ;;  %v5137_v8 = vld [vmem:[#allocation3 + $0x20] sm:$0xff]  }
 0x28b   : > { %4291 = vst.msk [vmem:[#allocation3 + $0x2c] sm:$0xf] %vm4279_vm7, %v4206_v13  ;;  %v4236_v18 = vpop.permute.xlu0 %4235  ;;  %5061 = vmatprep.mubr.msk.bf16.mxu0 %vm4444_vm8, %v5137_v8 }
 0x28c   : > { %4306 = vst.msk [vmem:[#allocation3 + $0x68] sm:$0xf] %vm4279_vm7, %v4236_v18 }
 0x28e   : > { %v4238_v14 = vpop.permute.xlu1 %4237  ;;  %v5138_v0 = vld [vmem:[#allocation3 + $0x60] sm:$0xff]  }
 0x28f   : > { %4307 = vst.msk [vmem:[#allocation3 + $0x6c] sm:$0xf] %vm4279_vm7, %v4238_v14  ;;  %v2779_v27 = vpop.permute.xlu0 %2778  ;;  %5077 = vmatprep.mubr.msk.bf16.mxu1 %vm4444_vm8, %v5138_v0 }
 0x290   : > { %2863 = vst.msk [vmem:[#allocation3 + $0x30] sm:$0xf] %vm2850_vm5, %v2779_v27 }
 0x292   : > { %v2781_v63 = vpop.permute.xlu1 %2780  ;;  %v5139_v59 = vld [vmem:[#allocation3 + $0x28] sm:$0xff]  }
 0x293   : > { %2864 = vst.msk [vmem:[#allocation3 + $0x34] sm:$0xf] %vm2850_vm5, %v2781_v63  ;;  %v2811_v10 = vpop.permute.xlu0 %2810  ;;  %5062 = vmatmul.mubr.msk.bf16.gmra.mxu0 %vm4444_vm8, %v5139_v59 }
 0x294   : > { %2879 = vst.msk [vmem:[#allocation3 + $0x70] sm:$0xf] %vm2850_vm5, %v2811_v10 }
 0x296   : > { %v2813_v36 = vpop.permute.xlu1 %2812  ;;  %v5140_v17 = vld [vmem:[#allocation3 + $0x68] sm:$0xff]  }
 0x297   : > { %2880 = vst.msk [vmem:[#allocation3 + $0x74] sm:$0xf] %vm2850_vm5, %v2813_v36  ;;  %v2783_v20 = vpop.permute.xlu0 %2782  ;;  %5078 = vmatmul.mubr.msk.bf16.gmra.mxu1 %vm4444_vm8, %v5140_v17 }
 0x298   : > { %2865 = vst.msk [vmem:[#allocation3 + $0x38] sm:$0xf] %vm2850_vm5, %v2783_v20 }
 0x29a   : > { %v2785_v22 = vpop.permute.xlu1 %2784 }
 0x29b   : > { %2866 = vst.msk [vmem:[#allocation3 + $0x3c] sm:$0xf] %vm2850_vm5, %v2785_v22  ;;  %v2815_v19 = vpop.permute.xlu0 %2814 }
 0x29c   : > { %2881 = vst.msk [vmem:[#allocation3 + $0x78] sm:$0xf] %vm2850_vm5, %v2815_v19 }
 0x29e   : > { %v2817_v25 = vpop.permute.xlu1 %2816 }
 0x29f   : > { %2882 = vst.msk [vmem:[#allocation3 + $0x7c] sm:$0xf] %vm2850_vm5, %v2817_v25  ;;  %v3116_v28 = vpop.permute.xlu0 %3115 }
 0x2a0   : > { %3200 = vst.msk [vmem:[#allocation3 + $0x30] sm:$0xf] %vm3187_vm6, %v3116_v28 }
 0x2a2   : > { %v3118_v29 = vpop.permute.xlu1 %3117 }
 0x2a3   : > { %3201 = vst.msk [vmem:[#allocation3 + $0x34] sm:$0xf] %vm3187_vm6, %v3118_v29  ;;  %v3148_v52 = vpop.permute.xlu0 %3147 }
 0x2a4   : > { %3216 = vst.msk [vmem:[#allocation3 + $0x70] sm:$0xf] %vm3187_vm6, %v3148_v52 }
 0x2a6   : > { %v3150_v24 = vpop.permute.xlu1 %3149 }
 0x2a7   : > { %3217 = vst.msk [vmem:[#allocation3 + $0x74] sm:$0xf] %vm3187_vm6, %v3150_v24  ;;  %v3120_v21 = vpop.permute.xlu0 %3119 }
 0x2a8   : > { %3202 = vst.msk [vmem:[#allocation3 + $0x38] sm:$0xf] %vm3187_vm6, %v3120_v21 }
 0x2aa   : > { %v3122_v16 = vpop.permute.xlu1 %3121 }
 0x2ab   : > { %3203 = vst.msk [vmem:[#allocation3 + $0x3c] sm:$0xf] %vm3187_vm6, %v3122_v16  ;;  %v3152_v54 = vpop.permute.xlu0 %3151 }
 0x2ac   : > { %3218 = vst.msk [vmem:[#allocation3 + $0x78] sm:$0xf] %vm3187_vm6, %v3152_v54 }
 0x2ae   : > { %v3154_v23 = vpop.permute.xlu1 %3153 }
 0x2af   : > { %3219 = vst.msk [vmem:[#allocation3 + $0x7c] sm:$0xf] %vm3187_vm6, %v3154_v23  ;;  %v3310_v30 = vpop.permute.xlu0 %3309 }
 0x2b0   : > { %3394 = vst.msk [vmem:[#allocation3 + $0x30] sm:$0xf] %vm3381_vm4, %v3310_v30 }
 0x2b2   : > { %v3312_v31 = vpop.permute.xlu1 %3311 }
 0x2b3   : > { %3395 = vst.msk [vmem:[#allocation3 + $0x34] sm:$0xf] %vm3381_vm4, %v3312_v31  ;;  %v3342_v33 = vpop.permute.xlu0 %3341 }
 0x2b4   : > { %3410 = vst.msk [vmem:[#allocation3 + $0x70] sm:$0xf] %vm3381_vm4, %v3342_v33 }
 0x2b6   : > { %v3344_v34 = vpop.permute.xlu1 %3343 }
 0x2b7   : > { %3411 = vst.msk [vmem:[#allocation3 + $0x74] sm:$0xf] %vm3381_vm4, %v3344_v34  ;;  %v3314_v35 = vpop.permute.xlu0 %3313 }
 0x2b8   : > { %3396 = vst.msk [vmem:[#allocation3 + $0x38] sm:$0xf] %vm3381_vm4, %v3314_v35 }
 0x2ba   : > { %v3316_v1 = vpop.permute.xlu1 %3315 }
 0x2bb   : > { %3397 = vst.msk [vmem:[#allocation3 + $0x3c] sm:$0xf] %vm3381_vm4, %v3316_v1  ;;  %v3346_v3 = vpop.permute.xlu0 %3345 }
 0x2bc   : > { %3412 = vst.msk [vmem:[#allocation3 + $0x78] sm:$0xf] %vm3381_vm4, %v3346_v3 }
 0x2be   : > { %v3348_v2 = vpop.permute.xlu1 %3347 }
 0x2bf   : > { %3413 = vst.msk [vmem:[#allocation3 + $0x7c] sm:$0xf] %vm3381_vm4, %v3348_v2  ;;  %v3871_v37 = vpop.permute.xlu0 %3870 }
 0x2c0   : > { %3955 = vst.msk [vmem:[#allocation3 + $0x30] sm:$0xf] %vm3942_vm3, %v3871_v37 }
 0x2c2   : > { %v3873_v39 = vpop.permute.xlu1 %3872 }
 0x2c3   : > { %3956 = vst.msk [vmem:[#allocation3 + $0x34] sm:$0xf] %vm3942_vm3, %v3873_v39  ;;  %v3903_v40 = vpop.permute.xlu0 %3902  ;;  %v5055_v41 = vpop.f32.mrf.mxu0 }
 0x2c4   : > { %3971 = vst.msk [vmem:[#allocation3 + $0x70] sm:$0xf] %vm3942_vm3, %v3903_v40  ;;  %4660 = vst [vmem:[%s6577_s11 + $0x10] sm:$0xff] %v5055_v41 }
 0x2c5   : > { %v4531_v43 = vpop.f32.mrf.mxu0 }
 0x2c6   : > { %v3905_v42 = vpop.permute.xlu1 %3904  ;;  %4658 = vst [vmem:[%s6577_s11] sm:$0xff] %v4531_v43 }
 0x2c7   : > { %3972 = vst.msk [vmem:[#allocation3 + $0x74] sm:$0xf] %vm3942_vm3, %v3905_v42  ;;  %v3875_v44 = vpop.permute.xlu0 %3874  ;;  %v5056_v45 = vpop.f32.mrf.mxu0 }
 0x2c8   : > { %v5071_v46 = vpop.f32.mrf.mxu1  ;;  %3957 = vst.msk [vmem:[#allocation3 + $0x38] sm:$0xf] %vm3942_vm3, %v3875_v44  ;;  %4661 = vst [vmem:[%s6577_s11 + $0x18] sm:$0xff] %v5056_v45 }
 0x2c9   : > { %4676 = vst [vmem:[%s6577_s11 + $0x90] sm:$0xff] %v5071_v46  ;;  %v4534_v47 = vpop.f32.mrf.mxu0 }
 0x2ca   : > { %v3877_v32 = vpop.permute.xlu1 %3876  ;;  %4659 = vst [vmem:[%s6577_s11 + $0x8] sm:$0xff] %v4534_v47  ;;  %v4595_v49 = vpop.f32.mrf.mxu1 }
 0x2cb   : > { %3958 = vst.msk [vmem:[#allocation3 + $0x3c] sm:$0xf] %vm3942_vm3, %v3877_v32  ;;  %v3907_v50 = vpop.permute.xlu0 %3906  ;;  %4674 = vst [vmem:[%s6577_s11 + $0x80] sm:$0xff] %v4595_v49 }
 0x2cc   : > { %3973 = vst.msk [vmem:[#allocation3 + $0x78] sm:$0xf] %vm3942_vm3, %v3907_v50  ;;  %v5072_v51 = vpop.f32.mrf.mxu1 }
 0x2cd   : > { %4677 = vst [vmem:[%s6577_s11 + $0x98] sm:$0xff] %v5072_v51 }
 0x2ce   : > { %v3909_v9 = vpop.permute.xlu1 %3908  ;;  %v4598_v53 = vpop.f32.mrf.mxu1 }
 0x2cf   : > { %3974 = vst.msk [vmem:[#allocation3 + $0x7c] sm:$0xf] %vm3942_vm3, %v3909_v9  ;;  %v4208_v15 = vpop.permute.xlu0 %4207  ;;  %4675 = vst [vmem:[%s6577_s11 + $0x88] sm:$0xff] %v4598_v53 }
 0x2d0   : > { %4292 = vst.msk [vmem:[#allocation3 + $0x30] sm:$0xf] %vm4279_vm7, %v4208_v15 }
 0x2d2   : > { %v4210_v55 = vpop.permute.xlu1 %4209 }
 0x2d3   : > { %4293 = vst.msk [vmem:[#allocation3 + $0x34] sm:$0xf] %vm4279_vm7, %v4210_v55  ;;  %v4240_v56 = vpop.permute.xlu0 %4239 }
 0x2d4   : > { %4308 = vst.msk [vmem:[#allocation3 + $0x70] sm:$0xf] %vm4279_vm7, %v4240_v56 }
 0x2d6   : > { %v4242_v38 = vpop.permute.xlu1 %4241 }
 0x2d7   : > { %4309 = vst.msk [vmem:[#allocation3 + $0x74] sm:$0xf] %vm4279_vm7, %v4242_v38  ;;  %v4212_v7 = vpop.permute.xlu0 %4211 }
 0x2d8   : > { %4294 = vst.msk [vmem:[#allocation3 + $0x38] sm:$0xf] %vm4279_vm7, %v4212_v7 }
 0x2da   : > { %v4214_v62 = vpop.permute.xlu1 %4213  ;;  %v5141_v60 = vld [vmem:[#allocation3 + $0x30] sm:$0xff]  }
 0x2db   : > { %4295 = vst.msk [vmem:[#allocation3 + $0x3c] sm:$0xf] %vm4279_vm7, %v4214_v62  ;;  %v4244_v26 = vpop.permute.xlu0 %4243  ;;  %5065 = vmatprep.mubr.msk.bf16.mxu0 %vm4444_vm8, %v5141_v60 }
 0x2dc   : > { %4310 = vst.msk [vmem:[#allocation3 + $0x78] sm:$0xf] %vm4279_vm7, %v4244_v26 }
 0x2de   : > { %v4246_v4 = vpop.permute.xlu1 %4245  ;;  %v5142_v5 = vld [vmem:[#allocation3 + $0x70] sm:$0xff]  }
 0x2df   : > { %4311 = vst.msk [vmem:[#allocation3 + $0x7c] sm:$0xf] %vm4279_vm7, %v4246_v4  ;;  %5081 = vmatprep.mubr.msk.bf16.mxu1 %vm4444_vm8, %v5142_v5 }
 0x2e2   : > { %v5143_v6 = vld [vmem:[#allocation3 + $0x38] sm:$0xff]  }
 0x2e3   : > { %5066 = vmatmul.mubr.msk.bf16.gmra.mxu0 %vm4444_vm8, %v5143_v6 }
 0x2e6   : > { %v5144_v11 = vld [vmem:[#allocation3 + $0x78] sm:$0xff]  }
 0x2e7   : > { %5082 = vmatmul.mubr.msk.bf16.gmra.mxu1 %vm4444_vm8, %v5144_v11 }
 0x30b   : > { %v5059_v61 = vpop.f32.mrf.mxu0 }
 0x30c   : > { %4664 = vst [vmem:[%s6577_s11 + $0x30] sm:$0xff] %v5059_v61 }
 0x30d   : > { %v4547_v57 = vpop.f32.mrf.mxu0 }
 0x30e   : > { %4662 = vst [vmem:[%s6577_s11 + $0x20] sm:$0xff] %v4547_v57 }
 0x30f   : > { %v5060_v58 = vpop.f32.mrf.mxu0  ;;  %v5075_v48 = vpop.f32.mrf.mxu1 }
 0x310   : > { %4665 = vst [vmem:[%s6577_s11 + $0x38] sm:$0xff] %v5060_v58  ;;  %4680 = vst [vmem:[%s6577_s11 + $0xb0] sm:$0xff] %v5075_v48 }
 0x311   : > { %v4550_v12 = vpop.f32.mrf.mxu0  ;;  %v4611_v13 = vpop.f32.mrf.mxu1 }
 0x312   : > { %4663 = vst [vmem:[%s6577_s11 + $0x28] sm:$0xff] %v4550_v12  ;;  %4678 = vst [vmem:[%s6577_s11 + $0xa0] sm:$0xff] %v4611_v13 }
 0x313   : > { %v5076_v8 = vpop.f32.mrf.mxu1 }
 0x314   : > { %4681 = vst [vmem:[%s6577_s11 + $0xb8] sm:$0xff] %v5076_v8 }
 0x315   : > { %v4614_v18 = vpop.f32.mrf.mxu1 }
 0x316   : > { %4679 = vst [vmem:[%s6577_s11 + $0xa8] sm:$0xff] %v4614_v18 }
 0x353   : > { %v5063_v14 = vpop.f32.mrf.mxu0 }
 0x354   : > { %4668 = vst [vmem:[%s6577_s11 + $0x50] sm:$0xff] %v5063_v14 }
 0x355   : > { %v4563_v0 = vpop.f32.mrf.mxu0 }
 0x356   : > { %4666 = vst [vmem:[%s6577_s11 + $0x40] sm:$0xff] %v4563_v0 }
 0x357   : > { %v5064_v27 = vpop.f32.mrf.mxu0  ;;  %v5079_v63 = vpop.f32.mrf.mxu1 }
 0x358   : > { %4669 = vst [vmem:[%s6577_s11 + $0x58] sm:$0xff] %v5064_v27  ;;  %4684 = vst [vmem:[%s6577_s11 + $0xd0] sm:$0xff] %v5079_v63 }
 0x359   : > { %v4566_v59 = vpop.f32.mrf.mxu0  ;;  %v4627_v10 = vpop.f32.mrf.mxu1 }
 0x35a   : > { %4667 = vst [vmem:[%s6577_s11 + $0x48] sm:$0xff] %v4566_v59  ;;  %4682 = vst [vmem:[%s6577_s11 + $0xc0] sm:$0xff] %v4627_v10 }
 0x35b   : > { %v5080_v36 = vpop.f32.mrf.mxu1 }
 0x35c   : > { %4685 = vst [vmem:[%s6577_s11 + $0xd8] sm:$0xff] %v5080_v36 }
 0x35d   : > { %v4630_v17 = vpop.f32.mrf.mxu1 }
 0x35e   : > { %4683 = vst [vmem:[%s6577_s11 + $0xc8] sm:$0xff] %v4630_v17 }
 0x3a3   : > { %v5067_v20 = vpop.f32.mrf.mxu0 }
 0x3a4   : > { %4672 = vst [vmem:[%s6577_s11 + $0x70] sm:$0xff] %v5067_v20 }
 0x3a5   : > { %v4579_v22 = vpop.f32.mrf.mxu0 }
 0x3a6   : > { %4670 = vst [vmem:[%s6577_s11 + $0x60] sm:$0xff] %v4579_v22 }
 0x3a7   : > { %v5068_v19 = vpop.f32.mrf.mxu0  ;;  %v5083_v25 = vpop.f32.mrf.mxu1 }
 0x3a8   : > { %4673 = vst [vmem:[%s6577_s11 + $0x78] sm:$0xff] %v5068_v19  ;;  %4688 = vst [vmem:[%s6577_s11 + $0xf0] sm:$0xff] %v5083_v25 }
 0x3a9   : > { %v4582_v28 = vpop.f32.mrf.mxu0  ;;  %v4643_v29 = vpop.f32.mrf.mxu1 }
 0x3aa   : > { %4671 = vst [vmem:[%s6577_s11 + $0x68] sm:$0xff] %v4582_v28  ;;  %4686 = vst [vmem:[%s6577_s11 + $0xe0] sm:$0xff] %v4643_v29 }
 0x3ab   : > { %v5084_v52 = vpop.f32.mrf.mxu1 }
 0x3ac   : > { %4689 = vst [vmem:[%s6577_s11 + $0xf8] sm:$0xff] %v5084_v52 }
 0x3ad   : > { %v4646_v24 = vpop.f32.mrf.mxu1 }
 0x3ae   : > { %4687 = vst [vmem:[%s6577_s11 + $0xe8] sm:$0xff] %v4646_v24 }
 0x3af PF: > { %s14_s17 = sadd.s32 1, %s5167_s17   ;;  %s6656_s15 = smov %s5163_s16 }
 0x3b0   : > { %p11_p5 = scmp.ge.s32.totalorder %s14_s17, 4   ;;  %s6657_s16 = smov %s6659_s1 }
 0x3b2   :  { %13 = sbr.rel (!%p11_p5) target bundleno = 2 (0x2), region = 78 }

</bundles_post_ra>
